<compile_context>
chip_gen: v6e
topology: v6e:2x2x1
jax: 0.10.0
libtpu: 0.0.40
codegen_flags: <defaults>
</compile_context>

<pallas_src>
import functools

import jax
import jax.numpy as jnp
from jax import lax
from jax.experimental import pallas as pl
from jax.experimental.pallas import tpu as pltpu


# ----------------------------------------------------------------------------
# Fused Pallas kernel
# ----------------------------------------------------------------------------

def _pad_rows(a, front, back):
    """Zero-pad rows of a 2D in-kernel value ('same' conv halo, no HBM copy)."""
    cols = a.shape[1]
    parts = []
    if front:
        parts.append(jnp.zeros((front, cols), a.dtype))
    parts.append(a)
    if back:
        parts.append(jnp.zeros((back, cols), a.dtype))
    if len(parts) == 1:
        return a
    return jnp.concatenate(parts, axis=0)


def lstm_fcn_kernel(x_ref, wih_ref, whh_ref, blstm_ref,
                    w1_ref, b1_ref, w2_ref, b2_ref, w3_ref, b3_ref,
                    wt_ref, wc_ref, bl_ref,
                    out_ref, *, T, B, H, K1, K2, K3, inv_temp):
    """Whole LSTM_FCN forward in one kernel, everything VMEM-resident.

    x_ref  : (T*B, C)      time-major, batch-minor flattened input
    wih_ref: (C, 4H)       LSTM weight_ih^T
    whh_ref: (H, 4H)       LSTM weight_hh^T
    blstm  : (1, 4H)       bias_ih + bias_hh
    w{i}   : (Ki*Cin_i, F_i)  conv weights with taps folded into contraction
    b{i}   : (1, F_i)
    wt/wc  : (H, NCP) / (F3, NCP)  linear weight split by concat order, lane-padded
    bl     : (1, NCP)      linear bias (-1e30 in padded lanes)
    out    : (B, NCP)
    """
    TB = T * B
    C = x_ref.shape[1]
    F1 = b1_ref.shape[1]
    F3 = b3_ref.shape[1]

    x = x_ref[...]                                   # (T*B, C), row = t*B + b

    # ---------------- LSTM branch ----------------
    # Input projection hoisted out of the recurrence: one (T*B,C)x(C,4H) matmul,
    # leaving only h @ whh + gate nonlinearity on the serial critical path.
    xw = jnp.dot(x, wih_ref[...], preferred_element_type=jnp.float32) + blstm_ref[...]
    whh = whh_ref[...]
    h = jnp.zeros((B, H), jnp.float32)
    c = jnp.zeros((B, H), jnp.float32)
    for t in range(T):                               # static unroll (T small, fixed)
        gates = xw[t * B:(t + 1) * B, :] + jnp.dot(
            h, whh, preferred_element_type=jnp.float32)
        sg = jax.nn.sigmoid(gates)                   # one sigmoid covers i, f, o
        g = jnp.tanh(gates[:, 2 * H:3 * H])
        # PyTorch gate order: i, f, g, o
        c = sg[:, H:2 * H] * c + sg[:, 0:H] * g
        h = sg[:, 3 * H:4 * H] * jnp.tanh(c)

    # ---------------- FCN branch ----------------
    # conv1: Cin = input_dim is tiny -> per-tap (T*B,Cin)x(Cin,F1) matmuls.
    p1 = K1 // 2
    xp1 = _pad_rows(x, p1 * B, (K1 - 1 - p1) * B)
    w1 = w1_ref[...]                                 # (K1*C, F1)
    acc1 = jnp.zeros((TB, F1), jnp.float32) + b1_ref[...]
    for k in range(K1):
        acc1 = acc1 + jnp.dot(xp1[k * B:k * B + TB, :],
                              w1[k * C:(k + 1) * C, :],
                              preferred_element_type=jnp.float32)
    a1 = jnp.maximum(acc1, 0.0)

    # conv2: im2col along channels -> one (T*B, K2*F1) x (K2*F1, F2) matmul.
    p2 = K2 // 2
    ap2 = _pad_rows(a1, p2 * B, (K2 - 1 - p2) * B)
    cols2 = jnp.concatenate([ap2[k * B:k * B + TB, :] for k in range(K2)], axis=1)
    a2 = jnp.maximum(
        jnp.dot(cols2, w2_ref[...], preferred_element_type=jnp.float32)
        + b2_ref[...], 0.0)

    # conv3: same pattern.
    p3 = K3 // 2
    ap3 = _pad_rows(a2, p3 * B, (K3 - 1 - p3) * B)
    cols3 = jnp.concatenate([ap3[k * B:k * B + TB, :] for k in range(K3)], axis=1)
    a3 = jnp.maximum(
        jnp.dot(cols3, w3_ref[...], preferred_element_type=jnp.float32)
        + b3_ref[...], 0.0)

    # Mean over time folded in-kernel (row t*B + b belongs to batch b).
    conv_sum = jnp.zeros((B, F3), jnp.float32)
    for t in range(T):
        conv_sum = conv_sum + a3[t * B:(t + 1) * B, :]
    conv_mean = conv_sum * (1.0 / T)

    # ---------------- head: linear + softmax / temperature ----------------
    logits = (jnp.dot(h, wt_ref[...], preferred_element_type=jnp.float32)
              + jnp.dot(conv_mean, wc_ref[...], preferred_element_type=jnp.float32)
              + bl_ref[...]) * inv_temp
    z = logits - jnp.max(logits, axis=-1, keepdims=True)
    e = jnp.exp(z)
    denom = jnp.sum(e, axis=-1, keepdims=True)
    # exact reciprocal (approx=True would violate the 1e-4 sum-to-1 tolerance)
    out_ref[...] = e * pl.reciprocal(denom, approx=False)


# ----------------------------------------------------------------------------
# Wrapper
# ----------------------------------------------------------------------------

def _vmem_spec():
    return pl.BlockSpec(memory_space=pltpu.MemorySpace.VMEM)


@functools.partial(jax.jit, static_argnames=("temperature",))
def lstm_fcn_forward(x_btc, params, temperature=1.0):
    """x_btc: (B, T, C) exactly like the PyTorch batch_first input."""
    B, T, C = x_btc.shape
    H = params['w_hh_t'].shape[0]
    NC = params['lin_b'].shape[1]
    K1 = params['conv1_w'].shape[0]
    K2 = params['conv2_w'].shape[0]
    K3 = params['conv3_w'].shape[0]

    # Time-major, batch-minor flattening: row index = t*B + b.
    x2d = jnp.transpose(x_btc, (1, 0, 2)).reshape(T * B, C).astype(jnp.float32)

    # Conv weights (K, Cin, Cout) -> (K*Cin, Cout): taps fold into contraction.
    w1 = params['conv1_w'].reshape(K1 * params['conv1_w'].shape[1], -1)
    w2 = params['conv2_w'].reshape(K2 * params['conv2_w'].shape[1], -1)
    w3 = params['conv3_w'].reshape(K3 * params['conv3_w'].shape[1], -1)

    # Lane-pad the head to a multiple of 128 for lane-dense stores.  Padded
    # weight columns are 0 and padded bias columns are -1e30, so padded logits
    # contribute exactly 0 to the softmax; real probabilities are unchanged.
    NCP = ((NC + 127) // 128) * 128
    padc = NCP - NC
    wt = jnp.pad(params['lin_w_time'].astype(jnp.float32), ((0, 0), (0, padc)))
    wc = jnp.pad(params['lin_w_conv'].astype(jnp.float32), ((0, 0), (0, padc)))
    bl = jnp.pad(params['lin_b'].astype(jnp.float32), ((0, 0), (0, padc)),
                 constant_values=-1e30)

    kern = functools.partial(
        lstm_fcn_kernel, T=T, B=B, H=H, K1=K1, K2=K2, K3=K3,
        inv_temp=float(1.0 / temperature))

    out_p = pl.pallas_call(
        kern,
        out_shape=jax.ShapeDtypeStruct((B, NCP), jnp.float32),
        in_specs=[_vmem_spec() for _ in range(13)],
        out_specs=_vmem_spec(),
        compiler_params=pltpu.CompilerParams(vmem_limit_bytes=64 * 1024 * 1024),
    )(x2d, params['w_ih_t'], params['w_hh_t'], params['b_lstm'],
      w1, params['conv1_b'], w2, params['conv2_b'], w3, params['conv3_b'],
      wt, wc, bl)

    return out_p[:, :NC]


# ----------------------------------------------------------------------------
# Pure-JAX reference (same math, no Pallas) for a sanity check
# ----------------------------------------------------------------------------

def reference_forward(x_btc, params, temperature=1.0):
    x_tbc = jnp.transpose(x_btc, (1, 0, 2)).astype(jnp.float32)
    T, B, _ = x_tbc.shape
    H = params['w_hh_t'].shape[0]

    def step(carry, x_t):
        h, c = carry
        gates = x_t @ params['w_ih_t'] + h @ params['w_hh_t'] + params['b_lstm']
        i = jax.nn.sigmoid(gates[:, 0:H])
        f = jax.nn.sigmoid(gates[:, H:2 * H])
        g = jnp.tanh(gates[:, 2 * H:3 * H])
        o = jax.nn.sigmoid(gates[:, 3 * H:4 * H])
        c = f * c + i * g
        h = o * jnp.tanh(c)
        return (h, c), None

    (h_last, _), _ = lax.scan(step, (jnp.zeros((B, H)), jnp.zeros((B, H))), x_tbc)

    def conv(a, w, b):
        K = w.shape[0]
        pad = K // 2
        ap = jnp.pad(a, ((pad, K - 1 - pad), (0, 0), (0, 0)))
        out = sum(jnp.einsum('tbc,cd->tbd', ap[k:k + T], w[k]) for k in range(K))
        return jnp.maximum(out + b.reshape(1, 1, -1), 0.0)

    a = conv(x_tbc, params['conv1_w'], params['conv1_b'])
    a = conv(a, params['conv2_w'], params['conv2_b'])
    a = conv(a, params['conv3_w'], params['conv3_b'])
    conv_mean = jnp.mean(a, axis=0)

    logits = (h_last @ params['lin_w_time'] + conv_mean @ params['lin_w_conv']
              + params['lin_b']) / temperature
    return jax.nn.softmax(logits, axis=-1)


# ----------------------------------------------------------------------------
# Deterministic parameter construction (shapes from LSTM_FCN.__init__)
# ----------------------------------------------------------------------------

def make_params(key, input_dim, hidden_dim, filter_sizes, kernel_sizes, n_classes):
    ks = jax.random.split(key, 16)
    s = 0.1

    def rnd(k, shape):
        return (s * jax.random.normal(k, shape)).astype(jnp.float32)

    H, C = hidden_dim, input_dim
    f1, f2, f3 = filter_sizes
    k1, k2, k3 = kernel_sizes

    params = {
        # LSTM (stored pre-transposed: x @ W_ih^T -> (C, 4H))
        'w_ih_t': rnd(ks[0], (C, 4 * H)),
        'w_hh_t': rnd(ks[1], (H, 4 * H)),
        'b_lstm': rnd(ks[2], (1, 4 * H)),           # bias_ih + bias_hh combined
        # Conv1d weights as (K, Cin, Cout)
        'conv1_w': rnd(ks[3], (k1, C, f1)),
        'conv1_b': rnd(ks[4], (1, f1)),
        'conv2_w': rnd(ks[5], (k2, f1, f2)),
        'conv2_b': rnd(ks[6], (1, f2)),
        'conv3_w': rnd(ks[7], (k3, f2, f3)),
        'conv3_b': rnd(ks[8], (1, f3)),
        # Linear(hidden + f3 -> n_classes), split by the concat order
        'lin_w_time': rnd(ks[9], (H, n_classes)),
        'lin_w_conv': rnd(ks[10], (f3, n_classes)),
        'lin_b': rnd(ks[11], (1, n_classes)),
    }
    return params


# ----------------------------------------------------------------------------

if __name__ == "__main__":
    # small shapes consistent with the module's forward
    B, T, C = 2, 16, 4              # batch, seq_length, input_dim
    hidden_dim = 32
    filter_sizes = [128, 256, 128]
    kernel_sizes = [7, 5, 3]
    n_classes = 6
    temperature = 1.0

    key = jax.random.PRNGKey(0)
    kx, kp = jax.random.split(key)
    x = jax.random.normal(kx, (B, T, C), dtype=jnp.float32)
    params = make_params(kp, C, hidden_dim, filter_sizes, kernel_sizes, n_classes)

    out = lstm_fcn_forward(x, params, temperature=temperature)
    out = jax.block_until_ready(out)

    ref = jax.block_until_ready(reference_forward(x, params, temperature))
    assert out.shape == (B, n_classes)
    assert jnp.allclose(jnp.sum(out, axis=-1), 1.0, atol=1e-4)
    assert jnp.allclose(out, ref, atol=1e-4, rtol=1e-3)

    print("KERNEL_OK")
</pallas_src>

<mosaic_0001>
module attributes {stable_mosaic.version = 11 : i64} {
  func.func @lstm_fcn_kernel(%arg0: memref<32x4xf32, #tpu.memory_space<vmem>>, %arg1: memref<4x128xf32, #tpu.memory_space<vmem>>, %arg2: memref<32x128xf32, #tpu.memory_space<vmem>>, %arg3: memref<1x128xf32, #tpu.memory_space<vmem>>, %arg4: memref<28x128xf32, #tpu.memory_space<vmem>>, %arg5: memref<1x128xf32, #tpu.memory_space<vmem>>, %arg6: memref<640x256xf32, #tpu.memory_space<vmem>>, %arg7: memref<1x256xf32, #tpu.memory_space<vmem>>, %arg8: memref<768x128xf32, #tpu.memory_space<vmem>>, %arg9: memref<1x128xf32, #tpu.memory_space<vmem>>, %arg10: memref<32x128xf32, #tpu.memory_space<vmem>>, %arg11: memref<128x128xf32, #tpu.memory_space<vmem>>, %arg12: memref<1x128xf32, #tpu.memory_space<vmem>>, %arg13: memref<2x128xf32, #tpu.memory_space<vmem>>) attributes {dimension_semantics = [], scalar_prefetch = 0 : i64, scratch_operands = 0 : i64, tpu.core_type = #tpu.core_type<tc>} {
    %c0 = arith.constant 0 : index
    %c0_0 = arith.constant 0 : index
    %0 = vector.load %arg0[%c0, %c0_0] : memref<32x4xf32, #tpu.memory_space<vmem>>, vector<32x4xf32>
    %c0_1 = arith.constant 0 : index
    %c0_2 = arith.constant 0 : index
    %1 = vector.load %arg1[%c0_1, %c0_2] : memref<4x128xf32, #tpu.memory_space<vmem>>, vector<4x128xf32>
    %cst = arith.constant dense<0.000000e+00> : vector<32x128xf32>
    %2 = tpu.matmul %0, %1, %cst {dimension_numbers = #tpu.dot_dimension_numbers<[1], [0], [0], [1], [0, 0, 1, 1], [], []>} : vector<32x4xf32>, vector<4x128xf32>, vector<32x128xf32> -> vector<32x128xf32>
    %c0_3 = arith.constant 0 : index
    %c0_4 = arith.constant 0 : index
    %3 = vector.load %arg3[%c0_3, %c0_4] : memref<1x128xf32, #tpu.memory_space<vmem>>, vector<1x128xf32>
    %4 = vector.broadcast %3 : vector<1x128xf32> to vector<32x128xf32>
    %5 = arith.addf %2, %4 : vector<32x128xf32>
    %c0_5 = arith.constant 0 : index
    %c0_6 = arith.constant 0 : index
    %6 = vector.load %arg2[%c0_5, %c0_6] : memref<32x128xf32, #tpu.memory_space<vmem>>, vector<32x128xf32>
    %cst_7 = arith.constant 0.000000e+00 : f32
    %7 = vector.broadcast %cst_7 : f32 to vector<2x32xf32>
    %cst_8 = arith.constant 0.000000e+00 : f32
    %8 = vector.broadcast %cst_8 : f32 to vector<2x32xf32>
    %9 = vector.extract_strided_slice %5 {offsets = [0, 0], sizes = [2, 128], strides = [1, 1]} : vector<32x128xf32> to vector<2x128xf32>
    %cst_9 = arith.constant dense<0.000000e+00> : vector<2x128xf32>
    %10 = tpu.matmul %7, %6, %cst_9 {dimension_numbers = #tpu.dot_dimension_numbers<[1], [0], [0], [1], [0, 0, 1, 1], [], []>} : vector<2x32xf32>, vector<32x128xf32>, vector<2x128xf32> -> vector<2x128xf32>
    %11 = arith.addf %9, %10 : vector<2x128xf32>
    %12 = arith.negf %11 : vector<2x128xf32>
    %13 = math.exp %12 : vector<2x128xf32>
    %cst_10 = arith.constant 1.000000e+00 : f32
    %14 = vector.broadcast %cst_10 : f32 to vector<2x128xf32>
    %15 = arith.addf %14, %13 : vector<2x128xf32>
    %16 = arith.divf %14, %15 : vector<2x128xf32>
    %17 = vector.extract_strided_slice %11 {offsets = [0, 64], sizes = [2, 32], strides = [1, 1]} : vector<2x128xf32> to vector<2x32xf32>
    %18 = math.tanh %17 : vector<2x32xf32>
    %19 = vector.extract_strided_slice %16 {offsets = [0, 32], sizes = [2, 32], strides = [1, 1]} : vector<2x128xf32> to vector<2x32xf32>
    %20 = arith.mulf %19, %8 : vector<2x32xf32>
    %21 = vector.extract_strided_slice %16 {offsets = [0, 0], sizes = [2, 32], strides = [1, 1]} : vector<2x128xf32> to vector<2x32xf32>
    %22 = arith.mulf %21, %18 : vector<2x32xf32>
    %23 = arith.addf %20, %22 : vector<2x32xf32>
    %24 = vector.extract_strided_slice %16 {offsets = [0, 96], sizes = [2, 32], strides = [1, 1]} : vector<2x128xf32> to vector<2x32xf32>
    %25 = math.tanh %23 : vector<2x32xf32>
    %26 = arith.mulf %24, %25 : vector<2x32xf32>
    %27 = vector.extract_strided_slice %5 {offsets = [2, 0], sizes = [2, 128], strides = [1, 1]} : vector<32x128xf32> to vector<2x128xf32>
    %cst_11 = arith.constant dense<0.000000e+00> : vector<2x128xf32>
    %28 = tpu.matmul %26, %6, %cst_11 {dimension_numbers = #tpu.dot_dimension_numbers<[1], [0], [0], [1], [0, 0, 1, 1], [], []>} : vector<2x32xf32>, vector<32x128xf32>, vector<2x128xf32> -> vector<2x128xf32>
    %29 = arith.addf %27, %28 : vector<2x128xf32>
    %30 = arith.negf %29 : vector<2x128xf32>
    %31 = math.exp %30 : vector<2x128xf32>
    %cst_12 = arith.constant 1.000000e+00 : f32
    %32 = vector.broadcast %cst_12 : f32 to vector<2x128xf32>
    %33 = arith.addf %32, %31 : vector<2x128xf32>
    %34 = arith.divf %32, %33 : vector<2x128xf32>
    %35 = vector.extract_strided_slice %29 {offsets = [0, 64], sizes = [2, 32], strides = [1, 1]} : vector<2x128xf32> to vector<2x32xf32>
    %36 = math.tanh %35 : vector<2x32xf32>
    %37 = vector.extract_strided_slice %34 {offsets = [0, 32], sizes = [2, 32], strides = [1, 1]} : vector<2x128xf32> to vector<2x32xf32>
    %38 = arith.mulf %37, %23 : vector<2x32xf32>
    %39 = vector.extract_strided_slice %34 {offsets = [0, 0], sizes = [2, 32], strides = [1, 1]} : vector<2x128xf32> to vector<2x32xf32>
    %40 = arith.mulf %39, %36 : vector<2x32xf32>
    %41 = arith.addf %38, %40 : vector<2x32xf32>
    %42 = vector.extract_strided_slice %34 {offsets = [0, 96], sizes = [2, 32], strides = [1, 1]} : vector<2x128xf32> to vector<2x32xf32>
    %43 = math.tanh %41 : vector<2x32xf32>
    %44 = arith.mulf %42, %43 : vector<2x32xf32>
    %45 = vector.extract_strided_slice %5 {offsets = [4, 0], sizes = [2, 128], strides = [1, 1]} : vector<32x128xf32> to vector<2x128xf32>
    %cst_13 = arith.constant dense<0.000000e+00> : vector<2x128xf32>
    %46 = tpu.matmul %44, %6, %cst_13 {dimension_numbers = #tpu.dot_dimension_numbers<[1], [0], [0], [1], [0, 0, 1, 1], [], []>} : vector<2x32xf32>, vector<32x128xf32>, vector<2x128xf32> -> vector<2x128xf32>
    %47 = arith.addf %45, %46 : vector<2x128xf32>
    %48 = arith.negf %47 : vector<2x128xf32>
    %49 = math.exp %48 : vector<2x128xf32>
    %cst_14 = arith.constant 1.000000e+00 : f32
    %50 = vector.broadcast %cst_14 : f32 to vector<2x128xf32>
    %51 = arith.addf %50, %49 : vector<2x128xf32>
    %52 = arith.divf %50, %51 : vector<2x128xf32>
    %53 = vector.extract_strided_slice %47 {offsets = [0, 64], sizes = [2, 32], strides = [1, 1]} : vector<2x128xf32> to vector<2x32xf32>
    %54 = math.tanh %53 : vector<2x32xf32>
    %55 = vector.extract_strided_slice %52 {offsets = [0, 32], sizes = [2, 32], strides = [1, 1]} : vector<2x128xf32> to vector<2x32xf32>
    %56 = arith.mulf %55, %41 : vector<2x32xf32>
    %57 = vector.extract_strided_slice %52 {offsets = [0, 0], sizes = [2, 32], strides = [1, 1]} : vector<2x128xf32> to vector<2x32xf32>
    %58 = arith.mulf %57, %54 : vector<2x32xf32>
    %59 = arith.addf %56, %58 : vector<2x32xf32>
    %60 = vector.extract_strided_slice %52 {offsets = [0, 96], sizes = [2, 32], strides = [1, 1]} : vector<2x128xf32> to vector<2x32xf32>
    %61 = math.tanh %59 : vector<2x32xf32>
    %62 = arith.mulf %60, %61 : vector<2x32xf32>
    %63 = vector.extract_strided_slice %5 {offsets = [6, 0], sizes = [2, 128], strides = [1, 1]} : vector<32x128xf32> to vector<2x128xf32>
    %cst_15 = arith.constant dense<0.000000e+00> : vector<2x128xf32>
    %64 = tpu.matmul %62, %6, %cst_15 {dimension_numbers = #tpu.dot_dimension_numbers<[1], [0], [0], [1], [0, 0, 1, 1], [], []>} : vector<2x32xf32>, vector<32x128xf32>, vector<2x128xf32> -> vector<2x128xf32>
    %65 = arith.addf %63, %64 : vector<2x128xf32>
    %66 = arith.negf %65 : vector<2x128xf32>
    %67 = math.exp %66 : vector<2x128xf32>
    %cst_16 = arith.constant 1.000000e+00 : f32
    %68 = vector.broadcast %cst_16 : f32 to vector<2x128xf32>
    %69 = arith.addf %68, %67 : vector<2x128xf32>
    %70 = arith.divf %68, %69 : vector<2x128xf32>
    %71 = vector.extract_strided_slice %65 {offsets = [0, 64], sizes = [2, 32], strides = [1, 1]} : vector<2x128xf32> to vector<2x32xf32>
    %72 = math.tanh %71 : vector<2x32xf32>
    %73 = vector.extract_strided_slice %70 {offsets = [0, 32], sizes = [2, 32], strides = [1, 1]} : vector<2x128xf32> to vector<2x32xf32>
    %74 = arith.mulf %73, %59 : vector<2x32xf32>
    %75 = vector.extract_strided_slice %70 {offsets = [0, 0], sizes = [2, 32], strides = [1, 1]} : vector<2x128xf32> to vector<2x32xf32>
    %76 = arith.mulf %75, %72 : vector<2x32xf32>
    %77 = arith.addf %74, %76 : vector<2x32xf32>
    %78 = vector.extract_strided_slice %70 {offsets = [0, 96], sizes = [2, 32], strides = [1, 1]} : vector<2x128xf32> to vector<2x32xf32>
    %79 = math.tanh %77 : vector<2x32xf32>
    %80 = arith.mulf %78, %79 : vector<2x32xf32>
    %81 = vector.extract_strided_slice %5 {offsets = [8, 0], sizes = [2, 128], strides = [1, 1]} : vector<32x128xf32> to vector<2x128xf32>
    %cst_17 = arith.constant dense<0.000000e+00> : vector<2x128xf32>
    %82 = tpu.matmul %80, %6, %cst_17 {dimension_numbers = #tpu.dot_dimension_numbers<[1], [0], [0], [1], [0, 0, 1, 1], [], []>} : vector<2x32xf32>, vector<32x128xf32>, vector<2x128xf32> -> vector<2x128xf32>
    %83 = arith.addf %81, %82 : vector<2x128xf32>
    %84 = arith.negf %83 : vector<2x128xf32>
    %85 = math.exp %84 : vector<2x128xf32>
    %cst_18 = arith.constant 1.000000e+00 : f32
    %86 = vector.broadcast %cst_18 : f32 to vector<2x128xf32>
    %87 = arith.addf %86, %85 : vector<2x128xf32>
    %88 = arith.divf %86, %87 : vector<2x128xf32>
    %89 = vector.extract_strided_slice %83 {offsets = [0, 64], sizes = [2, 32], strides = [1, 1]} : vector<2x128xf32> to vector<2x32xf32>
    %90 = math.tanh %89 : vector<2x32xf32>
    %91 = vector.extract_strided_slice %88 {offsets = [0, 32], sizes = [2, 32], strides = [1, 1]} : vector<2x128xf32> to vector<2x32xf32>
    %92 = arith.mulf %91, %77 : vector<2x32xf32>
    %93 = vector.extract_strided_slice %88 {offsets = [0, 0], sizes = [2, 32], strides = [1, 1]} : vector<2x128xf32> to vector<2x32xf32>
    %94 = arith.mulf %93, %90 : vector<2x32xf32>
    %95 = arith.addf %92, %94 : vector<2x32xf32>
    %96 = vector.extract_strided_slice %88 {offsets = [0, 96], sizes = [2, 32], strides = [1, 1]} : vector<2x128xf32> to vector<2x32xf32>
    %97 = math.tanh %95 : vector<2x32xf32>
    %98 = arith.mulf %96, %97 : vector<2x32xf32>
    %99 = vector.extract_strided_slice %5 {offsets = [10, 0], sizes = [2, 128], strides = [1, 1]} : vector<32x128xf32> to vector<2x128xf32>
    %cst_19 = arith.constant dense<0.000000e+00> : vector<2x128xf32>
    %100 = tpu.matmul %98, %6, %cst_19 {dimension_numbers = #tpu.dot_dimension_numbers<[1], [0], [0], [1], [0, 0, 1, 1], [], []>} : vector<2x32xf32>, vector<32x128xf32>, vector<2x128xf32> -> vector<2x128xf32>
    %101 = arith.addf %99, %100 : vector<2x128xf32>
    %102 = arith.negf %101 : vector<2x128xf32>
    %103 = math.exp %102 : vector<2x128xf32>
    %cst_20 = arith.constant 1.000000e+00 : f32
    %104 = vector.broadcast %cst_20 : f32 to vector<2x128xf32>
    %105 = arith.addf %104, %103 : vector<2x128xf32>
    %106 = arith.divf %104, %105 : vector<2x128xf32>
    %107 = vector.extract_strided_slice %101 {offsets = [0, 64], sizes = [2, 32], strides = [1, 1]} : vector<2x128xf32> to vector<2x32xf32>
    %108 = math.tanh %107 : vector<2x32xf32>
    %109 = vector.extract_strided_slice %106 {offsets = [0, 32], sizes = [2, 32], strides = [1, 1]} : vector<2x128xf32> to vector<2x32xf32>
    %110 = arith.mulf %109, %95 : vector<2x32xf32>
    %111 = vector.extract_strided_slice %106 {offsets = [0, 0], sizes = [2, 32], strides = [1, 1]} : vector<2x128xf32> to vector<2x32xf32>
    %112 = arith.mulf %111, %108 : vector<2x32xf32>
    %113 = arith.addf %110, %112 : vector<2x32xf32>
    %114 = vector.extract_strided_slice %106 {offsets = [0, 96], sizes = [2, 32], strides = [1, 1]} : vector<2x128xf32> to vector<2x32xf32>
    %115 = math.tanh %113 : vector<2x32xf32>
    %116 = arith.mulf %114, %115 : vector<2x32xf32>
    %117 = vector.extract_strided_slice %5 {offsets = [12, 0], sizes = [2, 128], strides = [1, 1]} : vector<32x128xf32> to vector<2x128xf32>
    %cst_21 = arith.constant dense<0.000000e+00> : vector<2x128xf32>
    %118 = tpu.matmul %116, %6, %cst_21 {dimension_numbers = #tpu.dot_dimension_numbers<[1], [0], [0], [1], [0, 0, 1, 1], [], []>} : vector<2x32xf32>, vector<32x128xf32>, vector<2x128xf32> -> vector<2x128xf32>
    %119 = arith.addf %117, %118 : vector<2x128xf32>
    %120 = arith.negf %119 : vector<2x128xf32>
    %121 = math.exp %120 : vector<2x128xf32>
    %cst_22 = arith.constant 1.000000e+00 : f32
    %122 = vector.broadcast %cst_22 : f32 to vector<2x128xf32>
    %123 = arith.addf %122, %121 : vector<2x128xf32>
    %124 = arith.divf %122, %123 : vector<2x128xf32>
    %125 = vector.extract_strided_slice %119 {offsets = [0, 64], sizes = [2, 32], strides = [1, 1]} : vector<2x128xf32> to vector<2x32xf32>
    %126 = math.tanh %125 : vector<2x32xf32>
    %127 = vector.extract_strided_slice %124 {offsets = [0, 32], sizes = [2, 32], strides = [1, 1]} : vector<2x128xf32> to vector<2x32xf32>
    %128 = arith.mulf %127, %113 : vector<2x32xf32>
    %129 = vector.extract_strided_slice %124 {offsets = [0, 0], sizes = [2, 32], strides = [1, 1]} : vector<2x128xf32> to vector<2x32xf32>
    %130 = arith.mulf %129, %126 : vector<2x32xf32>
    %131 = arith.addf %128, %130 : vector<2x32xf32>
    %132 = vector.extract_strided_slice %124 {offsets = [0, 96], sizes = [2, 32], strides = [1, 1]} : vector<2x128xf32> to vector<2x32xf32>
    %133 = math.tanh %131 : vector<2x32xf32>
    %134 = arith.mulf %132, %133 : vector<2x32xf32>
    %135 = vector.extract_strided_slice %5 {offsets = [14, 0], sizes = [2, 128], strides = [1, 1]} : vector<32x128xf32> to vector<2x128xf32>
    %cst_23 = arith.constant dense<0.000000e+00> : vector<2x128xf32>
    %136 = tpu.matmul %134, %6, %cst_23 {dimension_numbers = #tpu.dot_dimension_numbers<[1], [0], [0], [1], [0, 0, 1, 1], [], []>} : vector<2x32xf32>, vector<32x128xf32>, vector<2x128xf32> -> vector<2x128xf32>
    %137 = arith.addf %135, %136 : vector<2x128xf32>
    %138 = arith.negf %137 : vector<2x128xf32>
    %139 = math.exp %138 : vector<2x128xf32>
    %cst_24 = arith.constant 1.000000e+00 : f32
    %140 = vector.broadcast %cst_24 : f32 to vector<2x128xf32>
    %141 = arith.addf %140, %139 : vector<2x128xf32>
    %142 = arith.divf %140, %141 : vector<2x128xf32>
    %143 = vector.extract_strided_slice %137 {offsets = [0, 64], sizes = [2, 32], strides = [1, 1]} : vector<2x128xf32> to vector<2x32xf32>
    %144 = math.tanh %143 : vector<2x32xf32>
    %145 = vector.extract_strided_slice %142 {offsets = [0, 32], sizes = [2, 32], strides = [1, 1]} : vector<2x128xf32> to vector<2x32xf32>
    %146 = arith.mulf %145, %131 : vector<2x32xf32>
    %147 = vector.extract_strided_slice %142 {offsets = [0, 0], sizes = [2, 32], strides = [1, 1]} : vector<2x128xf32> to vector<2x32xf32>
    %148 = arith.mulf %147, %144 : vector<2x32xf32>
    %149 = arith.addf %146, %148 : vector<2x32xf32>
    %150 = vector.extract_strided_slice %142 {offsets = [0, 96], sizes = [2, 32], strides = [1, 1]} : vector<2x128xf32> to vector<2x32xf32>
    %151 = math.tanh %149 : vector<2x32xf32>
    %152 = arith.mulf %150, %151 : vector<2x32xf32>
    %153 = vector.extract_strided_slice %5 {offsets = [16, 0], sizes = [2, 128], strides = [1, 1]} : vector<32x128xf32> to vector<2x128xf32>
    %cst_25 = arith.constant dense<0.000000e+00> : vector<2x128xf32>
    %154 = tpu.matmul %152, %6, %cst_25 {dimension_numbers = #tpu.dot_dimension_numbers<[1], [0], [0], [1], [0, 0, 1, 1], [], []>} : vector<2x32xf32>, vector<32x128xf32>, vector<2x128xf32> -> vector<2x128xf32>
    %155 = arith.addf %153, %154 : vector<2x128xf32>
    %156 = arith.negf %155 : vector<2x128xf32>
    %157 = math.exp %156 : vector<2x128xf32>
    %cst_26 = arith.constant 1.000000e+00 : f32
    %158 = vector.broadcast %cst_26 : f32 to vector<2x128xf32>
    %159 = arith.addf %158, %157 : vector<2x128xf32>
    %160 = arith.divf %158, %159 : vector<2x128xf32>
    %161 = vector.extract_strided_slice %155 {offsets = [0, 64], sizes = [2, 32], strides = [1, 1]} : vector<2x128xf32> to vector<2x32xf32>
    %162 = math.tanh %161 : vector<2x32xf32>
    %163 = vector.extract_strided_slice %160 {offsets = [0, 32], sizes = [2, 32], strides = [1, 1]} : vector<2x128xf32> to vector<2x32xf32>
    %164 = arith.mulf %163, %149 : vector<2x32xf32>
    %165 = vector.extract_strided_slice %160 {offsets = [0, 0], sizes = [2, 32], strides = [1, 1]} : vector<2x128xf32> to vector<2x32xf32>
    %166 = arith.mulf %165, %162 : vector<2x32xf32>
    %167 = arith.addf %164, %166 : vector<2x32xf32>
    %168 = vector.extract_strided_slice %160 {offsets = [0, 96], sizes = [2, 32], strides = [1, 1]} : vector<2x128xf32> to vector<2x32xf32>
    %169 = math.tanh %167 : vector<2x32xf32>
    %170 = arith.mulf %168, %169 : vector<2x32xf32>
    %171 = vector.extract_strided_slice %5 {offsets = [18, 0], sizes = [2, 128], strides = [1, 1]} : vector<32x128xf32> to vector<2x128xf32>
    %cst_27 = arith.constant dense<0.000000e+00> : vector<2x128xf32>
    %172 = tpu.matmul %170, %6, %cst_27 {dimension_numbers = #tpu.dot_dimension_numbers<[1], [0], [0], [1], [0, 0, 1, 1], [], []>} : vector<2x32xf32>, vector<32x128xf32>, vector<2x128xf32> -> vector<2x128xf32>
    %173 = arith.addf %171, %172 : vector<2x128xf32>
    %174 = arith.negf %173 : vector<2x128xf32>
    %175 = math.exp %174 : vector<2x128xf32>
    %cst_28 = arith.constant 1.000000e+00 : f32
    %176 = vector.broadcast %cst_28 : f32 to vector<2x128xf32>
    %177 = arith.addf %176, %175 : vector<2x128xf32>
    %178 = arith.divf %176, %177 : vector<2x128xf32>
    %179 = vector.extract_strided_slice %173 {offsets = [0, 64], sizes = [2, 32], strides = [1, 1]} : vector<2x128xf32> to vector<2x32xf32>
    %180 = math.tanh %179 : vector<2x32xf32>
    %181 = vector.extract_strided_slice %178 {offsets = [0, 32], sizes = [2, 32], strides = [1, 1]} : vector<2x128xf32> to vector<2x32xf32>
    %182 = arith.mulf %181, %167 : vector<2x32xf32>
    %183 = vector.extract_strided_slice %178 {offsets = [0, 0], sizes = [2, 32], strides = [1, 1]} : vector<2x128xf32> to vector<2x32xf32>
    %184 = arith.mulf %183, %180 : vector<2x32xf32>
    %185 = arith.addf %182, %184 : vector<2x32xf32>
    %186 = vector.extract_strided_slice %178 {offsets = [0, 96], sizes = [2, 32], strides = [1, 1]} : vector<2x128xf32> to vector<2x32xf32>
    %187 = math.tanh %185 : vector<2x32xf32>
    %188 = arith.mulf %186, %187 : vector<2x32xf32>
    %189 = vector.extract_strided_slice %5 {offsets = [20, 0], sizes = [2, 128], strides = [1, 1]} : vector<32x128xf32> to vector<2x128xf32>
    %cst_29 = arith.constant dense<0.000000e+00> : vector<2x128xf32>
    %190 = tpu.matmul %188, %6, %cst_29 {dimension_numbers = #tpu.dot_dimension_numbers<[1], [0], [0], [1], [0, 0, 1, 1], [], []>} : vector<2x32xf32>, vector<32x128xf32>, vector<2x128xf32> -> vector<2x128xf32>
    %191 = arith.addf %189, %190 : vector<2x128xf32>
    %192 = arith.negf %191 : vector<2x128xf32>
    %193 = math.exp %192 : vector<2x128xf32>
    %cst_30 = arith.constant 1.000000e+00 : f32
    %194 = vector.broadcast %cst_30 : f32 to vector<2x128xf32>
    %195 = arith.addf %194, %193 : vector<2x128xf32>
    %196 = arith.divf %194, %195 : vector<2x128xf32>
    %197 = vector.extract_strided_slice %191 {offsets = [0, 64], sizes = [2, 32], strides = [1, 1]} : vector<2x128xf32> to vector<2x32xf32>
    %198 = math.tanh %197 : vector<2x32xf32>
    %199 = vector.extract_strided_slice %196 {offsets = [0, 32], sizes = [2, 32], strides = [1, 1]} : vector<2x128xf32> to vector<2x32xf32>
    %200 = arith.mulf %199, %185 : vector<2x32xf32>
    %201 = vector.extract_strided_slice %196 {offsets = [0, 0], sizes = [2, 32], strides = [1, 1]} : vector<2x128xf32> to vector<2x32xf32>
    %202 = arith.mulf %201, %198 : vector<2x32xf32>
    %203 = arith.addf %200, %202 : vector<2x32xf32>
    %204 = vector.extract_strided_slice %196 {offsets = [0, 96], sizes = [2, 32], strides = [1, 1]} : vector<2x128xf32> to vector<2x32xf32>
    %205 = math.tanh %203 : vector<2x32xf32>
    %206 = arith.mulf %204, %205 : vector<2x32xf32>
    %207 = vector.extract_strided_slice %5 {offsets = [22, 0], sizes = [2, 128], strides = [1, 1]} : vector<32x128xf32> to vector<2x128xf32>
    %cst_31 = arith.constant dense<0.000000e+00> : vector<2x128xf32>
    %208 = tpu.matmul %206, %6, %cst_31 {dimension_numbers = #tpu.dot_dimension_numbers<[1], [0], [0], [1], [0, 0, 1, 1], [], []>} : vector<2x32xf32>, vector<32x128xf32>, vector<2x128xf32> -> vector<2x128xf32>
    %209 = arith.addf %207, %208 : vector<2x128xf32>
    %210 = arith.negf %209 : vector<2x128xf32>
    %211 = math.exp %210 : vector<2x128xf32>
    %cst_32 = arith.constant 1.000000e+00 : f32
    %212 = vector.broadcast %cst_32 : f32 to vector<2x128xf32>
    %213 = arith.addf %212, %211 : vector<2x128xf32>
    %214 = arith.divf %212, %213 : vector<2x128xf32>
    %215 = vector.extract_strided_slice %209 {offsets = [0, 64], sizes = [2, 32], strides = [1, 1]} : vector<2x128xf32> to vector<2x32xf32>
    %216 = math.tanh %215 : vector<2x32xf32>
    %217 = vector.extract_strided_slice %214 {offsets = [0, 32], sizes = [2, 32], strides = [1, 1]} : vector<2x128xf32> to vector<2x32xf32>
    %218 = arith.mulf %217, %203 : vector<2x32xf32>
    %219 = vector.extract_strided_slice %214 {offsets = [0, 0], sizes = [2, 32], strides = [1, 1]} : vector<2x128xf32> to vector<2x32xf32>
    %220 = arith.mulf %219, %216 : vector<2x32xf32>
    %221 = arith.addf %218, %220 : vector<2x32xf32>
    %222 = vector.extract_strided_slice %214 {offsets = [0, 96], sizes = [2, 32], strides = [1, 1]} : vector<2x128xf32> to vector<2x32xf32>
    %223 = math.tanh %221 : vector<2x32xf32>
    %224 = arith.mulf %222, %223 : vector<2x32xf32>
    %225 = vector.extract_strided_slice %5 {offsets = [24, 0], sizes = [2, 128], strides = [1, 1]} : vector<32x128xf32> to vector<2x128xf32>
    %cst_33 = arith.constant dense<0.000000e+00> : vector<2x128xf32>
    %226 = tpu.matmul %224, %6, %cst_33 {dimension_numbers = #tpu.dot_dimension_numbers<[1], [0], [0], [1], [0, 0, 1, 1], [], []>} : vector<2x32xf32>, vector<32x128xf32>, vector<2x128xf32> -> vector<2x128xf32>
    %227 = arith.addf %225, %226 : vector<2x128xf32>
    %228 = arith.negf %227 : vector<2x128xf32>
    %229 = math.exp %228 : vector<2x128xf32>
    %cst_34 = arith.constant 1.000000e+00 : f32
    %230 = vector.broadcast %cst_34 : f32 to vector<2x128xf32>
    %231 = arith.addf %230, %229 : vector<2x128xf32>
    %232 = arith.divf %230, %231 : vector<2x128xf32>
    %233 = vector.extract_strided_slice %227 {offsets = [0, 64], sizes = [2, 32], strides = [1, 1]} : vector<2x128xf32> to vector<2x32xf32>
    %234 = math.tanh %233 : vector<2x32xf32>
    %235 = vector.extract_strided_slice %232 {offsets = [0, 32], sizes = [2, 32], strides = [1, 1]} : vector<2x128xf32> to vector<2x32xf32>
    %236 = arith.mulf %235, %221 : vector<2x32xf32>
    %237 = vector.extract_strided_slice %232 {offsets = [0, 0], sizes = [2, 32], strides = [1, 1]} : vector<2x128xf32> to vector<2x32xf32>
    %238 = arith.mulf %237, %234 : vector<2x32xf32>
    %239 = arith.addf %236, %238 : vector<2x32xf32>
    %240 = vector.extract_strided_slice %232 {offsets = [0, 96], sizes = [2, 32], strides = [1, 1]} : vector<2x128xf32> to vector<2x32xf32>
    %241 = math.tanh %239 : vector<2x32xf32>
    %242 = arith.mulf %240, %241 : vector<2x32xf32>
    %243 = vector.extract_strided_slice %5 {offsets = [26, 0], sizes = [2, 128], strides = [1, 1]} : vector<32x128xf32> to vector<2x128xf32>
    %cst_35 = arith.constant dense<0.000000e+00> : vector<2x128xf32>
    %244 = tpu.matmul %242, %6, %cst_35 {dimension_numbers = #tpu.dot_dimension_numbers<[1], [0], [0], [1], [0, 0, 1, 1], [], []>} : vector<2x32xf32>, vector<32x128xf32>, vector<2x128xf32> -> vector<2x128xf32>
    %245 = arith.addf %243, %244 : vector<2x128xf32>
    %246 = arith.negf %245 : vector<2x128xf32>
    %247 = math.exp %246 : vector<2x128xf32>
    %cst_36 = arith.constant 1.000000e+00 : f32
    %248 = vector.broadcast %cst_36 : f32 to vector<2x128xf32>
    %249 = arith.addf %248, %247 : vector<2x128xf32>
    %250 = arith.divf %248, %249 : vector<2x128xf32>
    %251 = vector.extract_strided_slice %245 {offsets = [0, 64], sizes = [2, 32], strides = [1, 1]} : vector<2x128xf32> to vector<2x32xf32>
    %252 = math.tanh %251 : vector<2x32xf32>
    %253 = vector.extract_strided_slice %250 {offsets = [0, 32], sizes = [2, 32], strides = [1, 1]} : vector<2x128xf32> to vector<2x32xf32>
    %254 = arith.mulf %253, %239 : vector<2x32xf32>
    %255 = vector.extract_strided_slice %250 {offsets = [0, 0], sizes = [2, 32], strides = [1, 1]} : vector<2x128xf32> to vector<2x32xf32>
    %256 = arith.mulf %255, %252 : vector<2x32xf32>
    %257 = arith.addf %254, %256 : vector<2x32xf32>
    %258 = vector.extract_strided_slice %250 {offsets = [0, 96], sizes = [2, 32], strides = [1, 1]} : vector<2x128xf32> to vector<2x32xf32>
    %259 = math.tanh %257 : vector<2x32xf32>
    %260 = arith.mulf %258, %259 : vector<2x32xf32>
    %261 = vector.extract_strided_slice %5 {offsets = [28, 0], sizes = [2, 128], strides = [1, 1]} : vector<32x128xf32> to vector<2x128xf32>
    %cst_37 = arith.constant dense<0.000000e+00> : vector<2x128xf32>
    %262 = tpu.matmul %260, %6, %cst_37 {dimension_numbers = #tpu.dot_dimension_numbers<[1], [0], [0], [1], [0, 0, 1, 1], [], []>} : vector<2x32xf32>, vector<32x128xf32>, vector<2x128xf32> -> vector<2x128xf32>
    %263 = arith.addf %261, %262 : vector<2x128xf32>
    %264 = arith.negf %263 : vector<2x128xf32>
    %265 = math.exp %264 : vector<2x128xf32>
    %cst_38 = arith.constant 1.000000e+00 : f32
    %266 = vector.broadcast %cst_38 : f32 to vector<2x128xf32>
    %267 = arith.addf %266, %265 : vector<2x128xf32>
    %268 = arith.divf %266, %267 : vector<2x128xf32>
    %269 = vector.extract_strided_slice %263 {offsets = [0, 64], sizes = [2, 32], strides = [1, 1]} : vector<2x128xf32> to vector<2x32xf32>
    %270 = math.tanh %269 : vector<2x32xf32>
    %271 = vector.extract_strided_slice %268 {offsets = [0, 32], sizes = [2, 32], strides = [1, 1]} : vector<2x128xf32> to vector<2x32xf32>
    %272 = arith.mulf %271, %257 : vector<2x32xf32>
    %273 = vector.extract_strided_slice %268 {offsets = [0, 0], sizes = [2, 32], strides = [1, 1]} : vector<2x128xf32> to vector<2x32xf32>
    %274 = arith.mulf %273, %270 : vector<2x32xf32>
    %275 = arith.addf %272, %274 : vector<2x32xf32>
    %276 = vector.extract_strided_slice %268 {offsets = [0, 96], sizes = [2, 32], strides = [1, 1]} : vector<2x128xf32> to vector<2x32xf32>
    %277 = math.tanh %275 : vector<2x32xf32>
    %278 = arith.mulf %276, %277 : vector<2x32xf32>
    %279 = vector.extract_strided_slice %5 {offsets = [30, 0], sizes = [2, 128], strides = [1, 1]} : vector<32x128xf32> to vector<2x128xf32>
    %cst_39 = arith.constant dense<0.000000e+00> : vector<2x128xf32>
    %280 = tpu.matmul %278, %6, %cst_39 {dimension_numbers = #tpu.dot_dimension_numbers<[1], [0], [0], [1], [0, 0, 1, 1], [], []>} : vector<2x32xf32>, vector<32x128xf32>, vector<2x128xf32> -> vector<2x128xf32>
    %281 = arith.addf %279, %280 : vector<2x128xf32>
    %282 = arith.negf %281 : vector<2x128xf32>
    %283 = math.exp %282 : vector<2x128xf32>
    %cst_40 = arith.constant 1.000000e+00 : f32
    %284 = vector.broadcast %cst_40 : f32 to vector<2x128xf32>
    %285 = arith.addf %284, %283 : vector<2x128xf32>
    %286 = arith.divf %284, %285 : vector<2x128xf32>
    %287 = vector.extract_strided_slice %281 {offsets = [0, 64], sizes = [2, 32], strides = [1, 1]} : vector<2x128xf32> to vector<2x32xf32>
    %288 = math.tanh %287 : vector<2x32xf32>
    %289 = vector.extract_strided_slice %286 {offsets = [0, 32], sizes = [2, 32], strides = [1, 1]} : vector<2x128xf32> to vector<2x32xf32>
    %290 = arith.mulf %289, %275 : vector<2x32xf32>
    %291 = vector.extract_strided_slice %286 {offsets = [0, 0], sizes = [2, 32], strides = [1, 1]} : vector<2x128xf32> to vector<2x32xf32>
    %292 = arith.mulf %291, %288 : vector<2x32xf32>
    %293 = arith.addf %290, %292 : vector<2x32xf32>
    %294 = vector.extract_strided_slice %286 {offsets = [0, 96], sizes = [2, 32], strides = [1, 1]} : vector<2x128xf32> to vector<2x32xf32>
    %295 = math.tanh %293 : vector<2x32xf32>
    %296 = arith.mulf %294, %295 : vector<2x32xf32>
    %cst_41 = arith.constant 0.000000e+00 : f32
    %297 = vector.broadcast %cst_41 : f32 to vector<6x4xf32>
    %cst_42 = arith.constant 0.000000e+00 : f32
    %298 = vector.broadcast %cst_42 : f32 to vector<6x4xf32>
    %299 = tpu.concatenate %297, %0, %298 in 0 : vector<6x4xf32>, vector<32x4xf32>, vector<6x4xf32> -> vector<44x4xf32>
    %c0_43 = arith.constant 0 : index
    %c0_44 = arith.constant 0 : index
    %300 = vector.load %arg4[%c0_43, %c0_44] : memref<28x128xf32, #tpu.memory_space<vmem>>, vector<28x128xf32>
    %cst_45 = arith.constant 0.000000e+00 : f32
    %301 = vector.broadcast %cst_45 : f32 to vector<32x128xf32>
    %c0_46 = arith.constant 0 : index
    %c0_47 = arith.constant 0 : index
    %302 = vector.load %arg5[%c0_46, %c0_47] : memref<1x128xf32, #tpu.memory_space<vmem>>, vector<1x128xf32>
    %303 = vector.broadcast %302 : vector<1x128xf32> to vector<32x128xf32>
    %304 = arith.addf %301, %303 : vector<32x128xf32>
    %305 = vector.extract_strided_slice %299 {offsets = [0, 0], sizes = [32, 4], strides = [1, 1]} : vector<44x4xf32> to vector<32x4xf32>
    %306 = vector.extract_strided_slice %300 {offsets = [0, 0], sizes = [4, 128], strides = [1, 1]} : vector<28x128xf32> to vector<4x128xf32>
    %cst_48 = arith.constant dense<0.000000e+00> : vector<32x128xf32>
    %307 = tpu.matmul %305, %306, %cst_48 {dimension_numbers = #tpu.dot_dimension_numbers<[1], [0], [0], [1], [0, 0, 1, 1], [], []>} : vector<32x4xf32>, vector<4x128xf32>, vector<32x128xf32> -> vector<32x128xf32>
    %308 = arith.addf %304, %307 : vector<32x128xf32>
    %309 = vector.extract_strided_slice %299 {offsets = [2, 0], sizes = [32, 4], strides = [1, 1]} : vector<44x4xf32> to vector<32x4xf32>
    %310 = vector.extract_strided_slice %300 {offsets = [4, 0], sizes = [4, 128], strides = [1, 1]} : vector<28x128xf32> to vector<4x128xf32>
    %cst_49 = arith.constant dense<0.000000e+00> : vector<32x128xf32>
    %311 = tpu.matmul %309, %310, %cst_49 {dimension_numbers = #tpu.dot_dimension_numbers<[1], [0], [0], [1], [0, 0, 1, 1], [], []>} : vector<32x4xf32>, vector<4x128xf32>, vector<32x128xf32> -> vector<32x128xf32>
    %312 = arith.addf %308, %311 : vector<32x128xf32>
    %313 = vector.extract_strided_slice %299 {offsets = [4, 0], sizes = [32, 4], strides = [1, 1]} : vector<44x4xf32> to vector<32x4xf32>
    %314 = vector.extract_strided_slice %300 {offsets = [8, 0], sizes = [4, 128], strides = [1, 1]} : vector<28x128xf32> to vector<4x128xf32>
    %cst_50 = arith.constant dense<0.000000e+00> : vector<32x128xf32>
    %315 = tpu.matmul %313, %314, %cst_50 {dimension_numbers = #tpu.dot_dimension_numbers<[1], [0], [0], [1], [0, 0, 1, 1], [], []>} : vector<32x4xf32>, vector<4x128xf32>, vector<32x128xf32> -> vector<32x128xf32>
    %316 = arith.addf %312, %315 : vector<32x128xf32>
    %317 = vector.extract_strided_slice %299 {offsets = [6, 0], sizes = [32, 4], strides = [1, 1]} : vector<44x4xf32> to vector<32x4xf32>
    %318 = vector.extract_strided_slice %300 {offsets = [12, 0], sizes = [4, 128], strides = [1, 1]} : vector<28x128xf32> to vector<4x128xf32>
    %cst_51 = arith.constant dense<0.000000e+00> : vector<32x128xf32>
    %319 = tpu.matmul %317, %318, %cst_51 {dimension_numbers = #tpu.dot_dimension_numbers<[1], [0], [0], [1], [0, 0, 1, 1], [], []>} : vector<32x4xf32>, vector<4x128xf32>, vector<32x128xf32> -> vector<32x128xf32>
    %320 = arith.addf %316, %319 : vector<32x128xf32>
    %321 = vector.extract_strided_slice %299 {offsets = [8, 0], sizes = [32, 4], strides = [1, 1]} : vector<44x4xf32> to vector<32x4xf32>
    %322 = vector.extract_strided_slice %300 {offsets = [16, 0], sizes = [4, 128], strides = [1, 1]} : vector<28x128xf32> to vector<4x128xf32>
    %cst_52 = arith.constant dense<0.000000e+00> : vector<32x128xf32>
    %323 = tpu.matmul %321, %322, %cst_52 {dimension_numbers = #tpu.dot_dimension_numbers<[1], [0], [0], [1], [0, 0, 1, 1], [], []>} : vector<32x4xf32>, vector<4x128xf32>, vector<32x128xf32> -> vector<32x128xf32>
    %324 = arith.addf %320, %323 : vector<32x128xf32>
    %325 = vector.extract_strided_slice %299 {offsets = [10, 0], sizes = [32, 4], strides = [1, 1]} : vector<44x4xf32> to vector<32x4xf32>
    %326 = vector.extract_strided_slice %300 {offsets = [20, 0], sizes = [4, 128], strides = [1, 1]} : vector<28x128xf32> to vector<4x128xf32>
    %cst_53 = arith.constant dense<0.000000e+00> : vector<32x128xf32>
    %327 = tpu.matmul %325, %326, %cst_53 {dimension_numbers = #tpu.dot_dimension_numbers<[1], [0], [0], [1], [0, 0, 1, 1], [], []>} : vector<32x4xf32>, vector<4x128xf32>, vector<32x128xf32> -> vector<32x128xf32>
    %328 = arith.addf %324, %327 : vector<32x128xf32>
    %329 = vector.extract_strided_slice %299 {offsets = [12, 0], sizes = [32, 4], strides = [1, 1]} : vector<44x4xf32> to vector<32x4xf32>
    %330 = vector.extract_strided_slice %300 {offsets = [24, 0], sizes = [4, 128], strides = [1, 1]} : vector<28x128xf32> to vector<4x128xf32>
    %cst_54 = arith.constant dense<0.000000e+00> : vector<32x128xf32>
    %331 = tpu.matmul %329, %330, %cst_54 {dimension_numbers = #tpu.dot_dimension_numbers<[1], [0], [0], [1], [0, 0, 1, 1], [], []>} : vector<32x4xf32>, vector<4x128xf32>, vector<32x128xf32> -> vector<32x128xf32>
    %332 = arith.addf %328, %331 : vector<32x128xf32>
    %cst_55 = arith.constant 0.000000e+00 : f32
    %333 = vector.broadcast %cst_55 : f32 to vector<32x128xf32>
    %334 = arith.maximumf %332, %333 : vector<32x128xf32>
    %cst_56 = arith.constant 0.000000e+00 : f32
    %335 = vector.broadcast %cst_56 : f32 to vector<4x128xf32>
    %cst_57 = arith.constant 0.000000e+00 : f32
    %336 = vector.broadcast %cst_57 : f32 to vector<4x128xf32>
    %337 = tpu.concatenate %335, %334, %336 in 0 : vector<4x128xf32>, vector<32x128xf32>, vector<4x128xf32> -> vector<40x128xf32>
    %338 = vector.extract_strided_slice %337 {offsets = [0, 0], sizes = [32, 128], strides = [1, 1]} : vector<40x128xf32> to vector<32x128xf32>
    %339 = vector.extract_strided_slice %337 {offsets = [2, 0], sizes = [32, 128], strides = [1, 1]} : vector<40x128xf32> to vector<32x128xf32>
    %340 = vector.extract_strided_slice %337 {offsets = [4, 0], sizes = [32, 128], strides = [1, 1]} : vector<40x128xf32> to vector<32x128xf32>
    %341 = vector.extract_strided_slice %337 {offsets = [6, 0], sizes = [32, 128], strides = [1, 1]} : vector<40x128xf32> to vector<32x128xf32>
    %342 = vector.extract_strided_slice %337 {offsets = [8, 0], sizes = [32, 128], strides = [1, 1]} : vector<40x128xf32> to vector<32x128xf32>
    %343 = tpu.concatenate %338, %339, %340, %341, %342 in 1 : vector<32x128xf32>, vector<32x128xf32>, vector<32x128xf32>, vector<32x128xf32>, vector<32x128xf32> -> vector<32x640xf32>
    %c0_58 = arith.constant 0 : index
    %c0_59 = arith.constant 0 : index
    %344 = vector.load %arg6[%c0_58, %c0_59] : memref<640x256xf32, #tpu.memory_space<vmem>>, vector<640x256xf32>
    %cst_60 = arith.constant dense<0.000000e+00> : vector<32x256xf32>
    %345 = tpu.matmul %343, %344, %cst_60 {dimension_numbers = #tpu.dot_dimension_numbers<[1], [0], [0], [1], [0, 0, 1, 1], [], []>} : vector<32x640xf32>, vector<640x256xf32>, vector<32x256xf32> -> vector<32x256xf32>
    %c0_61 = arith.constant 0 : index
    %c0_62 = arith.constant 0 : index
    %346 = vector.load %arg7[%c0_61, %c0_62] : memref<1x256xf32, #tpu.memory_space<vmem>>, vector<1x256xf32>
    %347 = vector.broadcast %346 : vector<1x256xf32> to vector<32x256xf32>
    %348 = arith.addf %345, %347 : vector<32x256xf32>
    %cst_63 = arith.constant 0.000000e+00 : f32
    %349 = vector.broadcast %cst_63 : f32 to vector<32x256xf32>
    %350 = arith.maximumf %348, %349 : vector<32x256xf32>
    %cst_64 = arith.constant 0.000000e+00 : f32
    %351 = vector.broadcast %cst_64 : f32 to vector<2x256xf32>
    %cst_65 = arith.constant 0.000000e+00 : f32
    %352 = vector.broadcast %cst_65 : f32 to vector<2x256xf32>
    %353 = tpu.concatenate %351, %350, %352 in 0 : vector<2x256xf32>, vector<32x256xf32>, vector<2x256xf32> -> vector<36x256xf32>
    %354 = vector.extract_strided_slice %353 {offsets = [0, 0], sizes = [32, 256], strides = [1, 1]} : vector<36x256xf32> to vector<32x256xf32>
    %355 = vector.extract_strided_slice %353 {offsets = [2, 0], sizes = [32, 256], strides = [1, 1]} : vector<36x256xf32> to vector<32x256xf32>
    %356 = vector.extract_strided_slice %353 {offsets = [4, 0], sizes = [32, 256], strides = [1, 1]} : vector<36x256xf32> to vector<32x256xf32>
    %357 = tpu.concatenate %354, %355, %356 in 1 : vector<32x256xf32>, vector<32x256xf32>, vector<32x256xf32> -> vector<32x768xf32>
    %c0_66 = arith.constant 0 : index
    %c0_67 = arith.constant 0 : index
    %358 = vector.load %arg8[%c0_66, %c0_67] : memref<768x128xf32, #tpu.memory_space<vmem>>, vector<768x128xf32>
    %cst_68 = arith.constant dense<0.000000e+00> : vector<32x128xf32>
    %359 = tpu.matmul %357, %358, %cst_68 {dimension_numbers = #tpu.dot_dimension_numbers<[1], [0], [0], [1], [0, 0, 1, 1], [], []>} : vector<32x768xf32>, vector<768x128xf32>, vector<32x128xf32> -> vector<32x128xf32>
    %c0_69 = arith.constant 0 : index
    %c0_70 = arith.constant 0 : index
    %360 = vector.load %arg9[%c0_69, %c0_70] : memref<1x128xf32, #tpu.memory_space<vmem>>, vector<1x128xf32>
    %361 = vector.broadcast %360 : vector<1x128xf32> to vector<32x128xf32>
    %362 = arith.addf %359, %361 : vector<32x128xf32>
    %cst_71 = arith.constant 0.000000e+00 : f32
    %363 = vector.broadcast %cst_71 : f32 to vector<32x128xf32>
    %364 = arith.maximumf %362, %363 : vector<32x128xf32>
    %cst_72 = arith.constant 0.000000e+00 : f32
    %365 = vector.broadcast %cst_72 : f32 to vector<2x128xf32>
    %366 = vector.extract_strided_slice %364 {offsets = [0, 0], sizes = [2, 128], strides = [1, 1]} : vector<32x128xf32> to vector<2x128xf32>
    %367 = arith.addf %365, %366 : vector<2x128xf32>
    %368 = vector.extract_strided_slice %364 {offsets = [2, 0], sizes = [2, 128], strides = [1, 1]} : vector<32x128xf32> to vector<2x128xf32>
    %369 = arith.addf %367, %368 : vector<2x128xf32>
    %370 = vector.extract_strided_slice %364 {offsets = [4, 0], sizes = [2, 128], strides = [1, 1]} : vector<32x128xf32> to vector<2x128xf32>
    %371 = arith.addf %369, %370 : vector<2x128xf32>
    %372 = vector.extract_strided_slice %364 {offsets = [6, 0], sizes = [2, 128], strides = [1, 1]} : vector<32x128xf32> to vector<2x128xf32>
    %373 = arith.addf %371, %372 : vector<2x128xf32>
    %374 = vector.extract_strided_slice %364 {offsets = [8, 0], sizes = [2, 128], strides = [1, 1]} : vector<32x128xf32> to vector<2x128xf32>
    %375 = arith.addf %373, %374 : vector<2x128xf32>
    %376 = vector.extract_strided_slice %364 {offsets = [10, 0], sizes = [2, 128], strides = [1, 1]} : vector<32x128xf32> to vector<2x128xf32>
    %377 = arith.addf %375, %376 : vector<2x128xf32>
    %378 = vector.extract_strided_slice %364 {offsets = [12, 0], sizes = [2, 128], strides = [1, 1]} : vector<32x128xf32> to vector<2x128xf32>
    %379 = arith.addf %377, %378 : vector<2x128xf32>
    %380 = vector.extract_strided_slice %364 {offsets = [14, 0], sizes = [2, 128], strides = [1, 1]} : vector<32x128xf32> to vector<2x128xf32>
    %381 = arith.addf %379, %380 : vector<2x128xf32>
    %382 = vector.extract_strided_slice %364 {offsets = [16, 0], sizes = [2, 128], strides = [1, 1]} : vector<32x128xf32> to vector<2x128xf32>
    %383 = arith.addf %381, %382 : vector<2x128xf32>
    %384 = vector.extract_strided_slice %364 {offsets = [18, 0], sizes = [2, 128], strides = [1, 1]} : vector<32x128xf32> to vector<2x128xf32>
    %385 = arith.addf %383, %384 : vector<2x128xf32>
    %386 = vector.extract_strided_slice %364 {offsets = [20, 0], sizes = [2, 128], strides = [1, 1]} : vector<32x128xf32> to vector<2x128xf32>
    %387 = arith.addf %385, %386 : vector<2x128xf32>
    %388 = vector.extract_strided_slice %364 {offsets = [22, 0], sizes = [2, 128], strides = [1, 1]} : vector<32x128xf32> to vector<2x128xf32>
    %389 = arith.addf %387, %388 : vector<2x128xf32>
    %390 = vector.extract_strided_slice %364 {offsets = [24, 0], sizes = [2, 128], strides = [1, 1]} : vector<32x128xf32> to vector<2x128xf32>
    %391 = arith.addf %389, %390 : vector<2x128xf32>
    %392 = vector.extract_strided_slice %364 {offsets = [26, 0], sizes = [2, 128], strides = [1, 1]} : vector<32x128xf32> to vector<2x128xf32>
    %393 = arith.addf %391, %392 : vector<2x128xf32>
    %394 = vector.extract_strided_slice %364 {offsets = [28, 0], sizes = [2, 128], strides = [1, 1]} : vector<32x128xf32> to vector<2x128xf32>
    %395 = arith.addf %393, %394 : vector<2x128xf32>
    %396 = vector.extract_strided_slice %364 {offsets = [30, 0], sizes = [2, 128], strides = [1, 1]} : vector<32x128xf32> to vector<2x128xf32>
    %397 = arith.addf %395, %396 : vector<2x128xf32>
    %cst_73 = arith.constant 6.250000e-02 : f32
    %398 = vector.broadcast %cst_73 : f32 to vector<2x128xf32>
    %399 = arith.mulf %397, %398 : vector<2x128xf32>
    %c0_74 = arith.constant 0 : index
    %c0_75 = arith.constant 0 : index
    %400 = vector.load %arg10[%c0_74, %c0_75] : memref<32x128xf32, #tpu.memory_space<vmem>>, vector<32x128xf32>
    %cst_76 = arith.constant dense<0.000000e+00> : vector<2x128xf32>
    %401 = tpu.matmul %296, %400, %cst_76 {dimension_numbers = #tpu.dot_dimension_numbers<[1], [0], [0], [1], [0, 0, 1, 1], [], []>} : vector<2x32xf32>, vector<32x128xf32>, vector<2x128xf32> -> vector<2x128xf32>
    %c0_77 = arith.constant 0 : index
    %c0_78 = arith.constant 0 : index
    %402 = vector.load %arg11[%c0_77, %c0_78] : memref<128x128xf32, #tpu.memory_space<vmem>>, vector<128x128xf32>
    %cst_79 = arith.constant dense<0.000000e+00> : vector<2x128xf32>
    %403 = tpu.matmul %399, %402, %cst_79 {dimension_numbers = #tpu.dot_dimension_numbers<[1], [0], [0], [1], [0, 0, 1, 1], [], []>} : vector<2x128xf32>, vector<128x128xf32>, vector<2x128xf32> -> vector<2x128xf32>
    %404 = arith.addf %401, %403 : vector<2x128xf32>
    %c0_80 = arith.constant 0 : index
    %c0_81 = arith.constant 0 : index
    %405 = vector.load %arg12[%c0_80, %c0_81] : memref<1x128xf32, #tpu.memory_space<vmem>>, vector<1x128xf32>
    %406 = vector.broadcast %405 : vector<1x128xf32> to vector<2x128xf32>
    %407 = arith.addf %404, %406 : vector<2x128xf32>
    %cst_82 = arith.constant 1.000000e+00 : f32
    %408 = vector.broadcast %cst_82 : f32 to vector<2x128xf32>
    %409 = arith.mulf %407, %408 : vector<2x128xf32>
    %cst_83 = arith.constant dense<0xFF800000> : vector<2xf32>
    %410 = vector.multi_reduction <maximumf>, %409, %cst_83 [1] : vector<2x128xf32> to vector<2xf32>
    %411 = vector.shape_cast %410 : vector<2xf32> to vector<2x1xf32>
    %412 = vector.broadcast %411 : vector<2x1xf32> to vector<2x128xf32>
    %413 = arith.subf %409, %412 : vector<2x128xf32>
    %414 = math.exp %413 : vector<2x128xf32>
    %cst_84 = arith.constant dense<0.000000e+00> : vector<2xf32>
    %415 = vector.multi_reduction <add>, %414, %cst_84 [1] : vector<2x128xf32> to vector<2xf32>
    %416 = vector.shape_cast %415 : vector<2xf32> to vector<2x1xf32>
    %417 = tpu.reciprocal %416 : vector<2x1xf32> -> vector<2x1xf32>
    %418 = vector.broadcast %417 : vector<2x1xf32> to vector<2x128xf32>
    %419 = arith.mulf %414, %418 : vector<2x128xf32>
    %c0_85 = arith.constant 0 : index
    %c0_86 = arith.constant 0 : index
    %420 = vector.load %arg13[%c0_85, %c0_86] : memref<2x128xf32, #tpu.memory_space<vmem>>, vector<2x128xf32>
    tpu.vector_store %arg13[%c0_85, %c0_86], %419 {strides = array<i32>} : memref<2x128xf32, #tpu.memory_space<vmem>>, vector<2x128xf32>,
    return
  }
}

</mosaic_0001>

<bundles_post_ra>
// kernel: lstm_fcn_forward.1
= control target key start
LH: loop header
LB: loop body
LE: loop exit
PB: predicated region body
PF: predicated region fallthrough
CT: control target
= control target key end

     0   :  { %18 = vsyncpa [#allocation3], 0  ;;  %s5521_s0 = inlined_call_operand.vmem [shape: f32[32,4], index: 0, kind: input, shape index: {}]   ;;  %s5522_s1 = inlined_call_operand.vmem [shape: f32[4,128], index: 1, kind: input, shape index: {}]   ;;  %s5523_s2 = inlined_call_operand.vmem [shape: f32[32,128], index: 2, kind: input, shape index: {}]   ;;  %s5524_s3 = inlined_call_operand.vmem [shape: f32[1,128], index: 3, kind: input, shape index: {}]   ;;  %s5525_s4 = inlined_call_operand.vmem [shape: f32[28,128], index: 4, kind: input, shape index: {}]   ;;  %s5526_s5 = inlined_call_operand.vmem [shape: f32[1,128], index: 5, kind: input, shape index: {}]   ;;  %s5527_s6 = inlined_call_operand.hbm [shape: f32[640,256], index: 6, kind: input, shape index: {}]   ;;  %s5528_s7 = inlined_call_operand.vmem [shape: f32[1,256], index: 7, kind: input, shape index: {}]   ;;  %s5529_s8 = inlined_call_operand.hbm [shape: f32[768,128], index: 8, kind: input, shape index: {}]   ;;  %s5530_s9 = inlined_call_operand.vmem [shape: f32[1,128], index: 9, kind: input, shape index: {}]   ;;  %s5531_s10 = inlined_call_operand.vmem [shape: f32[32,128], index: 10, kind: input, shape index: {}]   ;;  %s5532_s11 = inlined_call_operand.vmem [shape: f32[128,128], index: 11, kind: input, shape index: {}]   ;;  %s5533_s12 = inlined_call_operand.vmem [shape: f32[1,128], index: 12, kind: input, shape index: {}]   ;;  %s5534_s13 = inlined_call_operand.hbm [shape: f32[2,128], index: 13, kind: output, shape index: {}]  }
   0x1   :  { %19 = vsyncpa [#allocation6], 0 }
   0x2   :  { %20 = vsyncpa [#allocation4], 0  ;;  %s4695_s25 = smov [#allocation2]  }
   0x3   :  { %s38_s26 = sshll.u32 %s4695_s25, 4  ;;  %s39_s26 = int_to_ptr.vmem [resolvable:$true] %s38_s26 }
   0x4   :  { %s4637_s27 = scalar_lea.vmem %s39_s26, 20480  ;;  %p4642_p1 = scmp.lt.s32.totalorder %s39_s26, %s39_s26 }
   0x5   :  { %p4638_p0 = scmp.ne.s32.totalorder %s39_s26, %s4637_s27  ;;  %p4643_p2 = scmp.lt.s32.totalorder %s4637_s27, %s4637_s27 }
   0x7   :  { %p4644_p3 = por %p4643_p2, %p4642_p1 }
   0x9   :  { %p4645_p4 = pnand %p4644_p3, %p4638_p0 }
   0xb   :  { %4648 = shalt.err (!%p4645_p4)
}
   0xc   :  { %s4696_s28 = smov 256   ;;  %s4697_s29 = smov 16  }
   0xd   :  { %44 = dma.hbm_to_vmem [thread:$0]  %s5527_s6, 20480, %s39_s26, [#allocation3], %s4696_s28, %s4696_s28, %s4697_s29  }
   0xe   :  { %s4698_s15 = smov [#allocation5]  }
   0xf   :  { %s52_s16 = sshll.u32 %s4698_s15, 4  ;;  %s53_s16 = int_to_ptr.vmem [resolvable:$true] %s52_s16 }
  0x10   :  { %s4657_s17 = scalar_lea.vmem %s53_s16, 12288  ;;  %p4662_p6 = scmp.lt.s32.totalorder %s53_s16, %s53_s16 }
  0x11   :  { %p4658_p5 = scmp.ne.s32.totalorder %s53_s16, %s4657_s17  ;;  %p4663_p7 = scmp.lt.s32.totalorder %s4657_s17, %s4657_s17 }
  0x13   :  { %p4664_p8 = por %p4663_p7, %p4662_p6 }
  0x15   :  { %p4665_p9 = pnand %p4664_p8, %p4658_p5 }
  0x17   :  { %4668 = shalt.err (!%p4665_p9)
}
  0x18   :  { %s4699_s18 = smov 128   ;;  %s4700_s19 = smov 8  }
  0x19   :  { %58 = dma.hbm_to_vmem [thread:$0]  %s5529_s8, 12288, %s53_s16, [#allocation6], %s4699_s18, %s4699_s18, %s4700_s19  }
  0x1a   :  { %4689 = dma.done.wait [#allocation3], 20480  }
  0x1b   :  { %4690 = vsyncadd [#allocation3], 4294946816 }
  0x1c   :  { %4691 = dma.done.wait [#allocation6], 12288  }
  0x1d   :  { %4692 = vsyncadd [#allocation6], 4294955008  ;;  %v4701_v0 = vmov 0.0   ;;  %vm4702_vm0 = vmmov 0   ;;  %vm98_vm1 = vcmask 1043456   ;;  %vm85_vm2 = vcmask 31744  }
  0x1e   :  { %4198 = vmatprep.subr.mxu1 %v4701_v0  ;;  %4206 = vmatprep.mubr.msk.f32.mxu1 %vm4702_vm0, %v4701_v0  ;;  %v77_v1 = vld [vmem:[%s5522_s1] sm:$0xf]  ;;  %v4791_v2 = vld [vmem:[%s5523_s2 + $0x18] sm:$0xff]  ;;  %v74_v4 = vld [vmem:[%s5521_s0 + $0x8] sm:$0xff]  ;;  %s4703_s18 = smov 64   ;;  %vm191_vm3 = vcmask 261120  }
  0x1f   :  { %v73_v3 = vld [vmem:[%s5521_s0] sm:$0xff]  ;;  %4190 = vmatprep.subr.msk.mxu0 %vm98_vm1, %v77_v1  ;;  %4199 = vmatpush3.msra.mxu1 %v4791_v2  ;;  %v4804_v5 = vld [vmem:[%s5523_s2 + $0x10] sm:$0xff]  ;;  %v4813_v6 = vld [vmem:[%s5523_s2 + $0x8] sm:$0xff]  ;;  %vm1882_vm4 = vcmask 1045504   ;;  %vm2226_vm5 = vcmask 1041408   ;;  %s4705_s20 = smov [#allocation7]  }
  0x20   :  { %4191 = vmatpush3.msk.msra.mxu0 %vm98_vm1, %v77_v1  ;;  %4192 = vmatprep.mubr.msk.f32.mxu0 %vm85_vm2, %v73_v3  ;;  %v4821_v7 = vld [vmem:[%s5523_s2] sm:$0xff]  ;;  %v75_v25 = vld [vmem:[%s5521_s0 + $0x10] sm:$0xff]  ;;  %v76_v26 = vld [vmem:[%s5521_s0 + $0x18] sm:$0xff] }
  0x21   :  { %4200 = vmatprep.subr.mxu1 %v4701_v0  ;;  %4193 = vmatmul.mubr.msk.f32.vlgmr.msra.gmra.mxu0 %vm85_vm2, %v74_v4  ;;  %v4851_v9 = vld [vmem:[%s5524_s3] ss:$0 sm:$0xff]  ;;  %s4704_s3 = smov 32   ;;  %vm3906_vm6 = vmneg %vm98_vm1 }
  0x22   :  { %4201 = vmatpush3.msra.mxu1 %v4804_v5  ;;  %4209 = vmatprep.subr.mxu0 %v4701_v0  ;;  %vm5339_vm7 = vmneg %vm2226_vm5 }
  0x23   :  { %4202 = vmatprep.subr.mxu1 %v4701_v0  ;;  %4210 = vmatpush3.msra.mxu0 %v4791_v2 }
  0x24   :  { %4203 = vmatpush3.msra.mxu1 %v4813_v6  ;;  %4211 = vmatprep.subr.mxu0 %v4701_v0 }
  0x25   :  { %4204 = vmatprep.subr.mxu1 %v4701_v0  ;;  %4212 = vmatpush3.msra.mxu0 %v4804_v5 }
  0x26   :  { %4205 = vmatpush3.msra.mxu1 %v4821_v7  ;;  %4213 = vmatprep.subr.mxu0 %v4701_v0 }
  0x27   :  { %4207 = vmatmul.mubr.f32.vlgmr.msra.gmra.mxu1 %v4701_v0  ;;  %4214 = vmatpush3.msra.mxu0 %v4813_v6 }
  0x28   :  { %4215 = vmatprep.subr.mxu0 %v4701_v0  ;;  %4220 = vmatprep.subr.mxu1 %v4701_v0 }
  0x29   :  { %4216 = vmatpush3.msra.mxu0 %v4821_v7  ;;  %4221 = vmatpush3.msra.mxu1 %v4791_v2 }
  0x2a   :  { %4222 = vmatprep.subr.mxu1 %v4701_v0  ;;  %4228 = vmatprep.mubr.msk.f32.mxu1 %vm4702_vm0, %v4701_v0 }
  0x2b   :  { %4223 = vmatpush3.msra.mxu1 %v4804_v5  ;;  %4231 = vmatprep.subr.mxu0 %v4701_v0 }
  0x2c   :  { %4224 = vmatprep.subr.mxu1 %v4701_v0  ;;  %4195 = vmatprep.mubr.msk.f32.mxu0 %vm85_vm2, %v75_v25 }
  0x2d   :  { %4225 = vmatpush3.msra.mxu1 %v4813_v6  ;;  %4196 = vmatmul.mubr.msk.f32.gmra.mxu0 %vm85_vm2, %v76_v26 }
  0x2e   :  { %4226 = vmatprep.subr.mxu1 %v4701_v0  ;;  %4217 = vmatprep.mubr.msk.f32.mxu0 %vm4702_vm0, %v4701_v0 }
  0x2f   :  { %4227 = vmatpush3.msra.mxu1 %v4821_v7 }
  0x30   :  { %4242 = vmatprep.subr.mxu1 %v4701_v0 }
  0xe1   :  { %v4846_v8 = vpop.f32.mrf.mxu0 }
  0xe3   :  { %v168_v10 = vpop.f32.mrf.mxu0 }
  0xe4   :  { %v4854_v11 = vadd.f32 %v4851_v9, %v168_v10 }
  0xe7   :  { %v261_v12 = vpop.f32.mrf.mxu1 }
  0xe8   :  { %v265_v13 = vadd.f32 %v261_v12, %v4854_v11 }
  0xe9   :  { %v4208_v14 = vpop.f32.mrf.mxu1 }
  0xea   :  { %4489 = vtanh.f32 %v265_v13  ;;  %v3839_v16 = vmul.f32 -1.442695, %v265_v13 }
  0xec   :  { %4491 = vpow2.f32 %v3839_v16 }
  0xed   :  { %v4882_v31 = vpop.f32.mrf.mxu0 }
  0xef   :  { %v4884_v32 = vpop.f32.mrf.mxu0 }
  0xf7   :  { %v4490_v15 = vpop.eup %4489 }
  0xf8   :  { %275 = vrot.lane.b32.xlu0 %v4490_v15, %s4703_s18 }
  0xf9   :  { %v4492_v17 = vpop.eup %4491 }
  0xfa   :  { %v269_v18 = vadd.f32 1.0, %v4492_v17 }
  0xfc   :  { %4493 = vrcp.f32 %v269_v18 }
 0x109   :  { %v4494_v19 = vpop.eup %4493 }
 0x10a   :  { %v273_v22 = vmul.f32 0.0, %v4494_v19 }
 0x16a   :  { %v276_v20 = vpop.permute.xlu0 %275 }
 0x16b   :  { %v278_v21 = vmul.f32 %v4494_v19, %v276_v20 }
 0x16d   :  { %280 = vrot.lane.b32.xlu0 %v278_v21, %s4704_s3 }
 0x1df   :  { %v281_v23 = vpop.permute.xlu0 %280 }
 0x1e0   :  { %v283_v24 = vadd.f32 %v281_v23, %v273_v22 }
 0x1e2   :  { %4495 = vtanh.f32 %v283_v24  ;;  %v377_v44 = vrot.slane %v283_v24, 6 }
 0x1ef   :  { %v4496_v27 = vpop.eup %4495 }
 0x1f0   :  { %286 = vrot.lane.b32.xlu1 %v4496_v27, %s4703_s18 }
 0x262   :  { %v287_v28 = vpop.permute.xlu1 %286 }
 0x263   :  { %v289_v29 = vmul.f32 %v4494_v19, %v287_v28 }
 0x265   :  { %291 = vrot.lane.b32.xlu1 %v289_v29, %s4704_s3 }
 0x2d7   :  { %v292_v30 = vpop.permute.xlu1 %291 }
 0x2d8   :  { %4218 = vmatmul.mubr.msk.f32.vlgmr.msra.gmra.mxu0 %vm191_vm3, %v292_v30 }
 0x2d9   :  { %4232 = vmatpush3.msra.mxu0 %v4791_v2  ;;  %4239 = vmatprep.mubr.msk.f32.mxu0 %vm4702_vm0, %v4701_v0 }
 0x2da   :  { %4233 = vmatprep.subr.mxu0 %v4701_v0 }
 0x2db   :  { %4234 = vmatpush3.msra.mxu0 %v4804_v5 }
 0x2dc   :  { %4235 = vmatprep.subr.mxu0 %v4701_v0 }
 0x2dd   :  { %4236 = vmatpush3.msra.mxu0 %v4813_v6 }
 0x2de   :  { %4237 = vmatprep.subr.mxu0 %v4701_v0 }
 0x2df   :  { %4238 = vmatpush3.msra.mxu0 %v4821_v7 }
 0x2e0   :  { %4253 = vmatprep.subr.mxu0 %v4701_v0 }
 0x398   :  { %v361_v33 = vpop.f32.mrf.mxu0 }
 0x399   :  { %v366_v34 = vrot.slane %v361_v33, 6 }
 0x39a   :  { %v4219_v35 = vpop.f32.mrf.mxu0 }
 0x39b   :  { %v368_v36 = vadd.f32 %v366_v34, %v4854_v11 }
 0x39d   :  { %4497 = vtanh.f32 %v368_v36  ;;  %v3841_v38 = vmul.f32 -1.442695, %v368_v36 }
 0x39f   :  { %4499 = vpow2.f32 %v3841_v38  ;;  %v4936_v38 = vadd.f32 %v4846_v8, %v4851_v9 }
 0x3aa   :  { %v4498_v37 = vpop.eup %4497 }
 0x3ab   :  { %381 = vrot.lane.b32.xlu0 %v4498_v37, %s4703_s18 }
 0x3ac   :  { %v4500_v39 = vpop.eup %4499 }
 0x3ad   :  { %v372_v40 = vadd.f32 1.0, %v4500_v39 }
 0x3af   :  { %4501 = vrcp.f32 %v372_v40 }
 0x3bc   :  { %v4502_v41 = vpop.eup %4501 }
 0x3bd   :  { %v379_v45 = vmul.f32 %v4502_v41, %v377_v44 }
 0x41d   :  { %v382_v42 = vpop.permute.xlu0 %381 }
 0x41e   :  { %v384_v43 = vmul.f32 %v4502_v41, %v382_v42 }
 0x420   :  { %386 = vrot.lane.b32.xlu1 %v384_v43, %s4704_s3 }
 0x492   :  { %v387_v46 = vpop.permute.xlu1 %386 }
 0x493   :  { %v389_v47 = vadd.f32 %v387_v46, %v379_v45 }
 0x495   :  { %4503 = vtanh.f32 %v389_v47  ;;  %v484_v1 = vrot.slane %v389_v47, 6 }
 0x4a2   :  { %v4504_v48 = vpop.eup %4503 }
 0x4a3   :  { %392 = vrot.lane.b32.xlu0 %v4504_v48, %s4703_s18 }
 0x515   :  { %v393_v49 = vpop.permute.xlu0 %392 }
 0x516   :  { %v395_v50 = vmul.f32 %v4502_v41, %v393_v49 }
 0x518   :  { %v397_v51 = vrot.slane %v395_v50, 2 }
 0x51a   :  { %398 = vrot.lane.b32.xlu1 %v397_v51, %s4704_s3 }
 0x58c   :  { %v399_v52 = vpop.permute.xlu1 %398 }
 0x58d   :  { %4229 = vmatmul.mubr.msk.f32.vlgmr.msra.gmra.mxu1 %vm191_vm3, %v399_v52 }
 0x58e   :  { %4243 = vmatpush3.msra.mxu1 %v4791_v2  ;;  %4250 = vmatprep.mubr.msk.f32.mxu1 %vm4702_vm0, %v4701_v0 }
 0x58f   :  { %4244 = vmatprep.subr.mxu1 %v4701_v0 }
 0x590   :  { %4245 = vmatpush3.msra.mxu1 %v4804_v5 }
 0x591   :  { %4246 = vmatprep.subr.mxu1 %v4701_v0 }
 0x592   :  { %4247 = vmatpush3.msra.mxu1 %v4813_v6 }
 0x593   :  { %4248 = vmatprep.subr.mxu1 %v4701_v0 }
 0x594   :  { %4249 = vmatpush3.msra.mxu1 %v4821_v7 }
 0x595   :  { %4264 = vmatprep.subr.mxu1 %v4701_v0 }
 0x64d   :  { %v468_v53 = vpop.f32.mrf.mxu1 }
 0x64e   :  { %v473_v54 = vrot.slane %v468_v53, 4 }
 0x64f   :  { %v4230_v55 = vpop.f32.mrf.mxu1 }
 0x650   :  { %v475_v56 = vadd.f32 %v473_v54, %v4854_v11 }
 0x652   :  { %4505 = vtanh.f32 %v475_v56  ;;  %v3843_v58 = vmul.f32 -1.442695, %v475_v56 }
 0x654   :  { %4507 = vpow2.f32 %v3843_v58 }
 0x65f   :  { %v4506_v57 = vpop.eup %4505 }
 0x660   :  { %488 = vrot.lane.b32.xlu0 %v4506_v57, %s4703_s18 }
 0x661   :  { %v4508_v59 = vpop.eup %4507 }
 0x662   :  { %v479_v60 = vadd.f32 1.0, %v4508_v59 }
 0x664   :  { %4509 = vrcp.f32 %v479_v60 }
 0x671   :  { %v4510_v61 = vpop.eup %4509 }
 0x672   :  { %v486_v3 = vmul.f32 %v4510_v61, %v484_v1 }
 0x6d2   :  { %v489_v62 = vpop.permute.xlu0 %488 }
 0x6d3   :  { %v491_v63 = vmul.f32 %v4510_v61, %v489_v62 }
 0x6d5   :  { %493 = vrot.lane.b32.xlu1 %v491_v63, %s4704_s3 }
 0x747   :  { %v494_v4 = vpop.permute.xlu1 %493 }
 0x748   :  { %v496_v10 = vadd.f32 %v494_v4, %v486_v3 }
 0x74a   :  { %4511 = vtanh.f32 %v496_v10  ;;  %v591_v28 = vrot.slane %v496_v10, 6 }
 0x757   :  { %v4512_v12 = vpop.eup %4511 }
 0x758   :  { %499 = vrot.lane.b32.xlu0 %v4512_v12, %s4703_s18 }
 0x7ca   :  { %v500_v13 = vpop.permute.xlu0 %499 }
 0x7cb   :  { %v502_v14 = vmul.f32 %v4510_v61, %v500_v13 }
 0x7cd   :  { %v504_v15 = vrot.slane %v502_v14, 4 }
 0x7cf   :  { %505 = vrot.lane.b32.xlu1 %v504_v15, %s4704_s3 }
 0x841   :  { %v506_v16 = vpop.permute.xlu1 %505 }
 0x842   :  { %4240 = vmatmul.mubr.msk.f32.vlgmr.msra.gmra.mxu0 %vm191_vm3, %v506_v16 }
 0x843   :  { %4254 = vmatpush3.msra.mxu0 %v4791_v2  ;;  %4261 = vmatprep.mubr.msk.f32.mxu0 %vm4702_vm0, %v4701_v0 }
 0x844   :  { %4255 = vmatprep.subr.mxu0 %v4701_v0 }
 0x845   :  { %4256 = vmatpush3.msra.mxu0 %v4804_v5 }
 0x846   :  { %4257 = vmatprep.subr.mxu0 %v4701_v0 }
 0x847   :  { %4258 = vmatpush3.msra.mxu0 %v4813_v6 }
 0x848   :  { %4259 = vmatprep.subr.mxu0 %v4701_v0 }
 0x849   :  { %4260 = vmatpush3.msra.mxu0 %v4821_v7 }
 0x84a   :  { %4275 = vmatprep.subr.mxu0 %v4701_v0 }
 0x902   :  { %v575_v17 = vpop.f32.mrf.mxu0 }
 0x903   :  { %v580_v18 = vrot.slane %v575_v17, 2 }
 0x904   :  { %v4241_v19 = vpop.f32.mrf.mxu0 }
 0x905   :  { %v582_v20 = vadd.f32 %v580_v18, %v4854_v11 }
 0x907   :  { %4513 = vtanh.f32 %v582_v20  ;;  %v3845_v22 = vmul.f32 -1.442695, %v582_v20 }
 0x909   :  { %4515 = vpow2.f32 %v3845_v22 }
 0x914   :  { %v4514_v21 = vpop.eup %4513 }
 0x915   :  { %595 = vrot.lane.b32.xlu0 %v4514_v21, %s4703_s18 }
 0x916   :  { %v4516_v23 = vpop.eup %4515 }
 0x917   :  { %v586_v24 = vadd.f32 1.0, %v4516_v23 }
 0x919   :  { %4517 = vrcp.f32 %v586_v24 }
 0x926   :  { %v4518_v25 = vpop.eup %4517 }
 0x927   :  { %v593_v29 = vmul.f32 %v4518_v25, %v591_v28 }
 0x987   :  { %v596_v26 = vpop.permute.xlu0 %595 }
 0x988   :  { %v598_v27 = vmul.f32 %v4518_v25, %v596_v26 }
 0x98a   :  { %600 = vrot.lane.b32.xlu1 %v598_v27, %s4704_s3 }
 0x9fc   :  { %v601_v30 = vpop.permute.xlu1 %600 }
 0x9fd   :  { %v603_v33 = vadd.f32 %v601_v30, %v593_v29 }
 0x9ff   :  { %4519 = vtanh.f32 %v603_v33  ;;  %v695_v8 = vrot.slane %v603_v33, 6 }
 0xa0c   :  { %v4520_v11 = vpop.eup %4519 }
 0xa0d   :  { %606 = vrot.lane.b32.xlu0 %v4520_v11, %s4703_s18 }
 0xa7f   :  { %v607_v34 = vpop.permute.xlu0 %606 }
 0xa80   :  { %v609_v35 = vmul.f32 %v4518_v25, %v607_v34 }
 0xa82   :  { %v611_v36 = vrot.slane %v609_v35, 6 }
 0xa84   :  { %612 = vrot.lane.b32.xlu1 %v611_v36, %s4704_s3 }
 0xaf6   :  { %v613_v37 = vpop.permute.xlu1 %612 }
 0xaf7   :  { %4251 = vmatmul.mubr.msk.f32.vlgmr.msra.gmra.mxu1 %vm191_vm3, %v613_v37 }
 0xaf8   :  { %4265 = vmatpush3.msra.mxu1 %v4791_v2  ;;  %4272 = vmatprep.mubr.msk.f32.mxu1 %vm4702_vm0, %v4701_v0 }
 0xaf9   :  { %4266 = vmatprep.subr.mxu1 %v4701_v0 }
 0xafa   :  { %4267 = vmatpush3.msra.mxu1 %v4804_v5 }
 0xafb   :  { %4268 = vmatprep.subr.mxu1 %v4701_v0 }
 0xafc   :  { %4269 = vmatpush3.msra.mxu1 %v4813_v6 }
 0xafd   :  { %4270 = vmatprep.subr.mxu1 %v4701_v0 }
 0xafe   :  { %4271 = vmatpush3.msra.mxu1 %v4821_v7 }
 0xaff   :  { %4286 = vmatprep.subr.mxu1 %v4701_v0 }
 0xbb7   :  { %v682_v39 = vpop.f32.mrf.mxu1 }
 0xbb8   :  { %v686_v40 = vadd.f32 %v682_v39, %v4936_v38 }
 0xbb9   :  { %v4252_v41 = vpop.f32.mrf.mxu1 }
 0xbba   :  { %4521 = vtanh.f32 %v686_v40  ;;  %v3847_v43 = vmul.f32 -1.442695, %v686_v40 }
 0xbbc   :  { %4523 = vpow2.f32 %v3847_v43 }
 0xbc7   :  { %v4522_v42 = vpop.eup %4521 }
 0xbc8   :  { %699 = vrot.lane.b32.xlu0 %v4522_v42, %s4703_s18 }
 0xbc9   :  { %v4524_v44 = vpop.eup %4523 }
 0xbca   :  { %v690_v45 = vadd.f32 1.0, %v4524_v44 }
 0xbcc   :  { %4525 = vrcp.f32 %v690_v45 }
 0xbd9   :  { %v4526_v46 = vpop.eup %4525 }
 0xbda   :  { %v697_v49 = vmul.f32 %v4526_v46, %v695_v8 }
 0xc3a   :  { %v700_v47 = vpop.permute.xlu0 %699 }
 0xc3b   :  { %v702_v48 = vmul.f32 %v4526_v46, %v700_v47 }
 0xc3d   :  { %704 = vrot.lane.b32.xlu1 %v702_v48, %s4704_s3 }
 0xcaf   :  { %v705_v50 = vpop.permute.xlu1 %704 }
 0xcb0   :  { %v707_v51 = vadd.f32 %v705_v50, %v697_v49 }
 0xcb2   :  { %4527 = vtanh.f32 %v707_v51  ;;  %v801_v10 = vrot.slane %v707_v51, 6 }
 0xcbf   :  { %v4528_v52 = vpop.eup %4527 }
 0xcc0   :  { %710 = vrot.lane.b32.xlu0 %v4528_v52, %s4703_s18 }
 0xd32   :  { %v711_v53 = vpop.permute.xlu0 %710 }
 0xd33   :  { %v713_v54 = vmul.f32 %v4526_v46, %v711_v53 }
 0xd35   :  { %715 = vrot.lane.b32.xlu1 %v713_v54, %s4704_s3 }
 0xda7   :  { %v716_v55 = vpop.permute.xlu1 %715 }
 0xda8   :  { %4262 = vmatmul.mubr.msk.f32.vlgmr.msra.gmra.mxu0 %vm191_vm3, %v716_v55 }
 0xda9   :  { %4276 = vmatpush3.msra.mxu0 %v4791_v2  ;;  %4283 = vmatprep.mubr.msk.f32.mxu0 %vm4702_vm0, %v4701_v0 }
 0xdaa   :  { %4277 = vmatprep.subr.mxu0 %v4701_v0 }
 0xdab   :  { %4278 = vmatpush3.msra.mxu0 %v4804_v5 }
 0xdac   :  { %4279 = vmatprep.subr.mxu0 %v4701_v0 }
 0xdad   :  { %4280 = vmatpush3.msra.mxu0 %v4813_v6 }
 0xdae   :  { %4281 = vmatprep.subr.mxu0 %v4701_v0 }
 0xdaf   :  { %4282 = vmatpush3.msra.mxu0 %v4821_v7 }
 0xdb0   :  { %4297 = vmatprep.subr.mxu0 %v4701_v0 }
 0xe68   :  { %v785_v56 = vpop.f32.mrf.mxu0 }
 0xe69   :  { %v790_v57 = vrot.slane %v785_v56, 6 }
 0xe6a   :  { %v4263_v58 = vpop.f32.mrf.mxu0 }
 0xe6b   :  { %v792_v59 = vadd.f32 %v790_v57, %v4936_v38 }
 0xe6d   :  { %4529 = vtanh.f32 %v792_v59  ;;  %v3849_v61 = vmul.f32 -1.442695, %v792_v59 }
 0xe6f   :  { %4531 = vpow2.f32 %v3849_v61 }
 0xe7a   :  { %v4530_v60 = vpop.eup %4529 }
 0xe7b   :  { %805 = vrot.lane.b32.xlu0 %v4530_v60, %s4703_s18  ;;  %v5004_v60 = vadd.f32 %v4851_v9, %v4884_v32 }
 0xe7c   :  { %v4532_v62 = vpop.eup %4531 }
 0xe7d   :  { %v796_v63 = vadd.f32 1.0, %v4532_v62 }
 0xe7f   :  { %4533 = vrcp.f32 %v796_v63 }
 0xe8c   :  { %v4534_v1 = vpop.eup %4533 }
 0xe8d   :  { %v803_v12 = vmul.f32 %v4534_v1, %v801_v10 }
 0xeed   :  { %v806_v3 = vpop.permute.xlu0 %805 }
 0xeee   :  { %v808_v4 = vmul.f32 %v4534_v1, %v806_v3 }
 0xef0   :  { %810 = vrot.lane.b32.xlu1 %v808_v4, %s4704_s3 }
 0xf62   :  { %v811_v13 = vpop.permute.xlu1 %810 }
 0xf63   :  { %v813_v14 = vadd.f32 %v811_v13, %v803_v12 }
 0xf65   :  { %4535 = vtanh.f32 %v813_v14  ;;  %v908_v33 = vrot.slane %v813_v14, 6 }
 0xf72   :  { %v4536_v15 = vpop.eup %4535 }
 0xf73   :  { %816 = vrot.lane.b32.xlu0 %v4536_v15, %s4703_s18 }
 0xfe5   :  { %v817_v16 = vpop.permute.xlu0 %816 }
 0xfe6   :  { %v819_v17 = vmul.f32 %v4534_v1, %v817_v16 }
 0xfe8   :  { %v821_v18 = vrot.slane %v819_v17, 2 }
 0xfea   :  { %822 = vrot.lane.b32.xlu1 %v821_v18, %s4704_s3 }
0x105c   :  { %v823_v19 = vpop.permute.xlu1 %822 }
0x105d   :  { %4273 = vmatmul.mubr.msk.f32.vlgmr.msra.gmra.mxu1 %vm191_vm3, %v823_v19 }
0x105e   :  { %4287 = vmatpush3.msra.mxu1 %v4791_v2  ;;  %4294 = vmatprep.mubr.msk.f32.mxu1 %vm4702_vm0, %v4701_v0 }
0x105f   :  { %4288 = vmatprep.subr.mxu1 %v4701_v0 }
0x1060   :  { %4289 = vmatpush3.msra.mxu1 %v4804_v5 }
0x1061   :  { %4290 = vmatprep.subr.mxu1 %v4701_v0 }
0x1062   :  { %4291 = vmatpush3.msra.mxu1 %v4813_v6 }
0x1063   :  { %4292 = vmatprep.subr.mxu1 %v4701_v0 }
0x1064   :  { %4293 = vmatpush3.msra.mxu1 %v4821_v7 }
0x1065   :  { %4308 = vmatprep.subr.mxu1 %v4701_v0 }
0x111d   :  { %v892_v20 = vpop.f32.mrf.mxu1 }
0x111e   :  { %v897_v21 = vrot.slane %v892_v20, 4 }
0x111f   :  { %v4274_v22 = vpop.f32.mrf.mxu1 }
0x1120   :  { %v899_v23 = vadd.f32 %v897_v21, %v4936_v38 }
0x1122   :  { %4537 = vtanh.f32 %v899_v23  ;;  %v3851_v25 = vmul.f32 -1.442695, %v899_v23 }
0x1124   :  { %4539 = vpow2.f32 %v3851_v25 }
0x112f   :  { %v4538_v24 = vpop.eup %4537 }
0x1130   :  { %912 = vrot.lane.b32.xlu0 %v4538_v24, %s4703_s18 }
0x1131   :  { %v4540_v26 = vpop.eup %4539 }
0x1132   :  { %v903_v27 = vadd.f32 1.0, %v4540_v26 }
0x1134   :  { %4541 = vrcp.f32 %v903_v27 }
0x1141   :  { %v4542_v28 = vpop.eup %4541 }
0x1142   :  { %v910_v11 = vmul.f32 %v4542_v28, %v908_v33 }
0x11a2   :  { %v913_v29 = vpop.permute.xlu0 %912 }
0x11a3   :  { %v915_v30 = vmul.f32 %v4542_v28, %v913_v29 }
0x11a5   :  { %917 = vrot.lane.b32.xlu1 %v915_v30, %s4704_s3 }
0x1217   :  { %v918_v34 = vpop.permute.xlu1 %917 }
0x1218   :  { %v920_v35 = vadd.f32 %v918_v34, %v910_v11 }
0x121a   :  { %4543 = vtanh.f32 %v920_v35  ;;  %v1015_v52 = vrot.slane %v920_v35, 6 }
0x1227   :  { %v4544_v36 = vpop.eup %4543 }
0x1228   :  { %923 = vrot.lane.b32.xlu0 %v4544_v36, %s4703_s18 }
0x129a   :  { %v924_v37 = vpop.permute.xlu0 %923 }
0x129b   :  { %v926_v39 = vmul.f32 %v4542_v28, %v924_v37 }
0x129d   :  { %v928_v40 = vrot.slane %v926_v39, 4 }
0x129f   :  { %929 = vrot.lane.b32.xlu1 %v928_v40, %s4704_s3 }
0x1311   :  { %v930_v41 = vpop.permute.xlu1 %929 }
0x1312   :  { %4284 = vmatmul.mubr.msk.f32.vlgmr.msra.gmra.mxu0 %vm191_vm3, %v930_v41 }
0x1313   :  { %4298 = vmatpush3.msra.mxu0 %v4791_v2  ;;  %4305 = vmatprep.mubr.msk.f32.mxu0 %vm4702_vm0, %v4701_v0 }
0x1314   :  { %4299 = vmatprep.subr.mxu0 %v4701_v0 }
0x1315   :  { %4300 = vmatpush3.msra.mxu0 %v4804_v5 }
0x1316   :  { %4301 = vmatprep.subr.mxu0 %v4701_v0 }
0x1317   :  { %4302 = vmatpush3.msra.mxu0 %v4813_v6 }
0x1318   :  { %4303 = vmatprep.subr.mxu0 %v4701_v0 }
0x1319   :  { %4304 = vmatpush3.msra.mxu0 %v4821_v7 }
0x131a   :  { %4319 = vmatprep.subr.mxu0 %v4701_v0 }
0x13d2   :  { %v999_v42 = vpop.f32.mrf.mxu0 }
0x13d3   :  { %v1004_v43 = vrot.slane %v999_v42, 2 }
0x13d4   :  { %v4285_v44 = vpop.f32.mrf.mxu0 }
0x13d5   :  { %v1006_v45 = vadd.f32 %v1004_v43, %v4936_v38 }
0x13d7   :  { %4545 = vtanh.f32 %v1006_v45  ;;  %v3853_v47 = vmul.f32 -1.442695, %v1006_v45 }
0x13d9   :  { %4547 = vpow2.f32 %v3853_v47 }
0x13e4   :  { %v4546_v46 = vpop.eup %4545 }
0x13e5   :  { %1019 = vrot.lane.b32.xlu0 %v4546_v46, %s4703_s18 }
0x13e6   :  { %v4548_v48 = vpop.eup %4547 }
0x13e7   :  { %v1010_v8 = vadd.f32 1.0, %v4548_v48 }
0x13e9   :  { %4549 = vrcp.f32 %v1010_v8 }
0x13f6   :  { %v4550_v49 = vpop.eup %4549 }
0x13f7   :  { %v1017_v53 = vmul.f32 %v4550_v49, %v1015_v52 }
0x1457   :  { %v1020_v50 = vpop.permute.xlu0 %1019 }
0x1458   :  { %v1022_v51 = vmul.f32 %v4550_v49, %v1020_v50 }
0x145a   :  { %1024 = vrot.lane.b32.xlu1 %v1022_v51, %s4704_s3 }
0x14cc   :  { %v1025_v54 = vpop.permute.xlu1 %1024 }
0x14cd   :  { %v1027_v55 = vadd.f32 %v1025_v54, %v1017_v53 }
0x14cf   :  { %4551 = vtanh.f32 %v1027_v55  ;;  %v1119_v32 = vrot.slane %v1027_v55, 6 }
0x14dc   :  { %v4552_v38 = vpop.eup %4551 }
0x14dd   :  { %1030 = vrot.lane.b32.xlu0 %v4552_v38, %s4703_s18 }
0x154f   :  { %v1031_v56 = vpop.permute.xlu0 %1030 }
0x1550   :  { %v1033_v57 = vmul.f32 %v4550_v49, %v1031_v56 }
0x1552   :  { %v1035_v58 = vrot.slane %v1033_v57, 6 }
0x1554   :  { %1036 = vrot.lane.b32.xlu1 %v1035_v58, %s4704_s3 }
0x15c6   :  { %v1037_v59 = vpop.permute.xlu1 %1036 }
0x15c7   :  { %4295 = vmatmul.mubr.msk.f32.vlgmr.msra.gmra.mxu1 %vm191_vm3, %v1037_v59 }
0x15c8   :  { %4309 = vmatpush3.msra.mxu1 %v4791_v2  ;;  %4316 = vmatprep.mubr.msk.f32.mxu1 %vm4702_vm0, %v4701_v0 }
0x15c9   :  { %4310 = vmatprep.subr.mxu1 %v4701_v0 }
0x15ca   :  { %4311 = vmatpush3.msra.mxu1 %v4804_v5 }
0x15cb   :  { %4312 = vmatprep.subr.mxu1 %v4701_v0 }
0x15cc   :  { %4313 = vmatpush3.msra.mxu1 %v4813_v6 }
0x15cd   :  { %4314 = vmatprep.subr.mxu1 %v4701_v0 }
0x15ce   :  { %4315 = vmatpush3.msra.mxu1 %v4821_v7 }
0x15cf   :  { %4330 = vmatprep.subr.mxu1 %v4701_v0 }
0x1687   :  { %v1106_v61 = vpop.f32.mrf.mxu1 }
0x1688   :  { %v1110_v62 = vadd.f32 %v1106_v61, %v5004_v60 }
0x1689   :  { %v4296_v63 = vpop.f32.mrf.mxu1 }
0x168a   :  { %4553 = vtanh.f32 %v1110_v62  ;;  %v3855_v3 = vmul.f32 -1.442695, %v1110_v62 }
0x168c   :  { %4555 = vpow2.f32 %v3855_v3 }
0x1697   :  { %v4554_v1 = vpop.eup %4553 }
0x1698   :  { %1123 = vrot.lane.b32.xlu0 %v4554_v1, %s4703_s18 }
0x1699   :  { %v4556_v4 = vpop.eup %4555 }
0x169a   :  { %v1114_v10 = vadd.f32 1.0, %v4556_v4 }
0x169c   :  { %4557 = vrcp.f32 %v1114_v10 }
0x16a9   :  { %v4558_v12 = vpop.eup %4557 }
0x16aa   :  { %v1121_v15 = vmul.f32 %v4558_v12, %v1119_v32 }
0x170a   :  { %v1124_v13 = vpop.permute.xlu0 %1123 }
0x170b   :  { %v1126_v14 = vmul.f32 %v4558_v12, %v1124_v13 }
0x170d   :  { %1128 = vrot.lane.b32.xlu1 %v1126_v14, %s4704_s3 }
0x177f   :  { %v1129_v16 = vpop.permute.xlu1 %1128 }
0x1780   :  { %v1131_v17 = vadd.f32 %v1129_v16, %v1121_v15 }
0x1782   :  { %4559 = vtanh.f32 %v1131_v17  ;;  %v1225_v34 = vrot.slane %v1131_v17, 6 }
0x178f   :  { %v4560_v18 = vpop.eup %4559 }
0x1790   :  { %1134 = vrot.lane.b32.xlu0 %v4560_v18, %s4703_s18 }
0x1802   :  { %v1135_v19 = vpop.permute.xlu0 %1134 }
0x1803   :  { %v1137_v20 = vmul.f32 %v4558_v12, %v1135_v19 }
0x1805   :  { %1139 = vrot.lane.b32.xlu1 %v1137_v20, %s4704_s3 }
0x1877   :  { %v1140_v21 = vpop.permute.xlu1 %1139 }
0x1878   :  { %4306 = vmatmul.mubr.msk.f32.vlgmr.msra.gmra.mxu0 %vm191_vm3, %v1140_v21 }
0x1879   :  { %4320 = vmatpush3.msra.mxu0 %v4791_v2  ;;  %4327 = vmatprep.mubr.msk.f32.mxu0 %vm4702_vm0, %v4701_v0 }
0x187a   :  { %4321 = vmatprep.subr.mxu0 %v4701_v0 }
0x187b   :  { %4322 = vmatpush3.msra.mxu0 %v4804_v5 }
0x187c   :  { %4323 = vmatprep.subr.mxu0 %v4701_v0 }
0x187d   :  { %4324 = vmatpush3.msra.mxu0 %v4813_v6 }
0x187e   :  { %4325 = vmatprep.subr.mxu0 %v4701_v0 }
0x187f   :  { %4326 = vmatpush3.msra.mxu0 %v4821_v7 }
0x1880   :  { %4341 = vmatprep.subr.mxu0 %v4701_v0 }
0x1938   :  { %v1209_v22 = vpop.f32.mrf.mxu0 }
0x1939   :  { %v1214_v23 = vrot.slane %v1209_v22, 6 }
0x193a   :  { %v4307_v24 = vpop.f32.mrf.mxu0 }
0x193b   :  { %v1216_v25 = vadd.f32 %v1214_v23, %v5004_v60 }
0x193d   :  { %4561 = vtanh.f32 %v1216_v25  ;;  %v3857_v27 = vmul.f32 -1.442695, %v1216_v25  ;;  %v5071_v25 = vadd.f32 %v4882_v31, %v4851_v9 }
0x193f   :  { %4563 = vpow2.f32 %v3857_v27 }
0x194a   :  { %v4562_v26 = vpop.eup %4561 }
0x194b   :  { %1229 = vrot.lane.b32.xlu0 %v4562_v26, %s4703_s18 }
0x194c   :  { %v4564_v28 = vpop.eup %4563 }
0x194d   :  { %v1220_v29 = vadd.f32 1.0, %v4564_v28 }
0x194f   :  { %4565 = vrcp.f32 %v1220_v29 }
0x195c   :  { %v4566_v30 = vpop.eup %4565 }
0x195d   :  { %v1227_v35 = vmul.f32 %v4566_v30, %v1225_v34 }
0x19bd   :  { %v1230_v33 = vpop.permute.xlu0 %1229 }
0x19be   :  { %v1232_v11 = vmul.f32 %v4566_v30, %v1230_v33 }
0x19c0   :  { %1234 = vrot.lane.b32.xlu1 %v1232_v11, %s4704_s3 }
0x1a32   :  { %v1235_v36 = vpop.permute.xlu1 %1234 }
0x1a33   :  { %v1237_v37 = vadd.f32 %v1235_v36, %v1227_v35 }
0x1a35   :  { %4567 = vtanh.f32 %v1237_v37  ;;  %v1332_v54 = vrot.slane %v1237_v37, 6 }
0x1a42   :  { %v4568_v39 = vpop.eup %4567 }
0x1a43   :  { %1240 = vrot.lane.b32.xlu0 %v4568_v39, %s4703_s18 }
0x1ab5   :  { %v1241_v40 = vpop.permute.xlu0 %1240 }
0x1ab6   :  { %v1243_v41 = vmul.f32 %v4566_v30, %v1241_v40  ;;  %v4621_v40 = vld [vmem:[%s5523_s2 + $0x18] sm:$0xff] }
0x1ab8   :  { %v1245_v42 = vrot.slane %v1243_v41, 2  ;;  %v4622_v41 = vld [vmem:[%s5523_s2 + $0x10] sm:$0xff] }
0x1aba   :  { %1246 = vrot.lane.b32.xlu1 %v1245_v42, %s4704_s3  ;;  %v4623_v42 = vld [vmem:[%s5523_s2 + $0x8] sm:$0xff] }
0x1b2c   :  { %v1247_v43 = vpop.permute.xlu1 %1246 }
0x1b2d   :  { %4317 = vmatmul.mubr.msk.f32.vlgmr.msra.gmra.mxu1 %vm191_vm3, %v1247_v43  ;;  %v4624_v43 = vld [vmem:[%s5523_s2] sm:$0xff] }
0x1b2e   :  { %4331 = vmatpush3.msra.mxu1 %v4791_v2  ;;  %4338 = vmatprep.mubr.msk.f32.mxu1 %vm4702_vm0, %v4701_v0 }
0x1b2f   :  { %4332 = vmatprep.subr.mxu1 %v4701_v0 }
0x1b30   :  { %4333 = vmatpush3.msra.mxu1 %v4804_v5 }
0x1b31   :  { %4334 = vmatprep.subr.mxu1 %v4701_v0 }
0x1b32   :  { %4335 = vmatpush3.msra.mxu1 %v4813_v6 }
0x1b33   :  { %4336 = vmatprep.subr.mxu1 %v4701_v0 }
0x1b34   :  { %4337 = vmatpush3.msra.mxu1 %v4821_v7 }
0x1b35   :  { %4352 = vmatprep.subr.mxu1 %v4701_v0 }
0x1bed   :  { %v1316_v44 = vpop.f32.mrf.mxu1 }
0x1bee   :  { %v1321_v45 = vrot.slane %v1316_v44, 4 }
0x1bef   :  { %v4318_v46 = vpop.f32.mrf.mxu1 }
0x1bf0   :  { %v1323_v47 = vadd.f32 %v1321_v45, %v5004_v60 }
0x1bf2   :  { %4569 = vtanh.f32 %v1323_v47  ;;  %v3859_v8 = vmul.f32 -1.442695, %v1323_v47 }
0x1bf4   :  { %4571 = vpow2.f32 %v3859_v8 }
0x1bff   :  { %v4570_v48 = vpop.eup %4569 }
0x1c00   :  { %1336 = vrot.lane.b32.xlu0 %v4570_v48, %s4703_s18 }
0x1c01   :  { %v4572_v49 = vpop.eup %4571 }
0x1c02   :  { %v1327_v50 = vadd.f32 1.0, %v4572_v49 }
0x1c04   :  { %4573 = vrcp.f32 %v1327_v50 }
0x1c11   :  { %v4574_v51 = vpop.eup %4573 }
0x1c12   :  { %v1334_v55 = vmul.f32 %v4574_v51, %v1332_v54 }
0x1c72   :  { %v1337_v52 = vpop.permute.xlu0 %1336 }
0x1c73   :  { %v1339_v53 = vmul.f32 %v4574_v51, %v1337_v52 }
0x1c75   :  { %1341 = vrot.lane.b32.xlu1 %v1339_v53, %s4704_s3 }
0x1ce7   :  { %v1342_v38 = vpop.permute.xlu1 %1341 }
0x1ce8   :  { %v1344_v56 = vadd.f32 %v1342_v38, %v1334_v55 }
0x1cea   :  { %4575 = vtanh.f32 %v1344_v56  ;;  %v1439_v17 = vrot.slane %v1344_v56, 6 }
0x1cf7   :  { %v4576_v57 = vpop.eup %4575 }
0x1cf8   :  { %1347 = vrot.lane.b32.xlu0 %v4576_v57, %s4703_s18 }
0x1d6a   :  { %v1348_v58 = vpop.permute.xlu0 %1347 }
0x1d6b   :  { %v1350_v59 = vmul.f32 %v4574_v51, %v1348_v58 }
0x1d6d   :  { %v1352_v61 = vrot.slane %v1350_v59, 4 }
0x1d6f   :  { %1353 = vrot.lane.b32.xlu1 %v1352_v61, %s4704_s3 }
0x1de1   :  { %v1354_v62 = vpop.permute.xlu1 %1353 }
0x1de2   :  { %4328 = vmatmul.mubr.msk.f32.vlgmr.msra.gmra.mxu0 %vm191_vm3, %v1354_v62 }
0x1de3   :  { %4342 = vmatpush3.msra.mxu0 %v4791_v2  ;;  %4349 = vmatprep.mubr.msk.f32.mxu0 %vm4702_vm0, %v4701_v0 }
0x1de4   :  { %4343 = vmatprep.subr.mxu0 %v4701_v0 }
0x1de5   :  { %4344 = vmatpush3.msra.mxu0 %v4804_v5 }
0x1de6   :  { %4345 = vmatprep.subr.mxu0 %v4701_v0 }
0x1de7   :  { %4346 = vmatpush3.msra.mxu0 %v4813_v6 }
0x1de8   :  { %4347 = vmatprep.subr.mxu0 %v4701_v0 }
0x1de9   :  { %4348 = vmatpush3.msra.mxu0 %v4821_v7 }
0x1dea   :  { %4363 = vmatprep.subr.mxu0 %v4701_v0 }
0x1ea2   :  { %v1423_v63 = vpop.f32.mrf.mxu0 }
0x1ea3   :  { %v1428_v1 = vrot.slane %v1423_v63, 2 }
0x1ea4   :  { %v4329_v3 = vpop.f32.mrf.mxu0 }
0x1ea5   :  { %v1430_v4 = vadd.f32 %v1428_v1, %v5004_v60 }
0x1ea7   :  { %4577 = vtanh.f32 %v1430_v4  ;;  %v3861_v12 = vmul.f32 -1.442695, %v1430_v4 }
0x1ea9   :  { %4579 = vpow2.f32 %v3861_v12 }
0x1eb4   :  { %v4578_v10 = vpop.eup %4577 }
0x1eb5   :  { %1443 = vrot.lane.b32.xlu0 %v4578_v10, %s4703_s18 }
0x1eb6   :  { %v4580_v13 = vpop.eup %4579 }
0x1eb7   :  { %v1434_v14 = vadd.f32 1.0, %v4580_v13 }
0x1eb9   :  { %4581 = vrcp.f32 %v1434_v14 }
0x1ec6   :  { %v4582_v32 = vpop.eup %4581 }
0x1ec7   :  { %v1441_v18 = vmul.f32 %v4582_v32, %v1439_v17 }
0x1f27   :  { %v1444_v15 = vpop.permute.xlu0 %1443 }
0x1f28   :  { %v1446_v16 = vmul.f32 %v4582_v32, %v1444_v15 }
0x1f2a   :  { %1448 = vrot.lane.b32.xlu1 %v1446_v16, %s4704_s3 }
0x1f9c   :  { %v1449_v19 = vpop.permute.xlu1 %1448 }
0x1f9d   :  { %v1451_v20 = vadd.f32 %v1449_v19, %v1441_v18 }
0x1f9f   :  { %4583 = vtanh.f32 %v1451_v20  ;;  %v1543_v9 = vrot.slane %v1451_v20, 6 }
0x1fac   :  { %v4584_v60 = vpop.eup %4583 }
0x1fad   :  { %1454 = vrot.lane.b32.xlu0 %v4584_v60, %s4703_s18  ;;  %v4625_v60 = vld [vmem:[%s5521_s0] sm:$0xff] }
0x201f   :  { %v1455_v21 = vpop.permute.xlu0 %1454 }
0x2020   :  { %v1457_v22 = vmul.f32 %v4582_v32, %v1455_v21  ;;  %v1883_v21 = vrot.slane %v4625_v60, 2  ;;  %v2757_v60 = vld [vmem:[#allocation2 + $0x240] sm:$0xff] }
0x2022   :  { %v1459_v23 = vrot.slane %v1457_v22, 6  ;;  %v4626_v22 = vld [vmem:[%s5521_s0 + $0x8] sm:$0xff] }
0x2024   :  { %1460 = vrot.lane.b32.xlu1 %v1459_v23, %s4704_s3  ;;  %v1884_v23 = vrot.slane %v4626_v22, 2  ;;  %v2755_v22 = vld [vmem:[#allocation2 + $0x230] sm:$0xff] }
0x2096   :  { %v1461_v24 = vpop.permute.xlu1 %1460 }
0x2097   :  { %4339 = vmatmul.mubr.msk.f32.vlgmr.msra.gmra.mxu1 %vm191_vm3, %v1461_v24  ;;  %v4627_v24 = vld [vmem:[%s5521_s0 + $0x10] sm:$0xff] }
0x2098   :  { %4353 = vmatpush3.msra.mxu1 %v4791_v2  ;;  %4360 = vmatprep.mubr.msk.f32.mxu1 %vm4702_vm0, %v4701_v0 }
0x2099   :  { %4354 = vmatprep.subr.mxu1 %v4701_v0 }
0x209a   :  { %4355 = vmatpush3.msra.mxu1 %v4804_v5 }
0x209b   :  { %4356 = vmatprep.subr.mxu1 %v4701_v0 }
0x209c   :  { %4357 = vmatpush3.msra.mxu1 %v4813_v6 }
0x209d   :  { %4358 = vmatprep.subr.mxu1 %v4701_v0 }
0x209e   :  { %4359 = vmatpush3.msra.mxu1 %v4821_v7 }
0x2157   :  { %v1530_v2 = vpop.f32.mrf.mxu1 }
0x2158   :  { %v1534_v26 = vadd.f32 %v1530_v2, %v5071_v25  ;;  %v1886_v2 = vrot.slane %v4627_v24, 2  ;;  %v2753_v24 = vld [vmem:[#allocation2 + $0x220] sm:$0xff] }
0x2159   :  { %v4340_v27 = vpop.f32.mrf.mxu1 }
0x215a   :  { %4585 = vtanh.f32 %v1534_v26  ;;  %v3863_v5 = vmul.f32 -1.442695, %v1534_v26  ;;  %v4628_v26 = vld [vmem:[%s5521_s0 + $0x18] sm:$0xff]  ;;  %s3823_s0 = sshll.u32 %s4705_s20, 4  ;;  %s3824_s0 = int_to_ptr.vmem [resolvable:$true] %s3823_s0 }
0x215b   :  { %v1888_v27 = vrot.slane %v4628_v26, 2  ;;  %v2751_v26 = vld [vmem:[#allocation2 + $0x210] sm:$0xff]  ;;  %p4674_p11 = scmp.lt.s32.totalorder %s3824_s0, %s3824_s0 }
0x215c   :  { %4587 = vpow2.f32 %v3863_v5  ;;  %v5128_v5 = vsel %vm1882_vm4, 0.0, %v1883_v21 }
0x2167   :  { %v4586_v28 = vpop.eup %4585 }
0x2168   :  { %1547 = vrot.lane.b32.xlu0 %v4586_v28, %s4703_s18  ;;  %v1894_v28 = vld [vmem:[%s5525_s4] sm:$0xff] }
0x2169   :  { %v4588_v29 = vpop.eup %4587  ;;  %4374 = vmatprep.subr.msk.mxu1 %vm98_vm1, %v1894_v28 }
0x216a   :  { %v1538_v6 = vadd.f32 1.0, %v4588_v29  ;;  %v5131_v29 = vsel %vm1882_vm4, %v1883_v21, %v1884_v23  ;;  %v2756_v21 = vld [vmem:[#allocation2 + $0x238] sm:$0xff] }
0x216c   :  { %4589 = vrcp.f32 %v1538_v6  ;;  %v5134_v6 = vsel %vm1882_vm4, %v1884_v23, %v1886_v2  ;;  %v2754_v23 = vld [vmem:[#allocation2 + $0x228] sm:$0xff] }
0x2179   :  { %v4590_v30 = vpop.eup %4589 }
0x217a   :  { %v1545_v31 = vmul.f32 %v4590_v30, %v1543_v9  ;;  %v2011_v9 = vrot.slane %v5134_v6, 2 }
0x21da   :  { %v1548_v33 = vpop.permute.xlu0 %1547 }
0x21db   :  { %v1550_v7 = vmul.f32 %v4590_v30, %v1548_v33  ;;  %v5140_v33 = vsel %vm1882_vm4, %v1888_v27, 0.0 }
0x21dd   :  { %1552 = vrot.lane.b32.xlu1 %v1550_v7, %s4704_s3  ;;  %v5143_v7 = vrot.slane %v1894_v28, 4 }
0x224f   :  { %v1553_v11 = vpop.permute.xlu1 %1552 }
0x2250   :  { %v1555_v34 = vadd.f32 %v1553_v11, %v1545_v31  ;;  %v5153_v11 = vld [vmem:[%s5525_s4 + $0x8] sm:$0xff] }
0x2252   :  { %4591 = vtanh.f32 %v1555_v34  ;;  %v1649_v54 = vrot.slane %v1555_v34, 6  ;;  %v2015_v34 = vrot.slane %v5140_v33, 2 }
0x225f   :  { %v4592_v35 = vpop.eup %4591 }
0x2260   :  { %1558 = vrot.lane.b32.xlu0 %v4592_v35, %s4703_s18  ;;  %v2117_v35 = vrot.slane %v5128_v5, 4 }
0x22d2   :  { %v1559_v36 = vpop.permute.xlu0 %1558 }
0x22d3   :  { %v1561_v37 = vmul.f32 %v4590_v30, %v1559_v36  ;;  %v5137_v30 = vsel %vm1882_vm4, %v1886_v2, %v1888_v27  ;;  %v2752_v2 = vld [vmem:[#allocation2 + $0x218] sm:$0xff]  ;;  %v2750_v27 = vld [vmem:[#allocation2 + $0x208] sm:$0xff] }
0x22d4   :  { %v2013_v31 = vrot.slane %v5137_v30, 2 }
0x22d5   :  { %1563 = vrot.lane.b32.xlu1 %v1561_v37, %s4704_s3  ;;  %v2118_v37 = vrot.slane %v5131_v29, 4 }
0x22d6   :  { %v5168_v36 = vsel %vm1882_vm4, %v2011_v9, %v2013_v31 }
0x2347   :  { %v1564_v39 = vpop.permute.xlu1 %1563 }
0x2348   :  { %4350 = vmatmul.mubr.msk.f32.vlgmr.msra.gmra.mxu0 %vm191_vm3, %v1564_v39 }
0x2349   :  { %4364 = vmatpush3.msra.mxu0 %v4621_v40  ;;  %4371 = vmatprep.mubr.msk.f32.mxu0 %vm4702_vm0, %v4701_v0  ;;  %v5182_v40 = vsel %vm1882_vm4, %v2013_v31, %v2015_v34  ;;  %v2008_v31 = vrot.slane %v5128_v5, 2 }
0x234a   :  { %4365 = vmatprep.subr.mxu0 %v4701_v0 }
0x234b   :  { %4366 = vmatpush3.msra.mxu0 %v4622_v41  ;;  %v2120_v41 = vrot.slane %v5134_v6, 4 }
0x234c   :  { %4367 = vmatprep.subr.mxu0 %v4701_v0 }
0x234d   :  { %4368 = vmatpush3.msra.mxu0 %v4623_v42  ;;  %v2119_v42 = vsel %vm98_vm1, %v2117_v35, %v2118_v37  ;;  %v2009_v35 = vrot.slane %v5131_v29, 2 }
0x234e   :  { %4369 = vmatprep.subr.mxu0 %v4701_v0 }
0x234f   :  { %4370 = vmatpush3.msra.mxu0 %v4624_v43  ;;  %v2122_v43 = vrot.slane %v5137_v30, 4 }
0x2350   :  { %4382 = vmatprep.subr.msk.mxu0 %vm98_vm1, %v5143_v7 }
0x2408   :  { %v1633_v44 = vpop.f32.mrf.mxu0 }
0x2409   :  { %v1638_v45 = vrot.slane %v1633_v44, 6  ;;  %v2121_v44 = vsel %vm98_vm1, %v2118_v37, %v2120_v41  ;;  %v2227_v37 = vrot.slane %v5128_v5, 6 }
0x240a   :  { %v4351_v46 = vpop.f32.mrf.mxu0 }
0x240b   :  { %v1640_v47 = vadd.f32 %v1638_v45, %v5071_v25  ;;  %v2124_v45 = vrot.slane %v5140_v33, 4  ;;  %v2123_v46 = vsel %vm98_vm1, %v2120_v41, %v2122_v43  ;;  %v2010_v41 = vsel %vm1882_vm4, %v2008_v31, %v2009_v35  ;;  %v2742_v31 = vld [vmem:[#allocation2 + $0x1c8] sm:$0xff] }
0x240d   :  { %4593 = vtanh.f32 %v1640_v47  ;;  %v3865_v8 = vmul.f32 -1.442695, %v1640_v47  ;;  %v2125_v47 = vsel %vm98_vm1, %v2122_v43, %v2124_v45 }
0x240f   :  { %4595 = vpow2.f32 %v3865_v8 }
0x241a   :  { %v4594_v48 = vpop.eup %4593 }
0x241b   :  { %1653 = vrot.lane.b32.xlu0 %v4594_v48, %s4703_s18  ;;  %v5205_v48 = vld [vmem:[%s5525_s4 + $0x10] sm:$0xff] }
0x241c   :  { %v4596_v49 = vpop.eup %4595 }
0x241d   :  { %v1644_v50 = vadd.f32 1.0, %v4596_v49 }
0x241f   :  { %4597 = vrcp.f32 %v1644_v50  ;;  %v1897_v50 = vld [vmem:[%s5525_s4 + $0x18] sm:$0xf] }
0x242c   :  { %v4598_v51 = vpop.eup %4597 }
0x242d   :  { %v1651_v55 = vmul.f32 %v4598_v51, %v1649_v54 }
0x248d   :  { %v1654_v52 = vpop.permute.xlu0 %1653 }
0x248e   :  { %v1656_v53 = vmul.f32 %v4598_v51, %v1654_v52  ;;  %v2526_v52 = vrot.slane %v4701_v0, 4 }
0x2490   :  { %1658 = vrot.lane.b32.xlu1 %v1656_v53, %s4704_s3  ;;  %v2780_v53 = vld [vmem:[#allocation2 + $0x2f8] sm:$0xff]  ;;  %v2527_v54 = vsel %vm98_vm1, %v2124_v45, %v2526_v52  ;;  %v2232_v45 = vrot.slane %v5137_v30, 6  ;;  %v2711_v52 = vld [vmem:[#allocation2 + $0xd0] sm:$0xff] }
0x2502   :  { %v1659_v38 = vpop.permute.xlu1 %1658 }
0x2503   :  { %v1661_v56 = vadd.f32 %v1659_v38, %v1651_v55  ;;  %v2779_v55 = vld [vmem:[#allocation2 + $0x2f0] sm:$0xff]  ;;  %v2778_v38 = vld [vmem:[#allocation2 + $0x2e8] sm:$0xff] }
0x2505   :  { %4599 = vtanh.f32 %v1661_v56  ;;  %v1756_v17 = vrot.slane %v1661_v56, 6  ;;  %v2777_v56 = vld [vmem:[#allocation2 + $0x2e0] sm:$0xff] }
0x2512   :  { %v4600_v57 = vpop.eup %4599 }
0x2513   :  { %1664 = vrot.lane.b32.xlu0 %v4600_v57, %s4703_s18  ;;  %v2776_v57 = vld [vmem:[#allocation2 + $0x2d8] sm:$0xff] }
0x2585   :  { %v1665_v58 = vpop.permute.xlu0 %1664 }
0x2586   :  { %v1667_v59 = vmul.f32 %v4598_v51, %v1665_v58  ;;  %v2775_v58 = vld [vmem:[#allocation2 + $0x2d0] sm:$0xff] }
0x2588   :  { %v1669_v61 = vrot.slane %v1667_v59, 2  ;;  %v2774_v59 = vld [vmem:[#allocation2 + $0x2c8] sm:$0xff] }
0x258a   :  { %1670 = vrot.lane.b32.xlu1 %v1669_v61, %s4704_s3  ;;  %v2773_v61 = vld [vmem:[#allocation2 + $0x2c0] sm:$0xff] }
0x25fc   :  { %v1671_v62 = vpop.permute.xlu1 %1670 }
0x25fd   :  { %4361 = vmatmul.mubr.msk.f32.vlgmr.msra.gmra.mxu1 %vm191_vm3, %v1671_v62  ;;  %v2772_v62 = vld [vmem:[#allocation2 + $0x2b8] sm:$0xff] }
0x25fe   :  { %4376 = vmatprep.mubr.msk.f32.mxu1 %vm85_vm2, %v5128_v5  ;;  %4375 = vmatpush3.msk.msra.mxu1 %vm98_vm1, %v1894_v28  ;;  %v2749_v28 = vld [vmem:[#allocation2 + $0x200] sm:$0xff]  ;;  %v2230_v5 = vrot.slane %v5134_v6, 6 }
0x25ff   :  { %4476 = vmatprep.subr.msk.mxu1 %vm98_vm1, %v5143_v7 }
0x2601   :  { %4377 = vmatmul.mubr.msk.f32.vlgmr.msra.gmra.mxu1 %vm85_vm2, %v5131_v29 }
0x2602   :  { %4379 = vmatprep.mubr.msk.f32.mxu1 %vm85_vm2, %v5134_v6  ;;  %4477 = vmatpush3.msk.msra.mxu1 %vm98_vm1, %v5143_v7 }
0x2603   :  { %4390 = vmatprep.subr.msk.mxu1 %vm98_vm1, %v5153_v11 }
0x2605   :  { %4380 = vmatmul.mubr.msk.f32.gmra.mxu1 %vm85_vm2, %v5137_v30 }
0x2606   :  { %4387 = vmatprep.mubr.msk.f32.mxu1 %vm85_vm2, %v5168_v36 }
0x2609   :  { %4388 = vmatmul.mubr.msk.f32.vlgmr.msra.gmra.mxu1 %vm85_vm2, %v5182_v40 }
0x260a   :  { %4391 = vmatpush3.msk.msra.mxu1 %vm98_vm1, %v5153_v11  ;;  %4392 = vmatprep.mubr.msk.f32.mxu1 %vm85_vm2, %v2119_v42  ;;  %v2228_v42 = vrot.slane %v5131_v29, 6 }
0x260b   :  { %4406 = vmatprep.subr.msk.mxu1 %vm98_vm1, %v5205_v48 }
0x260d   :  { %4393 = vmatmul.mubr.msk.f32.vlgmr.msra.gmra.mxu1 %vm85_vm2, %v2121_v44 }
0x260e   :  { %4395 = vmatprep.mubr.msk.f32.mxu1 %vm85_vm2, %v2123_v46  ;;  %4407 = vmatpush3.msk.msra.mxu1 %vm98_vm1, %v5205_v48 }
0x260f   :  { %4422 = vmatprep.subr.msk.mxu1 %vm98_vm1, %v1897_v50 }
0x2611   :  { %4396 = vmatmul.mubr.msk.f32.gmra.mxu1 %vm85_vm2, %v2125_v47 }
0x2612   :  { %4408 = vmatprep.mubr.msk.f32.mxu1 %vm85_vm2, %v5131_v29  ;;  %v2229_v29 = vsel %vm2226_vm5, %v2227_v37, %v2228_v42  ;;  %v2741_v37 = vld [vmem:[#allocation2 + $0x1c0] sm:$0xff] }
0x2615   :  { %4409 = vmatmul.mubr.msk.f32.vlgmr.msra.gmra.mxu1 %vm85_vm2, %v5134_v6  ;;  %v2233_v6 = vsel %vm2226_vm5, %v2230_v5, %v2232_v45 }
0x2616   :  { %4411 = vmatprep.mubr.msk.f32.mxu1 %vm85_vm2, %v5137_v30  ;;  %4423 = vmatpush3.msk.msra.mxu1 %vm98_vm1, %v1897_v50 }
0x2617   :  { %2946 = vmatprep.subr.mxu1 %v2780_v53  ;;  %v2710_v53 = vld [vmem:[#allocation2 + $0xc8] sm:$0xff] }
0x2619   :  { %4412 = vmatmul.mubr.msk.f32.gmra.mxu1 %vm85_vm2, %v5140_v33 }
0x261a   :  { %4424 = vmatprep.mubr.msk.f32.mxu1 %vm85_vm2, %v2121_v44  ;;  %v2012_v44 = vsel %vm1882_vm4, %v2009_v35, %v2011_v9  ;;  %v2234_v9 = vrot.slane %v5140_v33, 6  ;;  %v2705_v33 = vld [vmem:[#allocation2 + $0xa0] sm:$0xff]  ;;  %v2807_v35 = vld [vmem:[#allocation2 + $0x3d0] sm:$0xff] }
0x261c   :  { %v2235_v30 = vsel %vm2226_vm5, %v2232_v45, %v2234_v9  ;;  %v2802_v45 = vld [vmem:[#allocation2 + $0x3a8] sm:$0xff]  ;;  %v2801_v9 = vld [vmem:[#allocation2 + $0x3a0] sm:$0xff] }
0x261d   :  { %4425 = vmatmul.mubr.msk.f32.vlgmr.msra.gmra.mxu1 %vm85_vm2, %v2123_v46  ;;  %v2716_v46 = vld [vmem:[#allocation2 + $0xf8] sm:$0xff] }
0x261e   :  { %4427 = vmatprep.mubr.msk.f32.mxu1 %vm85_vm2, %v2125_v47  ;;  %2947 = vmatpush1.msra.mxu1 %v2779_v55  ;;  %v2430_v47 = vrot.slane %v4701_v0, 2  ;;  %v2707_v55 = vld [vmem:[#allocation2 + $0xb0] sm:$0xff] }
0x261f   :  { %2948 = vmatprep.subr.mxu1 %v2778_v38  ;;  %v2703_v38 = vld [vmem:[#allocation2 + $0x90] sm:$0xff] }
0x2620   :  { %2949 = vmatpush1.msra.mxu1 %v2777_v56  ;;  %v2431_v50 = vsel %vm1882_vm4, %v2015_v34, %v2430_v47  ;;  %v2704_v34 = vld [vmem:[#allocation2 + $0x98] sm:$0xff]  ;;  %v2702_v56 = vld [vmem:[#allocation2 + $0x88] sm:$0xff]  ;;  %v2799_v47 = vld [vmem:[#allocation2 + $0x390] sm:$0xff] }
0x2621   :  { %4428 = vmatmul.mubr.msk.f32.gmra.mxu1 %vm85_vm2, %v2527_v54  ;;  %2950 = vmatprep.subr.mxu1 %v2776_v57  ;;  %v2709_v54 = vld [vmem:[#allocation2 + $0xc0] sm:$0xff] }
0x2622   :  { %2951 = vmatpush1.msra.mxu1 %v2775_v58  ;;  %v2701_v57 = vld [vmem:[#allocation2 + $0x80] sm:$0xff]  ;;  %v2700_v58 = vld [vmem:[#allocation2 + $0x78] sm:$0xff] }
0x2623   :  { %2952 = vmatprep.subr.mxu1 %v2774_v59  ;;  %v2699_v59 = vld [vmem:[#allocation2 + $0x70] sm:$0xff] }
0x2624   :  { %2953 = vmatpush1.msra.mxu1 %v2773_v61  ;;  %v2698_v61 = vld [vmem:[#allocation2 + $0x68] sm:$0xff] }
0x2625   :  { %2954 = vmatprep.subr.mxu1 %v2772_v62  ;;  %v2697_v62 = vld [vmem:[#allocation2 + $0x60] sm:$0xff] }
0x26bd   :  { %v1740_v63 = vpop.f32.mrf.mxu1 }
0x26be   :  { %v1745_v1 = vrot.slane %v1740_v63, 4  ;;  %v2771_v63 = vld [vmem:[#allocation2 + $0x2b0] sm:$0xff] }
0x26bf   :  { %v4362_v3 = vpop.f32.mrf.mxu1  ;;  %2955 = vmatpush1.msra.mxu1 %v2771_v63  ;;  %v2696_v63 = vld [vmem:[#allocation2 + $0x58] sm:$0xff] }
0x26c0   :  { %v1747_v4 = vadd.f32 %v1745_v1, %v5071_v25  ;;  %v2770_v1 = vld [vmem:[#allocation2 + $0x2a8] sm:$0xff]  ;;  %v2769_v3 = vld [vmem:[#allocation2 + $0x2a0] sm:$0xff] }
0x26c1   :  { %2956 = vmatprep.subr.mxu1 %v2770_v1  ;;  %v2695_v1 = vld [vmem:[#allocation2 + $0x50] sm:$0xff] }
0x26c2   :  { %4601 = vtanh.f32 %v1747_v4  ;;  %v3867_v12 = vmul.f32 -1.442695, %v1747_v4  ;;  %v2768_v4 = vld [vmem:[#allocation2 + $0x298] sm:$0xff]  ;;  %2957 = vmatpush1.msra.mxu1 %v2769_v3  ;;  %v2694_v3 = vld [vmem:[#allocation2 + $0x48] sm:$0xff] }
0x26c3   :  { %2958 = vmatprep.subr.mxu1 %v2768_v4  ;;  %v2693_v4 = vld [vmem:[#allocation2 + $0x40] sm:$0xff] }
0x26c4   :  { %4603 = vpow2.f32 %v3867_v12  ;;  %v2766_v12 = vld [vmem:[#allocation2 + $0x288] sm:$0xff] }
0x26cf   :  { %v4602_v10 = vpop.eup %4601 }
0x26d0   :  { %1760 = vrot.lane.b32.xlu0 %v4602_v10, %s4703_s18  ;;  %v2767_v10 = vld [vmem:[#allocation2 + $0x290] sm:$0xff] }
0x26d1   :  { %v4604_v13 = vpop.eup %4603  ;;  %2959 = vmatpush1.msra.mxu1 %v2767_v10  ;;  %v2692_v10 = vld [vmem:[#allocation2 + $0x38] sm:$0xff] }
0x26d2   :  { %v1751_v14 = vadd.f32 1.0, %v4604_v13  ;;  %v2765_v13 = vld [vmem:[#allocation2 + $0x280] sm:$0xff]  ;;  %2960 = vmatprep.subr.mxu1 %v2766_v12  ;;  %v2691_v12 = vld [vmem:[#allocation2 + $0x30] sm:$0xff] }
0x26d3   :  { %2961 = vmatpush1.msra.mxu1 %v2765_v13  ;;  %v2690_v13 = vld [vmem:[#allocation2 + $0x28] sm:$0xff] }
0x26d4   :  { %4605 = vrcp.f32 %v1751_v14  ;;  %v2764_v14 = vld [vmem:[#allocation2 + $0x278] sm:$0xff] }
0x26d5   :  { %2962 = vmatprep.subr.mxu1 %v2764_v14  ;;  %v2689_v14 = vld [vmem:[#allocation2 + $0x20] sm:$0xff] }
0x26e1   :  { %v5104_v32 = vpop.eup %4605 }
0x26e2   :  { %v1758_v18 = vmul.f32 %v5104_v32, %v1756_v17  ;;  %v2760_v17 = vld [vmem:[#allocation2 + $0x258] sm:$0xff] }
0x2742   :  { %v1761_v15 = vpop.permute.xlu0 %1760 }
0x2743   :  { %v1763_v16 = vmul.f32 %v5104_v32, %v1761_v15  ;;  %v2762_v15 = vld [vmem:[#allocation2 + $0x268] sm:$0xff] }
0x2745   :  { %1765 = vrot.lane.b32.xlu1 %v1763_v16, %s4704_s3  ;;  %v2761_v16 = vld [vmem:[#allocation2 + $0x260] sm:$0xff] }
0x27b7   :  { %v1766_v19 = vpop.permute.xlu1 %1765 }
0x27b8   :  { %v5109_v20 = vadd.f32 %v1766_v19, %v1758_v18  ;;  %v2759_v18 = vld [vmem:[#allocation2 + $0x250] sm:$0xff]  ;;  %v2758_v19 = vld [vmem:[#allocation2 + $0x248] sm:$0xff] }
0x27ba   :  { %4607 = vtanh.f32 %v5109_v20 }
0x27c7   :  { %v4608_v39 = vpop.eup %4607 }
0x27c8   :  { %1771 = vrot.lane.b32.xlu0 %v4608_v39, %s4703_s18  ;;  %v2236_v39 = vrot.slane %v5153_v11, 4  ;;  %v2432_v11 = vrot.slane %v5205_v48, 4  ;;  %v2715_v48 = vld [vmem:[#allocation2 + $0xf0] sm:$0xff] }
0x283a   :  { %v1772_v8 = vpop.permute.xlu0 %1771 }
0x283b   :  { %v1774_v49 = vmul.f32 %v5104_v32, %v1772_v8  ;;  %v2763_v32 = vld [vmem:[#allocation2 + $0x270] sm:$0xff]  ;;  %v2714_v8 = vld [vmem:[#allocation2 + $0xe8] sm:$0xff] }
0x283c   :  { %2963 = vmatpush1.msra.mxu1 %v2763_v32  ;;  %v2688_v32 = vld [vmem:[#allocation2 + $0x18] sm:$0xff] }
0x283d   :  { %v1776_v51 = vrot.slane %v1774_v49, 4  ;;  %2964 = vmatprep.subr.mxu1 %v2762_v15  ;;  %v2713_v49 = vld [vmem:[#allocation2 + $0xe0] sm:$0xff]  ;;  %v2687_v15 = vld [vmem:[#allocation2 + $0x10] sm:$0xff] }
0x283e   :  { %2965 = vmatpush1.msra.mxu1 %v2761_v16  ;;  %v2686_v16 = vld [vmem:[#allocation2 + $0x8] sm:$0xff] }
0x283f   :  { %1777 = vrot.lane.b32.xlu1 %v1776_v51, %s4704_s3  ;;  %2966 = vmatprep.subr.mxu1 %v2760_v17  ;;  %v2712_v51 = vld [vmem:[#allocation2 + $0xd8] sm:$0xff]  ;;  %v2685_v17 = vld [vmem:[#allocation2] sm:$0xff] }
0x2840   :  { %2967 = vmatpush1.msra.mxu1 %v2759_v18  ;;  %v2748_v18 = vld [vmem:[#allocation2 + $0x1f8] sm:$0xff] }
0x2841   :  { %2968 = vmatprep.subr.mxu1 %v2758_v19  ;;  %v2747_v19 = vld [vmem:[#allocation2 + $0x1f0] sm:$0xff] }
0x2842   :  { %2969 = vmatpush1.msra.mxu1 %v2757_v60  ;;  %v2812_v60 = vld [vmem:[#allocation2 + $0x3f8] sm:$0xff] }
0x2843   :  { %2970 = vmatprep.subr.mxu1 %v2756_v21  ;;  %v2746_v21 = vld [vmem:[#allocation2 + $0x1e8] sm:$0xff] }
0x2844   :  { %2971 = vmatpush1.msra.mxu1 %v2755_v22  ;;  %v2811_v22 = vld [vmem:[#allocation2 + $0x3f0] sm:$0xff] }
0x2845   :  { %2972 = vmatprep.subr.mxu1 %v2754_v23  ;;  %v2745_v23 = vld [vmem:[#allocation2 + $0x1e0] sm:$0xff] }
0x2846   :  { %2973 = vmatpush1.msra.mxu1 %v2753_v24  ;;  %v2810_v24 = vld [vmem:[#allocation2 + $0x3e8] sm:$0xff] }
0x2847   :  { %2974 = vmatprep.subr.mxu1 %v2752_v2  ;;  %v2744_v2 = vld [vmem:[#allocation2 + $0x1d8] sm:$0xff] }
0x2848   :  { %2975 = vmatpush1.msra.mxu1 %v2751_v26  ;;  %v2809_v26 = vld [vmem:[#allocation2 + $0x3e0] sm:$0xff] }
0x2849   :  { %2976 = vmatprep.subr.mxu1 %v2750_v27  ;;  %v2743_v27 = vld [vmem:[#allocation2 + $0x1d0] sm:$0xff] }
0x284a   :  { %2977 = vmatpush1.msra.mxu1 %v2749_v28  ;;  %v2808_v28 = vld [vmem:[#allocation2 + $0x3d8] sm:$0xff] }
0x284b   :  { %2978 = vmatprep.subr.mxu1 %v2812_v60  ;;  %v2781_v60 = vld [vmem:[#allocation2 + $0x300] sm:$0xff] }
0x284c   :  { %2979 = vmatpush2.msra.mxu1 %v2811_v22  ;;  %v4378_v22 = vpop.f32.mrf.mxu1 }
0x284d   :  { %2980 = vmatprep.subr.mxu1 %v2810_v24 }
0x284e   :  { %2981 = vmatpush2.msra.mxu1 %v2809_v26 }
0x284f   :  { %2982 = vmatprep.subr.mxu1 %v2808_v28 }
0x2850   :  { %2983 = vmatpush2.msra.mxu1 %v2807_v35 }
0x28b1   :  { %v1778_v43 = vpop.permute.xlu1 %1777 }
0x28b2   :  { %4372 = vmatmul.mubr.msk.f32.vlgmr.msra.gmra.mxu0 %vm191_vm3, %v1778_v43  ;;  %v2739_v43 = vld [vmem:[#allocation2 + $0x1b0] sm:$0xff] }
0x28b3   :  { %4383 = vmatpush3.msk.msra.mxu0 %vm98_vm1, %v5143_v7  ;;  %4384 = vmatprep.mubr.msk.f32.mxu0 %vm85_vm2, %v2010_v41  ;;  %v2231_v7 = vsel %vm2226_vm5, %v2228_v42, %v2230_v5  ;;  %v2740_v41 = vld [vmem:[#allocation2 + $0x1b8] sm:$0xff]  ;;  %v2805_v42 = vld [vmem:[#allocation2 + $0x3c0] sm:$0xff]  ;;  %v2738_v5 = vld [vmem:[#allocation2 + $0x1a8] sm:$0xff] }
0x28b4   :  { %4398 = vmatprep.subr.msk.mxu0 %vm98_vm1, %v2236_v39 }
0x28b6   :  { %4385 = vmatmul.mubr.msk.f32.vlgmr.msra.gmra.mxu0 %vm85_vm2, %v2012_v44 }
0x28b7   :  { %4399 = vmatpush3.msk.msra.mxu0 %vm98_vm1, %v2236_v39  ;;  %4400 = vmatprep.mubr.msk.f32.mxu0 %vm85_vm2, %v2229_v29  ;;  %v2806_v39 = vld [vmem:[#allocation2 + $0x3c8] sm:$0xff]  ;;  %v2737_v29 = vld [vmem:[#allocation2 + $0x1a0] sm:$0xff] }
0x28b8   :  { %4414 = vmatprep.subr.msk.mxu0 %vm98_vm1, %v2432_v11  ;;  %2984 = vmatprep.subr.mxu1 %v2806_v39 }
0x28b9   :  { %2985 = vmatpush2.msra.mxu1 %v2805_v42 }
0x28ba   :  { %4401 = vmatmul.mubr.msk.f32.vlgmr.msra.gmra.mxu0 %vm85_vm2, %v2231_v7  ;;  %v2736_v7 = vld [vmem:[#allocation2 + $0x198] sm:$0xff] }
0x28bb   :  { %4415 = vmatpush3.msk.msra.mxu0 %vm98_vm1, %v2432_v11  ;;  %4403 = vmatprep.mubr.msk.f32.mxu0 %vm85_vm2, %v2233_v6  ;;  %v2803_v11 = vld [vmem:[#allocation2 + $0x3b0] sm:$0xff] }
0x28bc   :  { %2857 = vmatprep.subr.mxu0 %v2716_v46  ;;  %v2735_v6 = vld [vmem:[#allocation2 + $0x190] sm:$0xff]  ;;  %v2800_v46 = vld [vmem:[#allocation2 + $0x398] sm:$0xff] }
0x28be   :  { %4404 = vmatmul.mubr.msk.f32.gmra.mxu0 %vm85_vm2, %v2235_v30  ;;  %v2734_v30 = vld [vmem:[#allocation2 + $0x188] sm:$0xff] }
0x28bf   :  { %4416 = vmatprep.mubr.msk.f32.mxu0 %vm85_vm2, %v2012_v44  ;;  %v2804_v44 = vld [vmem:[#allocation2 + $0x3b8] sm:$0xff] }
0x28c0   :  { %2986 = vmatprep.subr.mxu1 %v2804_v44 }
0x28c1   :  { %2987 = vmatpush2.msra.mxu1 %v2803_v11 }
0x28c2   :  { %4417 = vmatmul.mubr.msk.f32.vlgmr.msra.gmra.mxu0 %vm85_vm2, %v5168_v36  ;;  %v2708_v36 = vld [vmem:[#allocation2 + $0xb8] sm:$0xff]  ;;  %2988 = vmatprep.subr.mxu1 %v2802_v45 }
0x28c3   :  { %4419 = vmatprep.mubr.msk.f32.mxu0 %vm85_vm2, %v5182_v40  ;;  %2858 = vmatpush1.msra.mxu0 %v2715_v48  ;;  %v2706_v40 = vld [vmem:[#allocation2 + $0xa8] sm:$0xff]  ;;  %v2733_v48 = vld [vmem:[#allocation2 + $0x180] sm:$0xff] }
0x28c4   :  { %2859 = vmatprep.subr.mxu0 %v2714_v8  ;;  %2989 = vmatpush2.msra.mxu1 %v2801_v9  ;;  %v2798_v8 = vld [vmem:[#allocation2 + $0x388] sm:$0xff] }
0x28c5   :  { %2860 = vmatpush1.msra.mxu0 %v2713_v49  ;;  %2990 = vmatprep.subr.mxu1 %v2800_v46  ;;  %v2732_v49 = vld [vmem:[#allocation2 + $0x178] sm:$0xff] }
0x28c6   :  { %4420 = vmatmul.mubr.msk.f32.gmra.mxu0 %vm85_vm2, %v2431_v50  ;;  %2861 = vmatprep.subr.mxu0 %v2712_v51  ;;  %v2797_v50 = vld [vmem:[#allocation2 + $0x380] sm:$0xff]  ;;  %v2731_v51 = vld [vmem:[#allocation2 + $0x170] sm:$0xff] }
0x28c7   :  { %2862 = vmatpush1.msra.mxu0 %v2711_v52  ;;  %2991 = vmatpush2.msra.mxu1 %v2799_v47  ;;  %v2796_v52 = vld [vmem:[#allocation2 + $0x378] sm:$0xff] }
0x28c8   :  { %2863 = vmatprep.subr.mxu0 %v2710_v53  ;;  %2992 = vmatprep.subr.mxu1 %v2798_v8  ;;  %v2730_v53 = vld [vmem:[#allocation2 + $0x168] sm:$0xff] }
0x28c9   :  { %2864 = vmatpush1.msra.mxu0 %v2709_v54  ;;  %2993 = vmatpush2.msra.mxu1 %v2797_v50  ;;  %v2795_v54 = vld [vmem:[#allocation2 + $0x370] sm:$0xff] }
0x28ca   :  { %2865 = vmatprep.subr.mxu0 %v2708_v36  ;;  %2994 = vmatprep.subr.mxu1 %v2796_v52  ;;  %v2729_v36 = vld [vmem:[#allocation2 + $0x160] sm:$0xff] }
0x28cb   :  { %2866 = vmatpush1.msra.mxu0 %v2707_v55  ;;  %2995 = vmatpush2.msra.mxu1 %v2795_v54  ;;  %v2794_v55 = vld [vmem:[#allocation2 + $0x368] sm:$0xff] }
0x28cc   :  { %2867 = vmatprep.subr.mxu0 %v2706_v40  ;;  %2996 = vmatprep.subr.mxu1 %v2794_v55  ;;  %v2728_v40 = vld [vmem:[#allocation2 + $0x158] sm:$0xff] }
0x28cd   :  { %2868 = vmatpush1.msra.mxu0 %v2705_v33  ;;  %v2793_v33 = vld [vmem:[#allocation2 + $0x360] sm:$0xff] }
0x28ce   :  { %2869 = vmatprep.subr.mxu0 %v2704_v34  ;;  %2997 = vmatpush2.msra.mxu1 %v2793_v33  ;;  %v2727_v34 = vld [vmem:[#allocation2 + $0x150] sm:$0xff] }
0x28cf   :  { %2870 = vmatpush1.msra.mxu0 %v2703_v38  ;;  %v2792_v38 = vld [vmem:[#allocation2 + $0x358] sm:$0xff] }
0x28d0   :  { %2871 = vmatprep.subr.mxu0 %v2702_v56  ;;  %2998 = vmatprep.subr.mxu1 %v2792_v38  ;;  %v2726_v56 = vld [vmem:[#allocation2 + $0x148] sm:$0xff] }
0x28d1   :  { %2872 = vmatpush1.msra.mxu0 %v2701_v57  ;;  %v2791_v57 = vld [vmem:[#allocation2 + $0x350] sm:$0xff] }
0x28d2   :  { %2873 = vmatprep.subr.mxu0 %v2700_v58  ;;  %2999 = vmatpush2.msra.mxu1 %v2791_v57  ;;  %v2725_v58 = vld [vmem:[#allocation2 + $0x140] sm:$0xff] }
0x28d3   :  { %2874 = vmatpush1.msra.mxu0 %v2699_v59  ;;  %v2790_v59 = vld [vmem:[#allocation2 + $0x348] sm:$0xff] }
0x28d4   :  { %2875 = vmatprep.subr.mxu0 %v2698_v61  ;;  %3000 = vmatprep.subr.mxu1 %v2790_v59  ;;  %v2724_v61 = vld [vmem:[#allocation2 + $0x138] sm:$0xff] }
0x28d5   :  { %2876 = vmatpush1.msra.mxu0 %v2697_v62  ;;  %v2789_v62 = vld [vmem:[#allocation2 + $0x340] sm:$0xff] }
0x28d6   :  { %2877 = vmatprep.subr.mxu0 %v2696_v63  ;;  %3001 = vmatpush2.msra.mxu1 %v2789_v62  ;;  %v2723_v63 = vld [vmem:[#allocation2 + $0x130] sm:$0xff] }
0x28d7   :  { %2878 = vmatpush1.msra.mxu0 %v2695_v1  ;;  %v2788_v1 = vld [vmem:[#allocation2 + $0x338] sm:$0xff] }
0x28d8   :  { %2879 = vmatprep.subr.mxu0 %v2694_v3  ;;  %3002 = vmatprep.subr.mxu1 %v2788_v1  ;;  %v2722_v3 = vld [vmem:[#allocation2 + $0x128] sm:$0xff] }
0x28d9   :  { %2880 = vmatpush1.msra.mxu0 %v2693_v4  ;;  %v2787_v4 = vld [vmem:[#allocation2 + $0x330] sm:$0xff] }
0x28da   :  { %2881 = vmatprep.subr.mxu0 %v2692_v10  ;;  %3003 = vmatpush2.msra.mxu1 %v2787_v4  ;;  %v2721_v10 = vld [vmem:[#allocation2 + $0x120] sm:$0xff] }
0x28db   :  { %2882 = vmatpush1.msra.mxu0 %v2691_v12  ;;  %v2786_v12 = vld [vmem:[#allocation2 + $0x328] sm:$0xff] }
0x28dc   :  { %2883 = vmatprep.subr.mxu0 %v2690_v13  ;;  %3004 = vmatprep.subr.mxu1 %v2786_v12  ;;  %v2720_v13 = vld [vmem:[#allocation2 + $0x118] sm:$0xff] }
0x28dd   :  { %2884 = vmatpush1.msra.mxu0 %v2689_v14  ;;  %v2785_v14 = vld [vmem:[#allocation2 + $0x320] sm:$0xff] }
0x28de   :  { %2885 = vmatprep.subr.mxu0 %v2688_v32  ;;  %3005 = vmatpush2.msra.mxu1 %v2785_v14  ;;  %v2719_v32 = vld [vmem:[#allocation2 + $0x110] sm:$0xff] }
0x28df   :  { %2886 = vmatpush1.msra.mxu0 %v2687_v15  ;;  %v2784_v15 = vld [vmem:[#allocation2 + $0x318] sm:$0xff] }
0x28e0   :  { %2887 = vmatprep.subr.mxu0 %v2686_v16  ;;  %3006 = vmatprep.subr.mxu1 %v2784_v15  ;;  %v2718_v16 = vld [vmem:[#allocation2 + $0x108] sm:$0xff] }
0x28e1   :  { %2888 = vmatpush1.msra.mxu0 %v2685_v17  ;;  %v2783_v17 = vld [vmem:[#allocation2 + $0x310] sm:$0xff] }
0x28e2   :  { %2889 = vmatprep.subr.mxu0 %v2748_v18  ;;  %3007 = vmatpush2.msra.mxu1 %v2783_v17  ;;  %v2717_v18 = vld [vmem:[#allocation2 + $0x100] sm:$0xff] }
0x28e3   :  { %2890 = vmatpush2.msra.mxu0 %v2747_v19  ;;  %v2782_v19 = vld [vmem:[#allocation2 + $0x308] sm:$0xff] }
0x28e4   :  { %2891 = vmatprep.subr.mxu0 %v2746_v21  ;;  %3008 = vmatprep.subr.mxu1 %v2782_v19  ;;  %v2844_v21 = vld [vmem:[#allocation2 + $0x4f8] sm:$0xff] }
0x28e5   :  { %2892 = vmatpush2.msra.mxu0 %v2745_v23  ;;  %3009 = vmatpush2.msra.mxu1 %v2781_v60  ;;  %v1984_v23 = vpop.f32.mrf.mxu1 }
0x28e6   :  { %2893 = vmatprep.subr.mxu0 %v2744_v2 }
0x28e7   :  { %2894 = vmatpush2.msra.mxu0 %v2743_v27  ;;  %v4381_v24 = vpop.f32.mrf.mxu1 }
0x28e8   :  { %2895 = vmatprep.subr.mxu0 %v2742_v31 }
0x28e9   :  { %2896 = vmatpush2.msra.mxu0 %v2741_v37  ;;  %v1994_v2 = vpop.f32.mrf.mxu1 }
0x28ea   :  { %2897 = vmatprep.subr.mxu0 %v2740_v41  ;;  %v3870_v41 = vld [vmem:[%s5526_s5] ss:$0 sm:$0xff] }
0x28eb   :  { %2898 = vmatpush2.msra.mxu0 %v2739_v43  ;;  %v4389_v26 = vpop.f32.mrf.mxu1  ;;  %v2004_v11 = vadd.f32 %v4378_v22, %v3870_v41  ;;  %v2003_v9 = vadd.f32 %v3870_v41, %v1984_v23  ;;  %v2005_v47 = vadd.f32 %v3870_v41, %v1994_v2 }
0x28ec   :  { %2899 = vmatprep.subr.mxu0 %v2738_v5 }
0x28ed   :  { %2900 = vmatpush2.msra.mxu0 %v2737_v29  ;;  %v2104_v27 = vpop.f32.mrf.mxu1 }
0x28ee   :  { %2901 = vmatprep.subr.mxu0 %v2736_v7  ;;  %v2115_v54 = vadd.f32 %v2104_v27, %v2005_v47  ;;  %v2841_v47 = vld [vmem:[#allocation2 + $0x4e0] sm:$0xff] }
0x28ef   :  { %2902 = vmatpush2.msra.mxu0 %v2735_v6  ;;  %v4394_v28 = vpop.f32.mrf.mxu1  ;;  %v2006_v6 = vadd.f32 %v4381_v24, %v3870_v41 }
0x28f0   :  { %2903 = vmatprep.subr.mxu0 %v2734_v30 }
0x28f1   :  { %2904 = vmatpush2.msra.mxu0 %v2733_v48  ;;  %v2203_v31 = vpop.f32.mrf.mxu1 }
0x28f2   :  { %2905 = vmatprep.subr.mxu0 %v2732_v49 }
0x28f3   :  { %2906 = vmatpush2.msra.mxu0 %v2731_v51  ;;  %v4397_v35 = vpop.f32.mrf.mxu1  ;;  %v2116_v51 = vadd.f32 %v4389_v26, %v2006_v6 }
0x28f4   :  { %2907 = vmatprep.subr.mxu0 %v2730_v53 }
0x28f5   :  { %2908 = vmatpush2.msra.mxu0 %v2729_v36  ;;  %v2213_v37 = vpop.f32.mrf.mxu1 }
0x28f6   :  { %2909 = vmatprep.subr.mxu0 %v2728_v40  ;;  %v2225_v40 = vadd.f32 %v4397_v35, %v2116_v51  ;;  %v2224_v38 = vadd.f32 %v2213_v37, %v2115_v54 }
0x28f7   :  { %2910 = vmatpush2.msra.mxu0 %v2727_v34  ;;  %v4410_v39 = vpop.f32.mrf.mxu1 }
0x28f8   :  { %2911 = vmatprep.subr.mxu0 %v2726_v56 }
0x28f9   :  { %2912 = vmatpush2.msra.mxu0 %v2725_v58  ;;  %v2407_v43 = vpop.f32.mrf.mxu1 }
0x28fa   :  { %2913 = vmatprep.subr.mxu0 %v2724_v61 }
0x28fb   :  { %2914 = vmatpush2.msra.mxu0 %v2723_v63  ;;  %v4413_v7 = vpop.f32.mrf.mxu1 }
0x28fc   :  { %2915 = vmatprep.subr.mxu0 %v2722_v3 }
0x28fd   :  { %2916 = vmatpush2.msra.mxu0 %v2721_v10  ;;  %v2417_v50 = vpop.f32.mrf.mxu1 }
0x28fe   :  { %2917 = vmatprep.subr.mxu0 %v2720_v13 }
0x28ff   :  { %2918 = vmatpush2.msra.mxu0 %v2719_v32  ;;  %v4426_v55 = vpop.f32.mrf.mxu1 }
0x2900   :  { %2919 = vmatprep.subr.mxu0 %v2718_v16 }
0x2901   :  { %2920 = vmatpush2.msra.mxu0 %v2717_v18  ;;  %v2599_v59 = vpop.f32.mrf.mxu1 }
0x2902   :  { %3035 = vmatprep.subr.mxu0 %v2844_v21 }
0x2903   :  { %v4429_v4 = vpop.f32.mrf.mxu1 }
0x2905   :  { %v2609_v19 = vpop.f32.mrf.mxu1 }
0x2972   :  { %v1847_v42 = vpop.f32.mrf.mxu0 }
0x2973   :  { %v1852_v44 = vrot.slane %v1847_v42, 2 }
0x2974   :  { %v4373_v5 = vpop.f32.mrf.mxu0 }
0x2975   :  { %v5274_v29 = vadd.f32 %v1852_v44, %v5071_v25 }
0x2976   :  { %v4386_v45 = vpop.f32.mrf.mxu0 }
0x2977   :  { %4609 = vtanh.f32 %v5274_v29  ;;  %v2114_v46 = vadd.f32 %v4386_v45, %v2004_v11  ;;  %v2843_v45 = vld [vmem:[#allocation2 + $0x4f0] sm:$0xff] }
0x2978   :  { %v2094_v30 = vpop.f32.mrf.mxu0 }
0x2979   :  { %v2113_v48 = vadd.f32 %v2094_v30, %v2003_v9  ;;  %v2223_v8 = vadd.f32 %v4394_v28, %v2114_v46  ;;  %v2842_v30 = vld [vmem:[#allocation2 + $0x4e8] sm:$0xff] }
0x297a   :  { %v4402_v49 = vpop.f32.mrf.mxu0 }
0x297b   :  { %v2222_v52 = vadd.f32 %v2203_v31, %v2113_v48  ;;  %v2333_v36 = vadd.f32 %v4402_v49, %v2223_v8 }
0x297c   :  { %v2313_v53 = vpop.f32.mrf.mxu0 }
0x297d   :  { %v2332_v33 = vadd.f32 %v2313_v53, %v2222_v52  ;;  %v2427_v56 = vadd.f32 %v4410_v39, %v2333_v36 }
0x297e   :  { %v4405_v25 = vpop.f32.mrf.mxu0 }
0x297f   :  { %v2335_v57 = vadd.f32 %v4405_v25, %v2225_v40  ;;  %v2426_v61 = vadd.f32 %v2407_v43, %v2332_v33  ;;  %v2839_v25 = vld [vmem:[#allocation2 + $0x4d0] sm:$0xff] }
0x2980   :  { %v2323_v34 = vpop.f32.mrf.mxu0 }
0x2981   :  { %v2334_v62 = vadd.f32 %v2323_v34, %v2224_v38  ;;  %v2429_v10 = vadd.f32 %v4413_v7, %v2335_v57  ;;  %v2837_v34 = vld [vmem:[#allocation2 + $0x4c0] sm:$0xff]  ;;  %v2836_v57 = vld [vmem:[#allocation2 + $0x4b8] sm:$0xff] }
0x2982   :  { %v4418_v58 = vpop.f32.mrf.mxu0 }
0x2983   :  { %v2523_v63 = vadd.f32 %v4418_v58, %v2427_v56  ;;  %v2428_v32 = vadd.f32 %v2417_v50, %v2334_v62  ;;  %v2840_v50 = vld [vmem:[#allocation2 + $0x4d8] sm:$0xff]  ;;  %v2835_v58 = vld [vmem:[#allocation2 + $0x4b0] sm:$0xff] }
0x2984   :  { %v4610_v1 = vpop.eup %4609  ;;  %v2503_v3 = vpop.f32.mrf.mxu0 }
0x2985   :  { %v2619_v12 = vadd.f32 %v4426_v55, %v2523_v63  ;;  %v2522_v13 = vadd.f32 %v2503_v3, %v2426_v61  ;;  %1867 = vrot.lane.b32.xlu0 %v4610_v1, %s4703_s18  ;;  %v2838_v55 = vld [vmem:[#allocation2 + $0x4c8] sm:$0xff] }
0x2986   :  { %v4421_v14 = vpop.f32.mrf.mxu0  ;;  %v2834_v63 = vld [vmem:[#allocation2 + $0x4a8] sm:$0xff] }
0x2987   :  { %v2623_v15 = vmax.f32 %v2619_v12, 0.0  ;;  %v2618_v16 = vadd.f32 %v2599_v59, %v2522_v13  ;;  %v2525_v17 = vadd.f32 %v4421_v14, %v2429_v10  ;;  %v2832_v10 = vld [vmem:[#allocation2 + $0x498] sm:$0xff]  ;;  %v2831_v13 = vld [vmem:[#allocation2 + $0x490] sm:$0xff]  ;;  %v2830_v14 = vld [vmem:[#allocation2 + $0x488] sm:$0xff] }
0x2988   :  { %v2513_v18 = vpop.f32.mrf.mxu0 }
0x2989   :  { %v2622_v60 = vmax.f32 %v2618_v16, 0.0  ;;  %v2524_v21 = vadd.f32 %v2513_v18, %v2428_v32  ;;  %v2621_v22 = vadd.f32 %v4429_v4, %v2525_v17  ;;  %v2631_v23 = vrot.slane %v2623_v15, 4  ;;  %v2833_v4 = vld [vmem:[#allocation2 + $0x4a0] sm:$0xff]  ;;  %v2828_v16 = vld [vmem:[#allocation2 + $0x478] sm:$0xff]  ;;  %v2827_v17 = vld [vmem:[#allocation2 + $0x470] sm:$0xff] }
0x298a   :  { %v2829_v15 = vld [vmem:[#allocation2 + $0x480] sm:$0xff]  ;;  %v2826_v18 = vld [vmem:[#allocation2 + $0x468] sm:$0xff] }
0x298b   :  { %v2630_v24 = vrot.slane %v2622_v60, 4  ;;  %v2620_v2 = vadd.f32 %v2609_v19, %v2524_v21  ;;  %v2625_v26 = vmax.f32 %v2621_v22, 0.0  ;;  %v2825_v19 = vld [vmem:[#allocation2 + $0x460] sm:$0xff]  ;;  %v2824_v60 = vld [vmem:[#allocation2 + $0x458] sm:$0xff]  ;;  %v2823_v21 = vld [vmem:[#allocation2 + $0x450] sm:$0xff] }
0x298c   :  { %v2822_v22 = vld [vmem:[#allocation2 + $0x448] sm:$0xff] }
0x298d   :  { %v5279_v27 = vsel %vm98_vm1, %v2630_v24, %v2631_v23  ;;  %v2642_v28 = vsel %vm98_vm1, 0.0, %v2630_v24  ;;  %v2624_v31 = vmax.f32 %v2620_v2, 0.0  ;;  %v5282_v37 = vrot.slane %v2625_v26, 4  ;;  %v2819_v2 = vld [vmem:[#allocation2 + $0x430] sm:$0xff]  ;;  %v2818_v26 = vld [vmem:[#allocation2 + $0x428] sm:$0xff] }
0x298e   :  { %v2659_v35 = vrot.slane %v2642_v28, 4  ;;  %v2646_v39 = vrot.slane %v2642_v28, 2  ;;  %v2647_v41 = vrot.slane %v5279_v27, 2  ;;  %v2672_v43 = vrot.slane %v2642_v28, 6  ;;  %v2817_v28 = vld [vmem:[#allocation2 + $0x420] sm:$0xff] }
0x298f   :  { %v2633_v42 = vrot.slane %v2624_v31, 4  ;;  %v2673_v44 = vrot.slane %v5279_v27, 6  ;;  %v2660_v5 = vrot.slane %v5279_v27, 4  ;;  %v2643_v40 = vsel %vm98_vm1, %v5282_v37, 0.0  ;;  %v2816_v31 = vld [vmem:[#allocation2 + $0x418] sm:$0xff] }
0x2990   :  { %v2648_v11 = vsel %vm1882_vm4, %v2646_v39, %v2647_v41  ;;  %v2653_v59 = vrot.slane %v2643_v40, 2  ;;  %v2679_v61 = vrot.slane %v2643_v40, 6  ;;  %v2666_v12 = vrot.slane %v2643_v40, 4  ;;  %v2814_v39 = vld [vmem:[#allocation2 + $0x408] sm:$0xff]  ;;  %v3268_v40 = vld [vmem:[#allocation5 + $0x160] sm:$0xff] }
0x2991   :  { %v5290_v7 = vsel %vm98_vm1, %v2631_v23, %v2633_v42  ;;  %v5294_v9 = vsel %vm98_vm1, %v2633_v42, %v5282_v37  ;;  %2921 = vmatprep.mubr.f32.mxu0 %v2648_v11  ;;  %v2674_v6 = vsel %vm2226_vm5, %v2672_v43, %v2673_v44  ;;  %v2661_v46 = vsel %vm98_vm1, %v2659_v35, %v2660_v5  ;;  %v2821_v23 = vld [vmem:[#allocation2 + $0x440] sm:$0xff]  ;;  %v2815_v35 = vld [vmem:[#allocation2 + $0x410] sm:$0xff]  ;;  %v3255_v43 = vld [vmem:[#allocation5 + $0xf8] sm:$0xff] }
0x2992   :  { %3010 = vmatprep.mubr.f32.mxu1 %v2674_v6  ;;  %3907 = vmatmul.mubr.msk.f32.vlgmr.msra.gmra.mxu0 %vm3906_vm6, %v2630_v24  ;;  %v2649_v48 = vrot.slane %v5290_v7, 2  ;;  %v2675_v8 = vrot.slane %v5290_v7, 6  ;;  %v2662_v49 = vrot.slane %v5290_v7, 4  ;;  %v2651_v51 = vrot.slane %v5294_v9, 2  ;;  %v2820_v24 = vld [vmem:[#allocation2 + $0x438] sm:$0xff]  ;;  %v3253_v11 = vld [vmem:[#allocation5 + $0xe8] sm:$0xff] }
0x2993   :  { %3011 = vmatmul.mubr.f32.vlgmr.msra.gmra.mxu1 %v2661_v46  ;;  %3036 = vmatpush1.msra.mxu0 %v2843_v45  ;;  %v2677_v36 = vrot.slane %v5294_v9, 6  ;;  %v2664_v38 = vrot.slane %v5294_v9, 4  ;;  %v3869_v42 = vmul.f32 -1.442695, %v5274_v29  ;;  %v3236_v6 = vld [vmem:[#allocation5 + $0x60] sm:$0xff]  ;;  %v3235_v46 = vld [vmem:[#allocation5 + $0x58] sm:$0xff] }
0x2994   :  { %3037 = vmatprep.subr.mxu0 %v2842_v30  ;;  %v2650_v52 = vsel %vm1882_vm4, %v2647_v41, %v2649_v48  ;;  %v2676_v53 = vsel %vm2226_vm5, %v2673_v44, %v2675_v8  ;;  %v2663_v54 = vsel %vm98_vm1, %v2660_v5, %v2662_v49  ;;  %v2652_v33 = vsel %vm1882_vm4, %v2649_v48, %v2651_v51  ;;  %v2813_v41 = vld [vmem:[#allocation2 + $0x400] sm:$0xff]  ;;  %v3239_v44 = vld [vmem:[#allocation5 + $0x78] sm:$0xff]  ;;  %v3238_v5 = vld [vmem:[#allocation5 + $0x70] sm:$0xff] }
0x2995   :  { %3038 = vmatpush1.msra.mxu0 %v2841_v47  ;;  %2927 = vmatprep.mubr.f32.mxu0 %v2650_v52  ;;  %v2678_v56 = vsel %vm2226_vm5, %v2675_v8, %v2677_v36  ;;  %v2665_v62 = vsel %vm98_vm1, %v2662_v49, %v2664_v38  ;;  %v2654_v1 = vsel %vm1882_vm4, %v2651_v51, %v2653_v59  ;;  %4611 = vpow2.f32 %v3869_v42  ;;  %v3287_v30 = vld [vmem:[#allocation5 + $0x1f8] sm:$0xff]  ;;  %v3250_v47 = vld [vmem:[#allocation5 + $0xd0] sm:$0xff]  ;;  %v3285_v52 = vld [vmem:[#allocation5 + $0x1e8] sm:$0xff] }
0x2996   :  { %3016 = vmatprep.mubr.f32.mxu1 %v2676_v53  ;;  %3039 = vmatprep.subr.mxu0 %v2840_v50  ;;  %v2680_v3 = vsel %vm2226_vm5, %v2677_v36, %v2679_v61  ;;  %v2667_v32 = vsel %vm98_vm1, %v2664_v38, %v2666_v12  ;;  %v3271_v48 = vld [vmem:[#allocation5 + $0x178] sm:$0xff]  ;;  %v3234_v8 = vld [vmem:[#allocation5 + $0x50] sm:$0xff]  ;;  %v3249_v50 = vld [vmem:[#allocation5 + $0xc8] sm:$0xff] }
0x2997   :  { %2928 = vmatmul.mubr.f32.gmra.mxu0 %v5279_v27  ;;  %3017 = vmatmul.mubr.f32.gmra.mxu1 %v2663_v54  ;;  %v3286_v49 = vld [vmem:[#allocation5 + $0x1f0] sm:$0xff]  ;;  %v3233_v53 = vld [vmem:[#allocation5 + $0x48] sm:$0xff]  ;;  %v3248_v36 = vld [vmem:[#allocation5 + $0xc0] sm:$0xff] }
0x2998   :  { %3040 = vmatpush1.msra.mxu0 %v2839_v25  ;;  %2933 = vmatprep.mubr.f32.mxu0 %v2652_v33  ;;  %v3270_v51 = vld [vmem:[#allocation5 + $0x170] sm:$0xff]  ;;  %v3269_v54 = vld [vmem:[#allocation5 + $0x168] sm:$0xff]  ;;  %v3284_v25 = vld [vmem:[#allocation5 + $0x1e0] sm:$0xff] }
0x2999   :  { %3022 = vmatprep.mubr.f32.mxu1 %v2678_v56  ;;  %3041 = vmatprep.subr.mxu0 %v2838_v55  ;;  %v3232_v55 = vld [vmem:[#allocation5 + $0x40] sm:$0xff]  ;;  %v3247_v33 = vld [vmem:[#allocation5 + $0xb8] sm:$0xff]  ;;  %v3246_v56 = vld [vmem:[#allocation5 + $0xb0] sm:$0xff] }
0x299a   :  { %3042 = vmatpush1.msra.mxu0 %v2837_v34  ;;  %4036 = vmatprep.subr.mxu1 %v3255_v43  ;;  %v3283_v34 = vld [vmem:[#allocation5 + $0x1d8] sm:$0xff]  ;;  %v3282_v59 = vld [vmem:[#allocation5 + $0x1d0] sm:$0xff]  ;;  %v3245_v61 = vld [vmem:[#allocation5 + $0xa8] sm:$0xff] }
0x299b   :  { %3043 = vmatprep.subr.mxu0 %v2836_v57  ;;  %2934 = vmatmul.mubr.f32.gmra.mxu0 %v5290_v7  ;;  %v3231_v38 = vld [vmem:[#allocation5 + $0x38] sm:$0xff]  ;;  %v3280_v12 = vld [vmem:[#allocation5 + $0x1c0] sm:$0xff] }
0x299c   :  { %3023 = vmatmul.mubr.f32.gmra.mxu1 %v2665_v62  ;;  %3044 = vmatpush1.msra.mxu0 %v2835_v58  ;;  %v3267_v57 = vld [vmem:[#allocation5 + $0x158] sm:$0xff]  ;;  %v3230_v58 = vld [vmem:[#allocation5 + $0x30] sm:$0xff] }
0x299d   :  { %2939 = vmatprep.mubr.f32.mxu0 %v2654_v1  ;;  %3028 = vmatprep.mubr.f32.mxu1 %v2680_v3  ;;  %v3266_v62 = vld [vmem:[#allocation5 + $0x150] sm:$0xff]  ;;  %v3281_v1 = vld [vmem:[#allocation5 + $0x1c8] sm:$0xff]  ;;  %v3244_v3 = vld [vmem:[#allocation5 + $0xa0] sm:$0xff] }
0x299e   :  { %3045 = vmatprep.subr.mxu0 %v2834_v63  ;;  %4037 = vmatpush3.msra.mxu1 %v3239_v44  ;;  %v3229_v63 = vld [vmem:[#allocation5 + $0x28] sm:$0xff]  ;;  %v3319_v42 = vld [vmem:[#allocation5 + $0x2f8] sm:$0xff] }
0x299f   :  { %3046 = vmatpush1.msra.mxu0 %v2833_v4  ;;  %v3265_v4 = vld [vmem:[#allocation5 + $0x148] sm:$0xff]  ;;  %v3275_v43 = vld [vmem:[#allocation5 + $0x198] sm:$0xff] }
0x29a0   :  { %3047 = vmatprep.subr.mxu0 %v2832_v10  ;;  %2940 = vmatmul.mubr.f32.gmra.mxu0 %v5294_v9  ;;  %v3228_v10 = vld [vmem:[#allocation5 + $0x20] sm:$0xff]  ;;  %v3259_v44 = vld [vmem:[#allocation5 + $0x118] sm:$0xff] }
0x29a1   :  { %3029 = vmatmul.mubr.f32.gmra.mxu1 %v2667_v32  ;;  %3048 = vmatpush1.msra.mxu0 %v2831_v13  ;;  %v3243_v13 = vld [vmem:[#allocation5 + $0x98] sm:$0xff] }
0x29a2   :  { %3049 = vmatprep.subr.mxu0 %v2830_v14  ;;  %3099 = vmatprep.mubr.f32.mxu0 %v4701_v0  ;;  %v4612_v45 = vpop.eup %4611  ;;  %v3264_v14 = vld [vmem:[#allocation5 + $0x140] sm:$0xff] }
0x29a3   :  { %3050 = vmatpush1.msra.mxu0 %v2829_v15  ;;  %v1858_v29 = vadd.f32 1.0, %v4612_v45  ;;  %v3257_v45 = vld [vmem:[#allocation5 + $0x108] sm:$0xff] }
0x29a4   :  { %3051 = vmatprep.subr.mxu0 %v2828_v16  ;;  %v3227_v16 = vld [vmem:[#allocation5 + $0x18] sm:$0xff] }
0x29a5   :  { %3052 = vmatpush1.msra.mxu0 %v2827_v17  ;;  %4613 = vrcp.f32 %v1858_v29  ;;  %v3279_v17 = vld [vmem:[#allocation5 + $0x1b8] sm:$0xff]  ;;  %v2847_v29 = vlaneseq }
0x29a6   :  { %3053 = vmatprep.subr.mxu0 %v2826_v18 }
0x29a7   :  { %3054 = vmatpush1.msra.mxu0 %v2825_v19  ;;  %v3242_v19 = vld [vmem:[#allocation5 + $0x90] sm:$0xff] }
0x29a8   :  { %3055 = vmatprep.subr.mxu0 %v2824_v60  ;;  %v3263_v60 = vld [vmem:[#allocation5 + $0x138] sm:$0xff] }
0x29a9   :  { %3056 = vmatpush1.msra.mxu0 %v2823_v21  ;;  %v3226_v21 = vld [vmem:[#allocation5 + $0x10] sm:$0xff] }
0x29aa   :  { %3057 = vmatprep.subr.mxu0 %v2822_v22  ;;  %v3278_v22 = vld [vmem:[#allocation5 + $0x1b0] sm:$0xff] }
0x29ab   :  { %3058 = vmatpush1.msra.mxu0 %v2821_v23  ;;  %v3241_v23 = vld [vmem:[#allocation5 + $0x88] sm:$0xff] }
0x29ac   :  { %3059 = vmatprep.subr.mxu0 %v2820_v24  ;;  %v3262_v24 = vld [vmem:[#allocation5 + $0x130] sm:$0xff] }
0x29ad   :  { %3060 = vmatpush1.msra.mxu0 %v2819_v2  ;;  %v3225_v2 = vld [vmem:[#allocation5 + $0x8] sm:$0xff] }
0x29ae   :  { %3061 = vmatprep.subr.mxu0 %v2818_v26  ;;  %v3277_v26 = vld [vmem:[#allocation5 + $0x1a8] sm:$0xff] }
0x29af   :  { %3062 = vmatpush1.msra.mxu0 %v2817_v28  ;;  %v3240_v28 = vld [vmem:[#allocation5 + $0x80] sm:$0xff] }
0x29b0   :  { %3063 = vmatprep.subr.mxu0 %v2816_v31  ;;  %v3261_v31 = vld [vmem:[#allocation5 + $0x128] sm:$0xff] }
0x29b1   :  { %3064 = vmatpush1.msra.mxu0 %v2815_v35  ;;  %v3224_v35 = vld [vmem:[#allocation5] sm:$0xff] }
0x29b2   :  { %3065 = vmatprep.subr.mxu0 %v2814_v39  ;;  %v5328_v32 = vpop.eup %4613  ;;  %v3276_v39 = vld [vmem:[#allocation5 + $0x1a0] sm:$0xff] }
0x29b3   :  { %3066 = vmatpush1.msra.mxu0 %v2813_v41  ;;  %v3260_v41 = vld [vmem:[#allocation5 + $0x120] sm:$0xff] }
0x29b4   :  { %3100 = vmatmul.mubr.f32.vlgmr.msra.gmra.mxu0 %v5279_v27  ;;  %v3254_v27 = vld [vmem:[#allocation5 + $0xf0] sm:$0xff]  ;;  %4080 = vmatprep.subr.mxu0 %v3287_v30 }
0x29b5   :  { %3105 = vmatprep.mubr.f32.mxu0 %v4701_v0  ;;  %4038 = vmatprep.subr.mxu1 %v3254_v27  ;;  %v3274_v27 = vld [vmem:[#allocation5 + $0x190] sm:$0xff] }
0x29b6   :  { %4039 = vmatpush3.msra.mxu1 %v3238_v5  ;;  %4081 = vmatpush3.msra.mxu0 %v3271_v48  ;;  %v3258_v5 = vld [vmem:[#allocation5 + $0x110] sm:$0xff] }
0x29b7   :  { %4040 = vmatprep.subr.mxu1 %v3253_v11  ;;  %4082 = vmatprep.subr.mxu0 %v3286_v49  ;;  %v3273_v11 = vld [vmem:[#allocation5 + $0x188] sm:$0xff] }
0x29b8   :  { %3106 = vmatmul.mubr.f32.gmra.mxu0 %v5290_v7  ;;  %v3237_v7 = vld [vmem:[#allocation5 + $0x68] sm:$0xff] }
0x29b9   :  { %3111 = vmatprep.mubr.f32.mxu0 %v4701_v0  ;;  %4041 = vmatpush3.msra.mxu1 %v3237_v7  ;;  %v3272_v7 = vld [vmem:[#allocation5 + $0x180] sm:$0xff] }
0x29ba   :  { %4083 = vmatpush3.msra.mxu0 %v3270_v51  ;;  %v2845_v51 = vld [vmem:[%s5528_s7] sm:$0x3] }
0x29bb   :  { %4084 = vmatprep.subr.mxu0 %v3285_v52  ;;  %v1863_v52 = vrot.slane %v5109_v20, 6 }
0x29bc   :  { %3112 = vmatmul.mubr.f32.gmra.mxu0 %v5294_v9  ;;  %v3252_v9 = vld [vmem:[#allocation5 + $0xe0] sm:$0xff] }
0x29bd   :  { %3117 = vmatprep.mubr.f32.mxu0 %v4701_v0  ;;  %4042 = vmatprep.subr.mxu1 %v3252_v9  ;;  %v3256_v9 = vld [vmem:[#allocation5 + $0x100] sm:$0xff] }
0x29be   :  { %4043 = vmatpush3.msra.mxu1 %v3236_v6  ;;  %4085 = vmatpush3.msra.mxu0 %v3269_v54 }
0x29bf   :  { %4086 = vmatprep.subr.mxu0 %v3284_v25 }
0x29c0   :  { %3908 = vmatmul.mubr.msk.f32.gmra.mxu0 %vm98_vm1, %v5282_v37  ;;  %v3251_v37 = vld [vmem:[#allocation5 + $0xd8] sm:$0xff] }
0x29c1   :  { %4044 = vmatprep.subr.mxu1 %v3251_v37  ;;  %4087 = vmatpush3.msra.mxu0 %v3268_v40 }
0x29c2   :  { %4045 = vmatpush3.msra.mxu1 %v3235_v46  ;;  %4088 = vmatprep.subr.mxu0 %v3283_v34 }
0x29c3   :  { %4046 = vmatprep.subr.mxu1 %v3250_v47  ;;  %4089 = vmatpush3.msra.mxu0 %v3267_v57  ;;  %v2848_v47 = vshrl.u32 %v2847_v29, 7 }
0x29c4   :  { %4047 = vmatpush3.msra.mxu1 %v3234_v8  ;;  %4090 = vmatprep.subr.mxu0 %v3282_v59 }
0x29c5   :  { %4048 = vmatprep.subr.mxu1 %v3249_v50  ;;  %4091 = vmatpush3.msra.mxu0 %v3266_v62  ;;  %v2849_v49 = vsub.s32 0, %v2848_v47 }
0x29c6   :  { %4049 = vmatpush3.msra.mxu1 %v3233_v53  ;;  %4092 = vmatprep.subr.mxu0 %v3281_v1  ;;  %v2853_v53 = vsub.s32 1, %v2848_v47 }
0x29c7   :  { %4050 = vmatprep.subr.mxu1 %v3248_v36  ;;  %4093 = vmatpush3.msra.mxu0 %v3265_v4  ;;  %v2850_v36 = vrot.slane %v2845_v51, %v2849_v49 }
0x29c8   :  { %4051 = vmatpush3.msra.mxu1 %v3232_v55  ;;  %4094 = vmatprep.subr.mxu0 %v3280_v12  ;;  %v1865_v55 = vmul.f32 %v5328_v32, %v1863_v52 }
0x29c9   :  { %4052 = vmatprep.subr.mxu1 %v3247_v33  ;;  %4095 = vmatpush3.msra.mxu0 %v3264_v14  ;;  %v2854_v33 = vrot.slane %v2845_v51, %v2853_v53  ;;  %v3301_v53 = vld [vmem:[#allocation5 + $0x268] sm:$0xff] }
0x29ca   :  { %4053 = vmatpush3.msra.mxu1 %v3231_v38  ;;  %4096 = vmatprep.subr.mxu0 %v3279_v17 }
0x29cb   :  { %4054 = vmatprep.subr.mxu1 %v3246_v56  ;;  %4097 = vmatpush3.msra.mxu0 %v3263_v60 }
0x29cc   :  { %4055 = vmatpush3.msra.mxu1 %v3230_v58  ;;  %4098 = vmatprep.subr.mxu0 %v3278_v22 }
0x29cd   :  { %4056 = vmatprep.subr.mxu1 %v3245_v61  ;;  %4099 = vmatpush3.msra.mxu0 %v3262_v24 }
0x29ce   :  { %4057 = vmatpush3.msra.mxu1 %v3229_v63  ;;  %4100 = vmatprep.subr.mxu0 %v3277_v26 }
0x29cf   :  { %4058 = vmatprep.subr.mxu1 %v3244_v3  ;;  %4101 = vmatpush3.msra.mxu0 %v3261_v31 }
0x29d0   :  { %4059 = vmatpush3.msra.mxu1 %v3228_v10  ;;  %4102 = vmatprep.subr.mxu0 %v3276_v39 }
0x29d1   :  { %4060 = vmatprep.subr.mxu1 %v3243_v13  ;;  %4103 = vmatpush3.msra.mxu0 %v3260_v41 }
0x29d2   :  { %4061 = vmatpush3.msra.mxu1 %v3227_v16  ;;  %4104 = vmatprep.subr.mxu0 %v3275_v43 }
0x29d3   :  { %4062 = vmatprep.subr.mxu1 %v3242_v19  ;;  %4105 = vmatpush3.msra.mxu0 %v3259_v44  ;;  %v3303_v44 = vld [vmem:[#allocation5 + $0x278] sm:$0xff] }
0x29d4   :  { %4063 = vmatpush3.msra.mxu1 %v3226_v21  ;;  %4106 = vmatprep.subr.mxu0 %v3274_v27 }
0x29d5   :  { %4064 = vmatprep.subr.mxu1 %v3241_v23  ;;  %4107 = vmatpush3.msra.mxu0 %v3258_v5 }
0x29d6   :  { %4065 = vmatpush3.msra.mxu1 %v3225_v2  ;;  %4108 = vmatprep.subr.mxu0 %v3273_v11 }
0x29d7   :  { %4066 = vmatprep.subr.mxu1 %v3240_v28  ;;  %4109 = vmatpush3.msra.mxu0 %v3257_v45 }
0x29d8   :  { %4067 = vmatpush3.msra.mxu1 %v3224_v35  ;;  %4110 = vmatprep.subr.mxu0 %v3272_v7  ;;  %v3318_v7 = vld [vmem:[#allocation5 + $0x2f0] sm:$0xff] }
0x29d9   :  { %4124 = vmatprep.subr.mxu1 %v3319_v42  ;;  %4111 = vmatpush3.msra.mxu0 %v3256_v9 }
0x29da   :  { %4430 = vmatprep.subr.mxu0 %v4701_v0 }
0x29f7   :  { %v1868_v15 = vpop.permute.xlu0 %1867 }
0x29f8   :  { %v1870_v18 = vmul.f32 %v5328_v32, %v1868_v15 }
0x29fa   :  { %1872 = vrot.lane.b32.xlu1 %v1870_v18, %s4704_s3 }
0x2a52   :  { %v2923_v6 = vpop.f32.mrf.mxu0 }
0x2a53   :  { %v3012_v48 = vpop.f32.mrf.mxu1  ;;  %v2924_v56 = vadd.f32 %v2923_v6, %v2850_v36 }
0x2a54   :  { %v2925_v37 = vpop.f32.mrf.mxu0 }
0x2a55   :  { %v3014_v50 = vpop.f32.mrf.mxu1  ;;  %v2926_v58 = vadd.f32 %v2925_v37, %v2854_v33  ;;  %v3013_v61 = vadd.f32 %v3012_v48, %v2924_v56  ;;  %v3300_v56 = vld [vmem:[#allocation5 + $0x260] sm:$0xff] }
0x2a57   :  { %v2929_v46 = vpop.f32.mrf.mxu0  ;;  %v3018_v25 = vpop.f32.mrf.mxu1  ;;  %v3015_v20 = vadd.f32 %v3014_v50, %v2926_v58 }
0x2a58   :  { %v2930_v62 = vadd.f32 %v2929_v46, %v2850_v36  ;;  %v3302_v46 = vld [vmem:[#allocation5 + $0x270] sm:$0xff] }
0x2a59   :  { %v2931_v30 = vpop.f32.mrf.mxu0  ;;  %v3020_v57 = vpop.f32.mrf.mxu1 }
0x2a5a   :  { %v2932_v3 = vadd.f32 %v2931_v30, %v2854_v33  ;;  %v3019_v12 = vadd.f32 %v3018_v25, %v2930_v62  ;;  %v3315_v62 = vld [vmem:[#allocation5 + $0x2d8] sm:$0xff] }
0x2a5b   :  { %v2935_v8 = vpop.f32.mrf.mxu0 }
0x2a5c   :  { %v3024_v63 = vpop.f32.mrf.mxu1  ;;  %v2936_v13 = vadd.f32 %v2935_v8, %v2850_v36  ;;  %v3021_v18 = vadd.f32 %v3020_v57, %v2932_v3  ;;  %v3317_v8 = vld [vmem:[#allocation5 + $0x2e8] sm:$0xff]  ;;  %v3299_v3 = vld [vmem:[#allocation5 + $0x258] sm:$0xff] }
0x2a5d   :  { %v2937_v54 = vpop.f32.mrf.mxu0 }
0x2a5e   :  { %v3026_v14 = vpop.f32.mrf.mxu1  ;;  %v2938_v19 = vadd.f32 %v2937_v54, %v2854_v33  ;;  %v3025_v2 = vadd.f32 %v3024_v63, %v2936_v13  ;;  %v3314_v13 = vld [vmem:[#allocation5 + $0x2d0] sm:$0xff] }
0x2a60   :  { %v2941_v38 = vpop.f32.mrf.mxu0  ;;  %v3027_v27 = vadd.f32 %v3026_v14, %v2938_v19  ;;  %v3313_v19 = vld [vmem:[#allocation5 + $0x2c8] sm:$0xff] }
0x2a61   :  { %v2942_v22 = vadd.f32 %v2941_v38, %v2850_v36  ;;  %v3030_v26 = vpop.f32.mrf.mxu1 }
0x2a62   :  { %v2943_v59 = vpop.f32.mrf.mxu0 }
0x2a63   :  { %v2944_v41 = vadd.f32 %v2943_v59, %v2854_v33  ;;  %v3031_v9 = vadd.f32 %v3030_v26, %v2942_v22  ;;  %v3032_v29 = vpop.f32.mrf.mxu1  ;;  %v3312_v26 = vld [vmem:[#allocation5 + $0x2c0] sm:$0xff] }
0x2a65   :  { %v3033_v50 = vadd.f32 %v3032_v29, %v2944_v41  ;;  %v3293_v29 = vld [vmem:[#allocation5 + $0x228] sm:$0xff] }
0x2a6c   :  { %v1873_v40 = vpop.permute.xlu1 %1872 }
0x2a6d   :  { %v1875_v34 = vadd.f32 %v1873_v40, %v1865_v55  ;;  %v3316_v40 = vld [vmem:[#allocation5 + $0x2e0] sm:$0xff] }
0x2a6f   :  { %4615 = vtanh.f32 %v1875_v34 }
0x2a74   :  { %v3101_v1 = vpop.f32.mrf.mxu0 }
0x2a75   :  { %v3102_v4 = vadd.f32 %v3101_v1, %v3013_v61 }
0x2a76   :  { %v3103_v10 = vpop.f32.mrf.mxu0 }
0x2a77   :  { %v3104_v15 = vadd.f32 %v3103_v10, %v3015_v20  ;;  %v3124_v16 = vmax.f32 %v3102_v4, 0.0 }
0x2a78   :  { %v3107_v17 = vpop.f32.mrf.mxu0 }
0x2a79   :  { %v3125_v60 = vmax.f32 %v3104_v15, 0.0  ;;  %v3108_v21 = vadd.f32 %v3107_v17, %v3019_v12  ;;  %v3140_v42 = vrot.slane %v3124_v16, 6  ;;  %v3298_v17 = vld [vmem:[#allocation5 + $0x250] sm:$0xff] }
0x2a7a   :  { %v3109_v23 = vpop.f32.mrf.mxu0 }
0x2a7b   :  { %v3141_v28 = vrot.slane %v3125_v60, 6  ;;  %v3126_v31 = vmax.f32 %v3108_v21, 0.0  ;;  %v3110_v35 = vadd.f32 %v3109_v23, %v3021_v18  ;;  %v5355_v51 = vsel %vm2226_vm5, 0.0, %v3140_v42  ;;  %v3297_v23 = vld [vmem:[#allocation5 + $0x248] sm:$0xff] }
0x2a7c   :  { %v4616_v39 = vpop.eup %4615  ;;  %v3113_v43 = vpop.f32.mrf.mxu0  ;;  %v3172_v1 = vrot.slane %v5355_v51, 2 }
0x2a7d   :  { %v3142_v5 = vrot.slane %v3126_v31, 6  ;;  %v3127_v11 = vmax.f32 %v3110_v35, 0.0  ;;  %v3114_v45 = vadd.f32 %v3113_v43, %v3025_v2  ;;  %3911 = vmatprep.mubr.msk.f32.mxu1 %vm5339_vm7, %v3141_v28  ;;  %1878 = vrot.lane.b32.xlu0 %v4616_v39, %s4703_s18  ;;  %v5347_v6 = vsel %vm2226_vm5, 0.0, %v3141_v28  ;;  %v3296_v39 = vld [vmem:[#allocation5 + $0x240] sm:$0xff] }
0x2a7e   :  { %v3115_v37 = vpop.f32.mrf.mxu0  ;;  %3913 = vmatmul.mubr.msk.f32.vlgmr.msra.gmra.mxu1 %vm5339_vm7, %v3140_v42  ;;  %v3175_v57 = vrot.slane %v5347_v6, 2  ;;  %v3201_v41 = vrot.slane %v5347_v6, 4  ;;  %v3294_v6 = vld [vmem:[#allocation5 + $0x230] sm:$0xff] }
0x2a7f   :  { %v3144_v30 = vrot.slane %v3127_v11, 6  ;;  %v3128_v47 = vmax.f32 %v3114_v45, 0.0  ;;  %v3116_v48 = vadd.f32 %v3115_v37, %v3027_v27  ;;  %4125 = vmatpush3.msra.mxu1 %v3303_v44  ;;  %v5352_v49 = vsel %vm2226_vm5, %v3140_v42, %v3142_v5  ;;  %v3311_v44 = vld [vmem:[#allocation5 + $0x2b8] sm:$0xff]  ;;  %v3310_v45 = vld [vmem:[#allocation5 + $0x2b0] sm:$0xff] }
0x2a80   :  { %4126 = vmatprep.subr.mxu1 %v3318_v7  ;;  %v3119_v52 = vpop.f32.mrf.mxu0  ;;  %v3173_v38 = vrot.slane %v5352_v49, 2  ;;  %v3295_v11 = vld [vmem:[#allocation5 + $0x238] sm:$0xff] }
0x2a81   :  { %v3146_v54 = vrot.slane %v3128_v47, 6  ;;  %v3129_v36 = vmax.f32 %v3116_v48, 0.0  ;;  %v3120_v25 = vadd.f32 %v3119_v52, %v3031_v9  ;;  %4127 = vmatpush3.msra.mxu1 %v3302_v46  ;;  %v5358_v55 = vsel %vm2226_vm5, %v3141_v28, %v3144_v30  ;;  %v3309_v46 = vld [vmem:[#allocation5 + $0x2a8] sm:$0xff]  ;;  %v3292_v48 = vld [vmem:[#allocation5 + $0x220] sm:$0xff]  ;;  %v3306_v52 = vld [vmem:[#allocation5 + $0x290] sm:$0xff] }
0x2a82   :  { %4128 = vmatprep.subr.mxu1 %v3317_v8  ;;  %v3121_v33 = vpop.f32.mrf.mxu0  ;;  %v3176_v34 = vrot.slane %v5358_v55, 2  ;;  %3396 = vmatprep.mubr.f32.mxu1 %v5358_v55  ;;  %v3174_v15 = vsel %vm1882_vm4, %v3172_v1, %v3173_v38  ;;  %v3202_v21 = vrot.slane %v5358_v55, 4  ;;  %v3307_v8 = vld [vmem:[#allocation5 + $0x298] sm:$0xff] }
0x2a83   :  { %v3148_v58 = vrot.slane %v3129_v36, 6  ;;  %v3130_v59 = vmax.f32 %v3120_v25, 0.0  ;;  %v3122_v61 = vadd.f32 %v3121_v33, %v3033_v50  ;;  %4129 = vmatpush3.msra.mxu1 %v3301_v53  ;;  %v5365_v63 = vsel %vm2226_vm5, %v3142_v5, %v3146_v54  ;;  %v3291_v50 = vld [vmem:[#allocation5 + $0x218] sm:$0xff]  ;;  %v3290_v53 = vld [vmem:[#allocation5 + $0x210] sm:$0xff]  ;;  %v3289_v36 = vld [vmem:[#allocation5 + $0x208] sm:$0xff] }
0x2a84   :  { %3397 = vmatmul.mubr.f32.gmra.mxu1 %v5352_v49  ;;  %4130 = vmatprep.subr.mxu1 %v3316_v40  ;;  %v3177_v20 = vsel %vm1882_vm4, %v3175_v57, %v3176_v34  ;;  %v3178_v16 = vrot.slane %v5365_v63, 2  ;;  %v3203_v27 = vsel %vm98_vm1, %v3201_v41, %v3202_v21  ;;  %v3199_v25 = vrot.slane %v5352_v49, 4  ;;  %v3304_v40 = vld [vmem:[#allocation5 + $0x280] sm:$0xff] }
0x2a85   :  { %v3150_v4 = vrot.slane %v3130_v59, 6  ;;  %v3131_v10 = vmax.f32 %v3122_v61, 0.0  ;;  %4131 = vmatpush3.msra.mxu1 %v3300_v56  ;;  %3476 = vmatprep.mubr.f32.mxu0 %v3177_v20  ;;  %v5371_v12 = vsel %vm2226_vm5, %v3144_v30, %v3148_v58  ;;  %v3308_v30 = vld [vmem:[#allocation5 + $0x2a0] sm:$0xff]  ;;  %v3204_v56 = vrot.slane %v5365_v63, 4 }
0x2a86   :  { %4132 = vmatprep.subr.mxu1 %v3315_v62  ;;  %v3180_v14 = vrot.slane %v5371_v12, 2  ;;  %3401 = vmatprep.mubr.f32.mxu1 %v5371_v12  ;;  %v3179_v31 = vsel %vm1882_vm4, %v3173_v38, %v3178_v16  ;;  %v3206_v33 = vrot.slane %v5371_v12, 4  ;;  %v3198_v38 = vrot.slane %v5355_v51, 4  ;;  %v3650_v12 = vld [vmem:[%s5532_s11 + $0x78] sm:$0xff] }
0x2a87   :  { %v3152_v18 = vrot.slane %v3131_v10, 6  ;;  %3477 = vmatmul.mubr.f32.vlgmr.msra.gmra.mxu0 %v3174_v15  ;;  %4133 = vmatpush3.msra.mxu1 %v3299_v3  ;;  %v5378_v60 = vsel %vm2226_vm5, %v3146_v54, %v3150_v4  ;;  %v5395_v42 = vsel %vm2226_vm5, %v3150_v4, 0.0  ;;  %v3305_v54 = vld [vmem:[#allocation5 + $0x288] sm:$0xff]  ;;  %v3205_v51 = vsel %vm98_vm1, %v3199_v25, %v3204_v56  ;;  %v3634_v3 = vld [vmem:[%s5531_s10 + $0x18] sm:$0xff]  ;;  %v3633_v4 = vld [vmem:[%s5531_s10 + $0x10] sm:$0xff] }
0x2a88   :  { %3402 = vmatmul.mubr.f32.gmra.mxu1 %v5365_v63  ;;  %4134 = vmatprep.subr.mxu1 %v3314_v13  ;;  %v3181_v22 = vsel %vm1882_vm4, %v3176_v34, %v3180_v14  ;;  %v3182_v35 = vrot.slane %v5378_v60, 2  ;;  %v3186_v7 = vrot.slane %v5395_v42, 2  ;;  %v3288_v34 = vld [vmem:[#allocation5 + $0x200] sm:$0xff]  ;;  %v3200_v57 = vsel %vm98_vm1, %v3198_v38, %v3199_v25  ;;  %v3632_v10 = vld [vmem:[%s5531_s10 + $0x8] sm:$0xff] }
0x2a89   :  { %v5384_v24 = vsel %vm2226_vm5, %v3152_v18, 0.0  ;;  %4135 = vmatpush3.msra.mxu1 %v3298_v17  ;;  %3481 = vmatprep.mubr.f32.mxu0 %v3181_v22  ;;  %v5387_v2 = vsel %vm2226_vm5, %v3148_v58, %v3152_v18  ;;  %v3207_v49 = vsel %vm98_vm1, %v3202_v21, %v3206_v33  ;;  %v3208_v59 = vrot.slane %v5378_v60, 4  ;;  %v3631_v13 = vld [vmem:[%s5531_s10] sm:$0xff]  ;;  %v3644_v21 = vld [vmem:[%s5532_s11 + $0x48] sm:$0xff] }
0x2a8a   :  { %4136 = vmatprep.subr.mxu1 %v3313_v19  ;;  %v3184_v28 = vrot.slane %v5387_v2, 2  ;;  %3406 = vmatprep.mubr.f32.mxu1 %v5387_v2  ;;  %v3188_v43 = vrot.slane %v5384_v24, 2  ;;  %v3183_v9 = vsel %vm1882_vm4, %v3178_v16, %v3182_v35  ;;  %v3187_v47 = vsel %vm1882_vm4, %v3182_v35, %v3186_v7  ;;  %v3648_v16 = vld [vmem:[%s5532_s11 + $0x68] sm:$0xff]  ;;  %v3647_v18 = vld [vmem:[%s5532_s11 + $0x60] sm:$0xff] }
0x2a8b   :  { %3482 = vmatmul.mubr.f32.gmra.mxu0 %v3179_v31  ;;  %4137 = vmatpush3.msra.mxu1 %v3297_v23  ;;  %v3210_v58 = vrot.slane %v5387_v2, 4  ;;  %v3214_v61 = vrot.slane %v5384_v24, 4  ;;  %v3212_v63 = vrot.slane %v5395_v42, 4  ;;  %v3209_v1 = vsel %vm98_vm1, %v3204_v56, %v3208_v59  ;;  %v3643_v22 = vld [vmem:[%s5532_s11 + $0x40] sm:$0xff]  ;;  %v3642_v23 = vld [vmem:[%s5532_s11 + $0x38] sm:$0xff]  ;;  %v3641_v24 = vld [vmem:[%s5532_s11 + $0x30] sm:$0xff] }
0x2a8c   :  { %3407 = vmatmul.mubr.f32.gmra.mxu1 %v5378_v60  ;;  %4138 = vmatprep.subr.mxu1 %v3312_v26  ;;  %v3185_v5 = vsel %vm1882_vm4, %v3180_v14, %v3184_v28  ;;  %v3189_v37 = vsel %vm1882_vm4, %v3184_v28, %v3188_v43  ;;  %v3649_v14 = vld [vmem:[%s5532_s11 + $0x70] sm:$0xff]  ;;  %v3646_v60 = vld [vmem:[%s5532_s11 + $0x58] sm:$0xff]  ;;  %v3640_v2 = vld [vmem:[%s5532_s11 + $0x28] sm:$0xff] }
0x2a8d   :  { %4139 = vmatpush3.msra.mxu1 %v3296_v39  ;;  %3561 = vmatprep.mubr.f32.mxu1 %v3203_v27  ;;  %v3211_v62 = vsel %vm98_vm1, %v3206_v33, %v3210_v58  ;;  %v3215_v55 = vsel %vm98_vm1, %v3210_v58, %v3214_v61  ;;  %v3213_v20 = vsel %vm98_vm1, %v3208_v59, %v3212_v63  ;;  %v3639_v26 = vld [vmem:[%s5532_s11 + $0x20] sm:$0xff]  ;;  %v3638_v28 = vld [vmem:[%s5532_s11 + $0x18] sm:$0xff]  ;;  %v3637_v31 = vld [vmem:[%s5532_s11 + $0x10] sm:$0xff] }
0x2a8e   :  { %3486 = vmatprep.mubr.f32.mxu0 %v3185_v5  ;;  %4140 = vmatprep.subr.mxu1 %v3311_v44  ;;  %v3636_v35 = vld [vmem:[%s5532_s11 + $0x8] sm:$0xff]  ;;  %v3635_v39 = vld [vmem:[%s5532_s11] sm:$0xff] }
0x2a8f   :  { %3487 = vmatmul.mubr.f32.gmra.mxu0 %v3183_v9  ;;  %4141 = vmatpush3.msra.mxu1 %v3295_v11 }
0x2a90   :  { %3491 = vmatprep.mubr.f32.mxu0 %v3189_v37  ;;  %4142 = vmatprep.subr.mxu1 %v3310_v45  ;;  %v3909_v37 = vld [vmem:[%s5530_s9] ss:$0 sm:$0xff] }
0x2a91   :  { %4143 = vmatpush3.msra.mxu1 %v3294_v6  ;;  %4431 = vmatpush3.msra.mxu0 %v3650_v12 }
0x2a92   :  { %4144 = vmatprep.subr.mxu1 %v3309_v46  ;;  %4432 = vmatprep.subr.mxu0 %v4701_v0 }
0x2a93   :  { %3492 = vmatmul.mubr.f32.gmra.mxu0 %v3187_v47  ;;  %4145 = vmatpush3.msra.mxu1 %v3293_v29 }
0x2a94   :  { %4146 = vmatprep.subr.mxu1 %v3308_v30  ;;  %4462 = vmatprep.mubr.msk.f32.mxu0 %vm4702_vm0, %v4701_v0 }
0x2a95   :  { %4147 = vmatpush3.msra.mxu1 %v3292_v48  ;;  %4433 = vmatpush3.msra.mxu0 %v3649_v14 }
0x2a96   :  { %4148 = vmatprep.subr.mxu1 %v3307_v8  ;;  %4434 = vmatprep.subr.mxu0 %v4701_v0 }
0x2a97   :  { %4149 = vmatpush3.msra.mxu1 %v3291_v50  ;;  %4435 = vmatpush3.msra.mxu0 %v3648_v16 }
0x2a98   :  { %4150 = vmatprep.subr.mxu1 %v3306_v52  ;;  %4436 = vmatprep.subr.mxu0 %v4701_v0 }
0x2a99   :  { %4151 = vmatpush3.msra.mxu1 %v3290_v53  ;;  %4437 = vmatpush3.msra.mxu0 %v3647_v18 }
0x2a9a   :  { %4152 = vmatprep.subr.mxu1 %v3305_v54  ;;  %4438 = vmatprep.subr.mxu0 %v4701_v0 }
0x2a9b   :  { %4153 = vmatpush3.msra.mxu1 %v3289_v36  ;;  %4439 = vmatpush3.msra.mxu0 %v3646_v60 }
0x2a9c   :  { %4154 = vmatprep.subr.mxu1 %v3304_v40  ;;  %4440 = vmatprep.subr.mxu0 %v4701_v0 }
0x2a9d   :  { %4155 = vmatpush3.msra.mxu1 %v3288_v34 }
0x2a9e   :  { %3562 = vmatmul.mubr.f32.vlgmr.msra.gmra.mxu1 %v3200_v57  ;;  %4465 = vmatprep.subr.mxu1 %v4701_v0 }
0x2a9f   :  { %3566 = vmatprep.mubr.f32.mxu1 %v3207_v49  ;;  %4466 = vmatpush3.msra.mxu1 %v3634_v3 }
0x2aa0   :  { %4467 = vmatprep.subr.mxu1 %v4701_v0 }
0x2aa1   :  { %4468 = vmatpush3.msra.mxu1 %v3633_v4 }
0x2aa2   :  { %3567 = vmatmul.mubr.f32.gmra.mxu1 %v3205_v51  ;;  %4469 = vmatprep.subr.mxu1 %v4701_v0 }
0x2aa3   :  { %3571 = vmatprep.mubr.f32.mxu1 %v3211_v62  ;;  %4470 = vmatpush3.msra.mxu1 %v3632_v10 }
0x2aa4   :  { %4471 = vmatprep.subr.mxu1 %v4701_v0 }
0x2aa5   :  { %4472 = vmatpush3.msra.mxu1 %v3631_v13 }
0x2aa6   :  { %3572 = vmatmul.mubr.f32.gmra.mxu1 %v3209_v1 }
0x2aa7   :  { %3576 = vmatprep.mubr.f32.mxu1 %v3215_v55 }
0x2aaa   :  { %3577 = vmatmul.mubr.f32.gmra.mxu1 %v3213_v20 }
0x2aab   :  { %4473 = vmatprep.mubr.msk.f32.mxu1 %vm4702_vm0, %v4701_v0 }
0x2aef   :  { %v1879_v15 = vpop.permute.xlu0 %1878 }
0x2af0   :  { %v1881_v17 = vmul.f32 %v5328_v32, %v1879_v15  ;;  %v3645_v32 = vld [vmem:[%s5532_s11 + $0x50] sm:$0xff] }
0x2af1   :  { %4441 = vmatpush3.msra.mxu0 %v3645_v32 }
0x2af2   :  { %v3722_v19 = vrot.slane %v1881_v17, 6  ;;  %4442 = vmatprep.subr.mxu0 %v4701_v0 }
0x2af3   :  { %4443 = vmatpush3.msra.mxu0 %v3644_v21 }
0x2af4   :  { %3723 = vrot.lane.b32.xlu1 %v3722_v19, %s4704_s3  ;;  %4444 = vmatprep.subr.mxu0 %v4701_v0 }
0x2af5   :  { %4445 = vmatpush3.msra.mxu0 %v3643_v22 }
0x2af6   :  { %4446 = vmatprep.subr.mxu0 %v4701_v0 }
0x2af7   :  { %4447 = vmatpush3.msra.mxu0 %v3642_v23 }
0x2af8   :  { %4448 = vmatprep.subr.mxu0 %v4701_v0 }
0x2af9   :  { %4449 = vmatpush3.msra.mxu0 %v3641_v24 }
0x2afa   :  { %4450 = vmatprep.subr.mxu0 %v4701_v0 }
0x2afb   :  { %4451 = vmatpush3.msra.mxu0 %v3640_v2 }
0x2afc   :  { %4452 = vmatprep.subr.mxu0 %v4701_v0 }
0x2afd   :  { %4453 = vmatpush3.msra.mxu0 %v3639_v26 }
0x2afe   :  { %4454 = vmatprep.subr.mxu0 %v4701_v0 }
0x2aff   :  { %4455 = vmatpush3.msra.mxu0 %v3638_v28 }
0x2b00   :  { %4456 = vmatprep.subr.mxu0 %v4701_v0 }
0x2b01   :  { %4457 = vmatpush3.msra.mxu0 %v3637_v31 }
0x2b02   :  { %4458 = vmatprep.subr.mxu0 %v4701_v0 }
0x2b03   :  { %4459 = vmatpush3.msra.mxu0 %v3636_v35 }
0x2b04   :  { %4460 = vmatprep.subr.mxu0 %v4701_v0 }
0x2b05   :  { %4461 = vmatpush3.msra.mxu0 %v3635_v39 }
0x2b3e   :  { %v4068_v41 = vpop.f32.mrf.mxu1 }
0x2b40   :  { %v4069_v42 = vpop.f32.mrf.mxu1 }
0x2b41   :  { %v4070_v6 = vadd.f32 %v4069_v42, %v4068_v41 }
0x2b43   :  { %v3394_v47 = vadd.f32 %v4070_v6, %v3909_v37 }
0x2b44   :  { %v4071_v43 = vpop.f32.mrf.mxu1 }
0x2b46   :  { %v4072_v44 = vpop.f32.mrf.mxu1 }
0x2b47   :  { %v4112_v5 = vpop.f32.mrf.mxu0  ;;  %v4073_v48 = vadd.f32 %v4072_v44, %v4071_v43 }
0x2b48   :  { %v4074_v27 = vpop.f32.mrf.mxu1 }
0x2b49   :  { %v4113_v45 = vpop.f32.mrf.mxu0  ;;  %v3399_v25 = vadd.f32 %v4073_v48, %v3909_v37 }
0x2b4a   :  { %v4075_v11 = vpop.f32.mrf.mxu1  ;;  %v4114_v29 = vadd.f32 %v4113_v45, %v4112_v5 }
0x2b4b   :  { %v4115_v9 = vpop.f32.mrf.mxu0  ;;  %v4076_v58 = vadd.f32 %v4075_v11, %v4074_v27 }
0x2b4c   :  { %v4077_v7 = vpop.f32.mrf.mxu1  ;;  %v3479_v50 = vadd.f32 %v4114_v29, %v3394_v47 }
0x2b4d   :  { %v4116_v30 = vpop.f32.mrf.mxu0  ;;  %v3404_v20 = vadd.f32 %v4076_v58, %v3909_v37 }
0x2b4e   :  { %v4078_v46 = vpop.f32.mrf.mxu1  ;;  %v4117_v52 = vadd.f32 %v4116_v30, %v4115_v9 }
0x2b4f   :  { %v4118_v53 = vpop.f32.mrf.mxu0  ;;  %v4079_v17 = vadd.f32 %v4078_v46, %v4077_v7 }
0x2b50   :  { %v3484_v34 = vadd.f32 %v4117_v52, %v3399_v25 }
0x2b51   :  { %v4119_v38 = vpop.f32.mrf.mxu0  ;;  %v3409_v2 = vadd.f32 %v4079_v17, %v3909_v37 }
0x2b52   :  { %v4120_v63 = vadd.f32 %v4119_v38, %v4118_v53  ;;  %v3915_v53 = vld [vmem:[%s5533_s12] ss:$0 sm:$0xff]  ;;  %s4669_s12 = scalar_lea.vmem %s3824_s0, 32 }
0x2b53   :  { %v4121_v3 = vpop.f32.mrf.mxu0  ;;  %p4670_p10 = scmp.ne.s32.totalorder %s3824_s0, %s4669_s12  ;;  %p4675_p12 = scmp.lt.s32.totalorder %s4669_s12, %s4669_s12 }
0x2b54   :  { %v3489_v15 = vadd.f32 %v4120_v63, %v3404_v20 }
0x2b55   :  { %v4122_v18 = vpop.f32.mrf.mxu0  ;;  %p4676_p13 = por %p4675_p12, %p4674_p11 }
0x2b56   :  { %v4123_v22 = vadd.f32 %v4122_v18, %v4121_v3 }
0x2b57   :  { %p4677_p0 = pnand %p4676_p13, %p4670_p10 }
0x2b58   :  { %v3494_v39 = vadd.f32 %v4123_v22, %v3409_v2 }
0x2b5e   :  { %v4156_v0 = vpop.f32.mrf.mxu1 }
0x2b60   :  { %v4157_v8 = vpop.f32.mrf.mxu1 }
0x2b61   :  { %v4158_v54 = vadd.f32 %v4157_v8, %v4156_v0 }
0x2b62   :  { %v4159_v36 = vpop.f32.mrf.mxu1 }
0x2b63   :  { %v3564_v40 = vadd.f32 %v4158_v54, %v3479_v50 }
0x2b64   :  { %v4160_v33 = vpop.f32.mrf.mxu1 }
0x2b65   :  { %v3582_v56 = vmax.f32 %v3564_v40, 0.0  ;;  %v4161_v57 = vadd.f32 %v4160_v33, %v4159_v36 }
0x2b66   :  { %v4162_v49 = vpop.f32.mrf.mxu1  ;;  %v3724_v59 = vpop.permute.xlu1 %3723 }
0x2b67   :  { %v3588_v51 = vrot.slane %v3582_v56, 2  ;;  %v3569_v61 = vadd.f32 %v4161_v57, %v3484_v34  ;;  %4474 = vmatmul.mubr.msk.f32.vlgmr.msra.gmra.mxu1 %vm191_vm3, %v3724_v59  ;;  %v3591_v55 = vrot.slane %v3582_v56, 4  ;;  %v3594_v10 = vrot.slane %v3582_v56, 6 }
0x2b68   :  { %v4163_v62 = vpop.f32.mrf.mxu1 }
0x2b69   :  { %v3590_v1 = vadd.f32 %v3588_v51, %v3582_v56  ;;  %v3583_v12 = vmax.f32 %v3569_v61, 0.0  ;;  %v4164_v13 = vadd.f32 %v4163_v62, %v4162_v49 }
0x2b6a   :  { %v4165_v14 = vpop.f32.mrf.mxu1 }
0x2b6b   :  { %v3593_v4 = vadd.f32 %v3591_v55, %v3590_v1  ;;  %v3599_v60 = vrot.slane %v3583_v12, 2  ;;  %v3574_v32 = vadd.f32 %v4164_v13, %v3489_v15  ;;  %v3602_v24 = vrot.slane %v3583_v12, 4 }
0x2b6c   :  { %v4166_v21 = vpop.f32.mrf.mxu1  ;;  %v3605_v28 = vrot.slane %v3583_v12, 6 }
0x2b6d   :  { %v3596_v16 = vadd.f32 %v3594_v10, %v3593_v4  ;;  %v3584_v31 = vmax.f32 %v3574_v32, 0.0  ;;  %v4167_v35 = vadd.f32 %v4166_v21, %v4165_v14 }
0x2b6f   :  { %v3597_v19 = vadd.f32 %v3596_v16, %v3583_v12  ;;  %v3610_v43 = vrot.slane %v3584_v31, 2  ;;  %v3579_v44 = vadd.f32 %v4167_v35, %v3494_v39  ;;  %v3613_v5 = vrot.slane %v3584_v31, 4 }
0x2b70   :  { %v3616_v45 = vrot.slane %v3584_v31, 6 }
0x2b71   :  { %v3601_v23 = vadd.f32 %v3599_v60, %v3597_v19  ;;  %v3585_v7 = vmax.f32 %v3579_v44, 0.0 }
0x2b73   :  { %v3604_v26 = vadd.f32 %v3602_v24, %v3601_v23  ;;  %v3621_v46 = vrot.slane %v3585_v7, 2  ;;  %v3624_v30 = vrot.slane %v3585_v7, 4  ;;  %v3627_v0 = vrot.slane %v3585_v7, 6 }
0x2b75   :  { %v3607_v41 = vadd.f32 %v3605_v28, %v3604_v26 }
0x2b77   :  { %v3608_v42 = vadd.f32 %v3607_v41, %v3584_v31 }
0x2b79   :  { %v3612_v27 = vadd.f32 %v3610_v43, %v3608_v42 }
0x2b7b   :  { %v3615_v11 = vadd.f32 %v3613_v5, %v3612_v27 }
0x2b7d   :  { %v3618_v9 = vadd.f32 %v3616_v45, %v3615_v11 }
0x2b7f   :  { %v3619_v6 = vadd.f32 %v3618_v9, %v3585_v7 }
0x2b81   :  { %v3623_v29 = vadd.f32 %v3621_v46, %v3619_v6 }
0x2b83   :  { %v3626_v37 = vadd.f32 %v3624_v30, %v3623_v29 }
0x2b85   :  { %v3629_v47 = vadd.f32 %v3627_v0, %v3626_v37 }
0x2b87   :  { %v3630_v48 = vmul.f32 0.0625, %v3629_v47 }
0x2b89   :  { %4463 = vmatmul.mubr.f32.vlgmr.msra.gmra.mxu0 %v3630_v48 }
0x2c27   :  { %v3793_v8 = vpop.f32.mrf.mxu1 }
0x2c29   :  { %v4475_v50 = vpop.f32.mrf.mxu1 }
0x2c49   :  { %v3717_v52 = vpop.f32.mrf.mxu0 }
0x2c4a   :  { %v3794_v54 = vadd.f32 %v3793_v8, %v3717_v52 }
0x2c4b   :  { %v4464_v36 = vpop.f32.mrf.mxu0 }
0x2c4c   :  { %v3804_v25 = vadd.f32 %v3915_v53, %v3794_v54 }
0x2c4e   :  { %v3805_v40 = vsel %vm2226_vm5, %v3804_v25, -inf }
0x2c4f   :  { %3806 = vmax.xlane.f32.xlu0 %v3805_v40 }
0x2cd8   :  { %v3807_v33 = vpop.xlane.xlu0 %3806 }
0x2cd9   :  { %v3808_v34 = vsub.f32 %v3804_v25, %v3807_v33 }
0x2cdb   :  { %v3809_v38 = vmul.f32 1.442695, %v3808_v34 }
0x2cdd   :  { %4617 = vpow2.f32 %v3809_v38 }
0x2cea   :  { %v4618_v56 = vpop.eup %4617 }
0x2ceb   :  { %v3811_v57 = vsel %vm2226_vm5, %v4618_v56, 0.0 }
0x2cec   :  { %3812 = vadd.xlane.f32.xlu1 %v3811_v57 }
0x2d75   :  { %v3813_v58 = vpop.xlane.xlu1 %3812 }
0x2d76   :  { %4619 = vrcp.f32 %v3813_v58 }
0x2d83   :  { %v4620_v49 = vpop.eup %4619 }
0x2d84   :  { %v3815_v59 = vmul.f32 %v4620_v49, %v4618_v56 }
0x2d86   :  { %3816 = vst [vmem:[#allocation7] sm:$0x3] %v3815_v59 }
0x2d87   :  { %4680 = shalt.err (!%p4677_p0)
}
0x2d88   :  { %3826 = dma.vmem_to_hbm [thread:$0]  %s3824_s0, 32, %s5534_s13, [#allocation4]  }
0x2d89   :  { %4693 = dma.done.wait [#allocation4], 32  }
0x2d8a   :  { %4694 = vsyncadd [#allocation4], 4294967264 }
0x2d8b   :  { %3830 = vsyncpa [#allocation3], 1 }
0x2d8c   :  { %3831 = vsyncpa [#allocation6], 1 }
0x2d8d   :  { %3832 = vsyncpa [#allocation4], 1 }

</bundles_post_ra>
